<compile_context>
chip_gen: v6e
topology: v6e:2x2x1
jax: 0.10.0
libtpu: 0.0.40
codegen_flags: <defaults>
</compile_context>

<pallas_src>
import functools

import jax
import jax.numpy as jnp
from jax.experimental import pallas as pl
from jax.experimental.pallas import tpu as pltpu


# ----------------------------------------------------------------------------
# Fused attention kernel: one (batch, point-tile) block per grid step.
# Data blocks are 2-D (rows = tile_n * k, channels) so the MXU sees a tall M
# dimension and no in-kernel input reshapes are needed.
# ----------------------------------------------------------------------------
def _attention_kernel(
    key_ref, val_ref, qpos_ref,              # (R, Cin) x2, (R, Cq)   bf16
    wk_ref, bk_ref, wv_ref, bv_ref,          # conv_key / conv_value
    wq_ref, bq_ref,                          # merged [conv_query(+1) | query∘pos_mlp.0]
    wp2_ref, bp2_ref,                        # pos_mlp second conv
    wa1_ref, ba1_ref, wa2_ref, ba2_ref,      # attn_mlp (BN folded into first conv)
    we_ref, be_ref,                          # linear_end
    o_ref,                                   # (TN, dim)
):
    f32, bf16 = jnp.float32, jnp.bfloat16
    rows = key_ref.shape[0]
    tn, dim = o_ref.shape
    k = rows // tn

    xk = key_ref[...]                        # bf16 matmul operands
    xv = val_ref[...]
    qp = qpos_ref[...]

    # 1x1 conv projections (tiny contraction dim; <1% of FLOPs, left un-padded)
    K = jnp.dot(xk, wk_ref[...], preferred_element_type=f32) + bk_ref[...]
    V = jnp.dot(xv, wv_ref[...], preferred_element_type=f32) + bv_ref[...]

    # One matmul for the two projections sharing LHS `qp`:
    #   qh[:, :dim]  = Q + 1          (bias carries the folded "+ pos_emb")
    #   qh[:, dim:]  = pos_mlp hidden (conv_query composed with pos_mlp.0, BN folded)
    qh = jnp.dot(qp, wq_ref[...], preferred_element_type=f32) + bq_ref[...]
    Qb = qh[:, :dim]
    h = jnp.maximum(qh[:, dim:], 0.0)
    pos_emb = (jnp.dot(h.astype(bf16), wp2_ref[...], preferred_element_type=f32)
               + bp2_ref[...])

    # attn_mlp((Q - K) * pos_emb + pos_emb) == attn_mlp((Qb - K) * pos_emb)
    a_in = (Qb - K) * pos_emb
    h2 = (jnp.dot(a_in.astype(bf16), wa1_ref[...], preferred_element_type=f32)
          + ba1_ref[...])
    h2 = jnp.maximum(h2, 0.0)
    attn = (jnp.dot(h2.astype(bf16), wa2_ref[...], preferred_element_type=f32)
            + ba2_ref[...])

    # softmax over the neighbor axis k (per point/channel), f32 throughout
    attn3 = attn.reshape(tn, k, dim)
    attn3 = attn3 - jnp.max(attn3, axis=1, keepdims=True)
    e = jnp.exp(attn3)
    # approx reciprocal (EUP slot); error << bf16 operand noise of the matmuls
    p = e * pl.reciprocal(jnp.sum(e, axis=1, keepdims=True), approx=True)

    # value = value + pos_embedding ; aggregate over neighbors
    v3 = (V + pos_emb).reshape(tn, k, dim)
    agg = jnp.sum(p * v3, axis=1)                          # (TN, dim) f32

    # linear_end (Conv1d 1x1)
    y = (jnp.dot(agg.astype(bf16), we_ref[...], preferred_element_type=f32)
         + be_ref[...])
    o_ref[...] = y.astype(o_ref.dtype)


# ----------------------------------------------------------------------------
# Parameters (torch-module-shaped, deterministic synthetic values)
# ----------------------------------------------------------------------------
def make_params(rng, in_channel, pos=3, dim=256, pos_hidden_dim=64,
                attn_hidden_multiplier=4):
    def nxt():
        nonlocal rng
        rng, sub = jax.random.split(rng)
        return sub

    def lin(cin, cout, scale=0.1):
        return (jax.random.normal(nxt(), (cin, cout), jnp.float32) * scale,
                jax.random.normal(nxt(), (1, cout), jnp.float32) * scale)

    def bn(c):
        return {
            "gamma": 1.0 + 0.1 * jax.random.normal(nxt(), (1, c), jnp.float32),
            "beta": 0.1 * jax.random.normal(nxt(), (1, c), jnp.float32),
            "mean": 0.1 * jax.random.normal(nxt(), (1, c), jnp.float32),
            "var": 0.5 + jnp.abs(jax.random.normal(nxt(), (1, c), jnp.float32)),
        }

    hid = dim * attn_hidden_multiplier
    p = {}
    p["wk"], p["bk"] = lin(in_channel, dim)
    p["wv"], p["bv"] = lin(in_channel, dim)
    p["wq"], p["bq"] = lin(pos, dim)
    p["wp1"], p["bp1"] = lin(dim, pos_hidden_dim)
    p["bn_p"] = bn(pos_hidden_dim)
    p["wp2"], p["bp2"] = lin(pos_hidden_dim, dim)
    p["wa1"], p["ba1"] = lin(dim, hid)
    p["bn_a"] = bn(hid)
    p["wa2"], p["ba2"] = lin(hid, dim)
    p["we"], p["be"] = lin(dim, dim)
    return p


# ----------------------------------------------------------------------------
# Host-side weight preparation: BN folds, layer composition/merging, bf16 casts
# ----------------------------------------------------------------------------
def prepare_weights(p, pos_ch=3, cq=8, eps=1e-5):
    bf16 = jnp.bfloat16

    def fold_bn(w, b, bn):
        scale = bn["gamma"] / jnp.sqrt(bn["var"] + eps)      # (1, C)
        shift = bn["beta"] - bn["mean"] * scale
        return w * scale, b * scale + shift

    wp1f, bp1f = fold_bn(p["wp1"], p["bp1"], p["bn_p"])      # eval-mode BN only
    wa1f, ba1f = fold_bn(p["wa1"], p["ba1"], p["bn_a"])

    # conv_query composed with pos_mlp's first conv (no nonlinearity between):
    #   h = (qp @ wq + bq) @ wp1f + bp1f = qp @ (wq @ wp1f) + (bq @ wp1f + bp1f)
    wqp1 = p["wq"] @ wp1f
    bqp1 = p["bq"] @ wp1f + bp1f

    # fold the "+ pos_embedding" term:  (Q - K + 1) * pos_emb  ->  bq + 1
    bq1 = p["bq"] + 1.0

    # merge the two matmuls that share the grouped-position LHS into one:
    #   qp @ [wq | wqp1]  ->  split into Qb and the pos_mlp hidden in-kernel
    wq_all = jnp.concatenate([p["wq"], wqp1], axis=1)        # (3, dim + ph)
    bq_all = jnp.concatenate([bq1, bqp1], axis=1)            # (1, dim + ph)

    # pad the 3 position channels to cq so loads are layout friendly
    wq_all = jnp.pad(wq_all, ((0, cq - pos_ch), (0, 0)))

    return {
        "wk": p["wk"].astype(bf16), "bk": p["bk"],
        "wv": p["wv"].astype(bf16), "bv": p["bv"],
        "wq": wq_all.astype(bf16), "bq": bq_all,
        "wp2": p["wp2"].astype(bf16), "bp2": p["bp2"],
        "wa1": wa1f.astype(bf16), "ba1": ba1f,
        "wa2": p["wa2"].astype(bf16), "ba2": p["ba2"],
        "we": p["we"].astype(bf16), "be": p["be"],
    }


# ----------------------------------------------------------------------------
# Tile choice / VMEM budget helpers (pure python, static under jit)
# ----------------------------------------------------------------------------
def _tpu_vmem_bytes():
    """Per-TensorCore physical VMEM (v5e/v6e: 128 MiB, v7x: 64 MiB)."""
    try:
        return int(pltpu.get_tpu_info().vmem_capacity_bytes)
    except Exception:
        return 64 << 20          # conservative default (v7x-sized)


def _target_rows(vmem_cap):
    """Per-generation target for the MXU M dimension (tile_n * k)."""
    kind = ""
    try:
        kind = jax.devices()[0].device_kind.lower()
    except Exception:
        pass
    if "v5" in kind:
        return 512               # 4x128x128 MXU: moderate tiles already hide step cost
    if vmem_cap <= (64 << 20):
        return 1024              # v7x: 64 MiB VMEM, keep the f32 hidden small
    return 2048                  # v6e: 128 MiB VMEM, highest FLOPs pressure


def _per_point_bytes(k, cin, cq, dim, ph, hid):
    # double-buffered bf16 inputs + conservative f32 live-intermediate estimate
    inputs = 2 * 2 * k * (2 * cin + cq)
    interm = 4 * k * (8 * dim + hid + ph)
    out = 2 * 4 * dim
    return inputs + interm + out


def _choose_tile_n(n, k, b, per_point, vmem_cap, target_rows):
    budget = int(0.35 * vmem_cap)
    cap = min(n,
              max(8, (budget // max(per_point, 1)) // 8 * 8),   # VMEM budget
              max(8, (target_rows // k) // 8 * 8))              # MXU M target
    # keep >= ~8 grid steps for megacore balance, but never drop tn*k below 256
    min_tn = min(cap, max(8, ((-(-256 // k)) + 7) // 8 * 8))
    grid_cap = max(min_tn, ((b * n) // 8) // 8 * 8)
    cap = max(8, min(cap, grid_cap))
    tn = 0
    for t in range(8, cap + 1, 8):
        if n % t == 0:
            tn = t
    if tn == 0:
        tn = n                    # full extent fallback (legal even if not 8-aligned)
    return tn


def _vmem_limit_bytes(tn, per_point, weight_bytes, vmem_cap):
    est = tn * per_point + 2 * weight_bytes + (1 << 20)
    lim = max(32 << 20, 2 * est)
    # clamp to ~75% of physical VMEM: ≈48 MiB on v7x, ≈96 MiB on v6e/v5e
    return int(min(lim, int(0.75 * vmem_cap)))


# ----------------------------------------------------------------------------
# Wrapper: KNN + grouping glue in JAX, fused hot path in the Pallas kernel
# ----------------------------------------------------------------------------
@functools.partial(jax.jit,
                   static_argnames=("n_knn", "tile_n", "transpose_output",
                                    "out_dtype"))
def attention_forward(key, values, pos, weights, n_knn, tile_n=None,
                      transpose_output=True, out_dtype=jnp.float32):
    """key, values: (B, C_in, n, k)  pos: (B, 3, n)  ->  (B, dim, n)
    (set transpose_output=False to get the lane-dense (B, n, dim) layout)."""
    B, cin, n, k = key.shape
    assert k == n_knn
    dim = weights["wk"].shape[1]
    cq = weights["wq"].shape[0]
    ph = weights["wp2"].shape[0]
    hid = weights["wa1"].shape[1]

    # --- KNN(pos, pos) + grouping_operation (data-dependent gather, glue) ---
    # TODO(synk): for large n, replace the dense (B, n, n) distance matrix with
    # a tiled / approximate KNN and move the neighbor gather into the kernel
    # (scalar-prefetched idx + pl.Element / manual DMA) instead of
    # materializing `grouped` and the full channel-last relayouts here.
    p_t = jnp.transpose(pos, (0, 2, 1))                                # (B, n, 3)
    d2 = jnp.sum((p_t[:, :, None, :] - p_t[:, None, :, :]) ** 2, -1)   # (B, n, n)
    _, idx = jax.lax.top_k(-d2, n_knn)                                 # (B, n, k)
    grouped = jax.vmap(lambda pp, ix: pp[:, ix])(pos, idx)             # (B, 3, n, k)

    # flat, channel-last bf16 layouts: rows = point * k + neighbor
    bf16 = jnp.bfloat16
    key_l = jnp.transpose(key, (0, 2, 3, 1)).reshape(B, n * k, cin).astype(bf16)
    val_l = jnp.transpose(values, (0, 2, 3, 1)).reshape(B, n * k, cin).astype(bf16)
    qpos_l = jnp.transpose(grouped, (0, 2, 3, 1))                      # (B, n, k, 3)
    qpos_l = jnp.pad(qpos_l, ((0, 0), (0, 0), (0, 0), (0, cq - 3)))
    qpos_l = qpos_l.reshape(B, n * k, cq).astype(bf16)

    vmem_cap = _tpu_vmem_bytes()
    per_point = _per_point_bytes(k, cin, cq, dim, ph, hid)
    if tile_n is not None:
        tn = tile_n
        assert n % tn == 0 and (tn % 8 == 0 or tn == n), \
            "tile_n must divide n and be a multiple of 8 (or equal n)"
    else:
        tn = _choose_tile_n(n, k, B, per_point, vmem_cap, _target_rows(vmem_cap))
    n_tiles = n // tn

    w_order = ["wk", "bk", "wv", "bv", "wq", "bq", "wp2", "bp2",
               "wa1", "ba1", "wa2", "ba2", "we", "be"]
    w_args = [weights[name] for name in w_order]
    weight_bytes = sum(w.size * w.dtype.itemsize for w in w_args)

    data_map = lambda b, t: (b, t, 0)
    w_map = lambda b, t: (0, 0)
    in_specs = (
        [pl.BlockSpec((None, tn * k, cin), data_map),   # batch dim squeezed
         pl.BlockSpec((None, tn * k, cin), data_map),
         pl.BlockSpec((None, tn * k, cq), data_map)]
        # constant index -> no per-step re-DMA of the weights
        + [pl.BlockSpec(w.shape, w_map) for w in w_args]
    )

    out = pl.pallas_call(
        _attention_kernel,
        out_shape=jax.ShapeDtypeStruct((B, n, dim), out_dtype),
        grid_spec=pltpu.PrefetchScalarGridSpec(
            num_scalar_prefetch=0,
            grid=(B, n_tiles),
            in_specs=in_specs,
            out_specs=pl.BlockSpec((None, tn, dim), lambda b, t: (b, t, 0)),
        ),
        compiler_params=pltpu.CompilerParams(
            dimension_semantics=("parallel", "parallel"),
            vmem_limit_bytes=_vmem_limit_bytes(tn, per_point, weight_bytes,
                                               vmem_cap)),
    )(key_l, val_l, qpos_l, *w_args)

    if transpose_output:
        # module contract returns (B, dim, n); consumers that accept the
        # lane-dense (B, n, dim) layout should pass transpose_output=False.
        return jnp.transpose(out, (0, 2, 1))
    return out


# ----------------------------------------------------------------------------
if __name__ == "__main__":
    # small, module-consistent shapes; auto tile choice gives a multi-step grid
    B, in_channel, n, n_knn = 2, 8, 64, 16
    dim, pos_hidden_dim, attn_mult = 64, 32, 4

    root = jax.random.PRNGKey(0)
    k_key, k_val, k_pos, k_par = jax.random.split(root, 4)

    key = jax.random.normal(k_key, (B, in_channel, n, n_knn), jnp.float32)
    values = jax.random.normal(k_val, (B, in_channel, n, n_knn), jnp.float32)
    pos = jax.random.normal(k_pos, (B, 3, n), jnp.float32)

    params = make_params(k_par, in_channel, pos=3, dim=dim,
                         pos_hidden_dim=pos_hidden_dim,
                         attn_hidden_multiplier=attn_mult)
    weights = prepare_weights(params)

    y = attention_forward(key, values, pos, weights, n_knn)
    jax.block_until_ready(y)
    assert y.shape == (B, dim, n) and bool(jnp.all(jnp.isfinite(y)))
    print("KERNEL_OK")
</pallas_src>

<mosaic_0001>
module attributes {stable_mosaic.version = 11 : i64} {
  func.func @_attention_kernel(%arg0: i32, %arg1: i32, %arg2: memref<1x256x8xbf16, #tpu.memory_space<vmem>>, %arg3: memref<1x256x8xbf16, #tpu.memory_space<vmem>>, %arg4: memref<1x256x8xbf16, #tpu.memory_space<vmem>>, %arg5: memref<8x64xbf16, #tpu.memory_space<vmem>>, %arg6: memref<1x64xf32, #tpu.memory_space<vmem>>, %arg7: memref<8x64xbf16, #tpu.memory_space<vmem>>, %arg8: memref<1x64xf32, #tpu.memory_space<vmem>>, %arg9: memref<8x96xbf16, #tpu.memory_space<vmem>>, %arg10: memref<1x96xf32, #tpu.memory_space<vmem>>, %arg11: memref<32x64xbf16, #tpu.memory_space<vmem>>, %arg12: memref<1x64xf32, #tpu.memory_space<vmem>>, %arg13: memref<64x256xbf16, #tpu.memory_space<vmem>>, %arg14: memref<1x256xf32, #tpu.memory_space<vmem>>, %arg15: memref<256x64xbf16, #tpu.memory_space<vmem>>, %arg16: memref<1x64xf32, #tpu.memory_space<vmem>>, %arg17: memref<64x64xbf16, #tpu.memory_space<vmem>>, %arg18: memref<1x64xf32, #tpu.memory_space<vmem>>, %arg19: memref<1x16x64xf32, #tpu.memory_space<vmem>>) attributes {dimension_semantics = [#tpu.dimension_semantics<parallel>, #tpu.dimension_semantics<parallel>], iteration_bounds = array<i64: 2, 4>, scalar_prefetch = 0 : i64, scratch_operands = 0 : i64, tpu.core_type = #tpu.core_type<tc>, window_params = [{transform_indices = @transform_0, window_bounds = array<i64: 1, 256, 8>}, {transform_indices = @transform_1, window_bounds = array<i64: 1, 256, 8>}, {transform_indices = @transform_2, window_bounds = array<i64: 1, 256, 8>}, {pipeline_mode = #tpu.pipeline_mode<synchronous>, transform_indices = @transform_3, window_bounds = array<i64: 8, 64>}, {pipeline_mode = #tpu.pipeline_mode<synchronous>, transform_indices = @transform_4, window_bounds = array<i64: 1, 64>}, {pipeline_mode = #tpu.pipeline_mode<synchronous>, transform_indices = @transform_5, window_bounds = array<i64: 8, 64>}, {pipeline_mode = #tpu.pipeline_mode<synchronous>, transform_indices = @transform_6, window_bounds = array<i64: 1, 64>}, {pipeline_mode = #tpu.pipeline_mode<synchronous>, transform_indices = @transform_7, window_bounds = array<i64: 8, 96>}, {pipeline_mode = #tpu.pipeline_mode<synchronous>, transform_indices = @transform_8, window_bounds = array<i64: 1, 96>}, {pipeline_mode = #tpu.pipeline_mode<synchronous>, transform_indices = @transform_9, window_bounds = array<i64: 32, 64>}, {pipeline_mode = #tpu.pipeline_mode<synchronous>, transform_indices = @transform_10, window_bounds = array<i64: 1, 64>}, {pipeline_mode = #tpu.pipeline_mode<synchronous>, transform_indices = @transform_11, window_bounds = array<i64: 64, 256>}, {pipeline_mode = #tpu.pipeline_mode<synchronous>, transform_indices = @transform_12, window_bounds = array<i64: 1, 256>}, {pipeline_mode = #tpu.pipeline_mode<synchronous>, transform_indices = @transform_13, window_bounds = array<i64: 256, 64>}, {pipeline_mode = #tpu.pipeline_mode<synchronous>, transform_indices = @transform_14, window_bounds = array<i64: 1, 64>}, {pipeline_mode = #tpu.pipeline_mode<synchronous>, transform_indices = @transform_15, window_bounds = array<i64: 64, 64>}, {pipeline_mode = #tpu.pipeline_mode<synchronous>, transform_indices = @transform_16, window_bounds = array<i64: 1, 64>}, {transform_indices = @transform_17, window_bounds = array<i64: 1, 16, 64>}]} {
    %c0 = arith.constant 0 : index
    %c0_0 = arith.constant 0 : index
    %c0_1 = arith.constant 0 : index
    %0 = vector.load %arg2[%c0, %c0_0, %c0_1] : memref<1x256x8xbf16, #tpu.memory_space<vmem>>, vector<1x256x8xbf16>
    %1 = vector.shape_cast %0 : vector<1x256x8xbf16> to vector<256x8xbf16>
    %c0_2 = arith.constant 0 : index
    %c0_3 = arith.constant 0 : index
    %c0_4 = arith.constant 0 : index
    %2 = vector.load %arg3[%c0_2, %c0_3, %c0_4] : memref<1x256x8xbf16, #tpu.memory_space<vmem>>, vector<1x256x8xbf16>
    %3 = vector.shape_cast %2 : vector<1x256x8xbf16> to vector<256x8xbf16>
    %c0_5 = arith.constant 0 : index
    %c0_6 = arith.constant 0 : index
    %c0_7 = arith.constant 0 : index
    %4 = vector.load %arg4[%c0_5, %c0_6, %c0_7] : memref<1x256x8xbf16, #tpu.memory_space<vmem>>, vector<1x256x8xbf16>
    %5 = vector.shape_cast %4 : vector<1x256x8xbf16> to vector<256x8xbf16>
    %c0_8 = arith.constant 0 : index
    %c0_9 = arith.constant 0 : index
    %6 = vector.load %arg5[%c0_8, %c0_9] : memref<8x64xbf16, #tpu.memory_space<vmem>>, vector<8x64xbf16>
    %cst = arith.constant dense<0.000000e+00> : vector<256x64xf32>
    %7 = tpu.matmul %1, %6, %cst {dimension_numbers = #tpu.dot_dimension_numbers<[1], [0], [0], [1], [0, 0, 1, 1], [], []>} : vector<256x8xbf16>, vector<8x64xbf16>, vector<256x64xf32> -> vector<256x64xf32>
    %c0_10 = arith.constant 0 : index
    %c0_11 = arith.constant 0 : index
    %8 = vector.load %arg6[%c0_10, %c0_11] : memref<1x64xf32, #tpu.memory_space<vmem>>, vector<1x64xf32>
    %9 = vector.broadcast %8 : vector<1x64xf32> to vector<256x64xf32>
    %10 = arith.addf %7, %9 : vector<256x64xf32>
    %c0_12 = arith.constant 0 : index
    %c0_13 = arith.constant 0 : index
    %11 = vector.load %arg7[%c0_12, %c0_13] : memref<8x64xbf16, #tpu.memory_space<vmem>>, vector<8x64xbf16>
    %cst_14 = arith.constant dense<0.000000e+00> : vector<256x64xf32>
    %12 = tpu.matmul %3, %11, %cst_14 {dimension_numbers = #tpu.dot_dimension_numbers<[1], [0], [0], [1], [0, 0, 1, 1], [], []>} : vector<256x8xbf16>, vector<8x64xbf16>, vector<256x64xf32> -> vector<256x64xf32>
    %c0_15 = arith.constant 0 : index
    %c0_16 = arith.constant 0 : index
    %13 = vector.load %arg8[%c0_15, %c0_16] : memref<1x64xf32, #tpu.memory_space<vmem>>, vector<1x64xf32>
    %14 = vector.broadcast %13 : vector<1x64xf32> to vector<256x64xf32>
    %15 = arith.addf %12, %14 : vector<256x64xf32>
    %c0_17 = arith.constant 0 : index
    %c0_18 = arith.constant 0 : index
    %16 = vector.load %arg9[%c0_17, %c0_18] : memref<8x96xbf16, #tpu.memory_space<vmem>>, vector<8x96xbf16>
    %cst_19 = arith.constant dense<0.000000e+00> : vector<256x96xf32>
    %17 = tpu.matmul %5, %16, %cst_19 {dimension_numbers = #tpu.dot_dimension_numbers<[1], [0], [0], [1], [0, 0, 1, 1], [], []>} : vector<256x8xbf16>, vector<8x96xbf16>, vector<256x96xf32> -> vector<256x96xf32>
    %c0_20 = arith.constant 0 : index
    %c0_21 = arith.constant 0 : index
    %18 = vector.load %arg10[%c0_20, %c0_21] : memref<1x96xf32, #tpu.memory_space<vmem>>, vector<1x96xf32>
    %19 = vector.broadcast %18 : vector<1x96xf32> to vector<256x96xf32>
    %20 = arith.addf %17, %19 : vector<256x96xf32>
    %21 = vector.extract_strided_slice %20 {offsets = [0, 0], sizes = [256, 64], strides = [1, 1]} : vector<256x96xf32> to vector<256x64xf32>
    %22 = vector.extract_strided_slice %20 {offsets = [0, 64], sizes = [256, 32], strides = [1, 1]} : vector<256x96xf32> to vector<256x32xf32>
    %cst_22 = arith.constant 0.000000e+00 : f32
    %23 = vector.broadcast %cst_22 : f32 to vector<256x32xf32>
    %24 = arith.maximumf %22, %23 : vector<256x32xf32>
    %25 = arith.truncf %24 : vector<256x32xf32> to vector<256x32xbf16>
    %c0_23 = arith.constant 0 : index
    %c0_24 = arith.constant 0 : index
    %26 = vector.load %arg11[%c0_23, %c0_24] : memref<32x64xbf16, #tpu.memory_space<vmem>>, vector<32x64xbf16>
    %cst_25 = arith.constant dense<0.000000e+00> : vector<256x64xf32>
    %27 = tpu.matmul %25, %26, %cst_25 {dimension_numbers = #tpu.dot_dimension_numbers<[1], [0], [0], [1], [0, 0, 1, 1], [], []>} : vector<256x32xbf16>, vector<32x64xbf16>, vector<256x64xf32> -> vector<256x64xf32>
    %c0_26 = arith.constant 0 : index
    %c0_27 = arith.constant 0 : index
    %28 = vector.load %arg12[%c0_26, %c0_27] : memref<1x64xf32, #tpu.memory_space<vmem>>, vector<1x64xf32>
    %29 = vector.broadcast %28 : vector<1x64xf32> to vector<256x64xf32>
    %30 = arith.addf %27, %29 : vector<256x64xf32>
    %31 = arith.subf %21, %10 : vector<256x64xf32>
    %32 = arith.mulf %31, %30 : vector<256x64xf32>
    %33 = arith.truncf %32 : vector<256x64xf32> to vector<256x64xbf16>
    %c0_28 = arith.constant 0 : index
    %c0_29 = arith.constant 0 : index
    %34 = vector.load %arg13[%c0_28, %c0_29] : memref<64x256xbf16, #tpu.memory_space<vmem>>, vector<64x256xbf16>
    %cst_30 = arith.constant dense<0.000000e+00> : vector<256x256xf32>
    %35 = tpu.matmul %33, %34, %cst_30 {dimension_numbers = #tpu.dot_dimension_numbers<[1], [0], [0], [1], [0, 0, 1, 1], [], []>} : vector<256x64xbf16>, vector<64x256xbf16>, vector<256x256xf32> -> vector<256x256xf32>
    %c0_31 = arith.constant 0 : index
    %c0_32 = arith.constant 0 : index
    %36 = vector.load %arg14[%c0_31, %c0_32] : memref<1x256xf32, #tpu.memory_space<vmem>>, vector<1x256xf32>
    %37 = vector.broadcast %36 : vector<1x256xf32> to vector<256x256xf32>
    %38 = arith.addf %35, %37 : vector<256x256xf32>
    %cst_33 = arith.constant 0.000000e+00 : f32
    %39 = vector.broadcast %cst_33 : f32 to vector<256x256xf32>
    %40 = arith.maximumf %38, %39 : vector<256x256xf32>
    %41 = arith.truncf %40 : vector<256x256xf32> to vector<256x256xbf16>
    %c0_34 = arith.constant 0 : index
    %c0_35 = arith.constant 0 : index
    %42 = vector.load %arg15[%c0_34, %c0_35] : memref<256x64xbf16, #tpu.memory_space<vmem>>, vector<256x64xbf16>
    %cst_36 = arith.constant dense<0.000000e+00> : vector<256x64xf32>
    %43 = tpu.matmul %41, %42, %cst_36 {dimension_numbers = #tpu.dot_dimension_numbers<[1], [0], [0], [1], [0, 0, 1, 1], [], []>} : vector<256x256xbf16>, vector<256x64xbf16>, vector<256x64xf32> -> vector<256x64xf32>
    %c0_37 = arith.constant 0 : index
    %c0_38 = arith.constant 0 : index
    %44 = vector.load %arg16[%c0_37, %c0_38] : memref<1x64xf32, #tpu.memory_space<vmem>>, vector<1x64xf32>
    %45 = vector.broadcast %44 : vector<1x64xf32> to vector<256x64xf32>
    %46 = arith.addf %43, %45 : vector<256x64xf32>
    %47 = vector.shape_cast %46 : vector<256x64xf32> to vector<16x16x64xf32>
    %cst_39 = arith.constant dense<0xFF800000> : vector<16x64xf32>
    %48 = vector.multi_reduction <maximumf>, %47, %cst_39 [1] : vector<16x16x64xf32> to vector<16x64xf32>
    %49 = vector.shape_cast %48 : vector<16x64xf32> to vector<16x1x64xf32>
    %50 = vector.broadcast %49 : vector<16x1x64xf32> to vector<16x16x64xf32>
    %51 = arith.subf %47, %50 : vector<16x16x64xf32>
    %52 = math.exp %51 : vector<16x16x64xf32>
    %cst_40 = arith.constant dense<0.000000e+00> : vector<16x64xf32>
    %53 = vector.multi_reduction <add>, %52, %cst_40 [1] : vector<16x16x64xf32> to vector<16x64xf32>
    %54 = vector.shape_cast %53 : vector<16x64xf32> to vector<16x1x64xf32>
    %55 = tpu.reciprocal %54 {approx = true} : vector<16x1x64xf32> -> vector<16x1x64xf32>
    %56 = vector.broadcast %55 : vector<16x1x64xf32> to vector<16x16x64xf32>
    %57 = arith.mulf %52, %56 : vector<16x16x64xf32>
    %58 = arith.addf %15, %30 : vector<256x64xf32>
    %59 = vector.shape_cast %58 : vector<256x64xf32> to vector<16x16x64xf32>
    %60 = arith.mulf %57, %59 : vector<16x16x64xf32>
    %cst_41 = arith.constant dense<0.000000e+00> : vector<16x64xf32>
    %61 = vector.multi_reduction <add>, %60, %cst_41 [1] : vector<16x16x64xf32> to vector<16x64xf32>
    %62 = arith.truncf %61 : vector<16x64xf32> to vector<16x64xbf16>
    %c0_42 = arith.constant 0 : index
    %c0_43 = arith.constant 0 : index
    %63 = vector.load %arg17[%c0_42, %c0_43] : memref<64x64xbf16, #tpu.memory_space<vmem>>, vector<64x64xbf16>
    %cst_44 = arith.constant dense<0.000000e+00> : vector<16x64xf32>
    %64 = tpu.matmul %62, %63, %cst_44 {dimension_numbers = #tpu.dot_dimension_numbers<[1], [0], [0], [1], [0, 0, 1, 1], [], []>} : vector<16x64xbf16>, vector<64x64xbf16>, vector<16x64xf32> -> vector<16x64xf32>
    %c0_45 = arith.constant 0 : index
    %c0_46 = arith.constant 0 : index
    %65 = vector.load %arg18[%c0_45, %c0_46] : memref<1x64xf32, #tpu.memory_space<vmem>>, vector<1x64xf32>
    %66 = vector.broadcast %65 : vector<1x64xf32> to vector<16x64xf32>
    %67 = arith.addf %64, %66 : vector<16x64xf32>
    %c0_47 = arith.constant 0 : index
    %c0_48 = arith.constant 0 : index
    %c0_49 = arith.constant 0 : index
    %68 = vector.load %arg19[%c0_47, %c0_48, %c0_49] : memref<1x16x64xf32, #tpu.memory_space<vmem>>, vector<1x16x64xf32>
    %69 = vector.shape_cast %68 : vector<1x16x64xf32> to vector<16x64xf32>
    %70 = vector.shape_cast %67 : vector<16x64xf32> to vector<1x16x64xf32>
    tpu.vector_store %arg19[%c0_47, %c0_48, %c0_49], %70 {strides = array<i32>} : memref<1x16x64xf32, #tpu.memory_space<vmem>>, vector<1x16x64xf32>,
    return
  }
  func.func @transform_0(%arg0: i32, %arg1: i32) -> (i32, i32, i32) {
    %c0_i32 = arith.constant 0 : i32
    %c0_i32_0 = arith.constant 0 : i32
    return %arg0, %arg1, %c0_i32 : i32, i32, i32
  }
  func.func @transform_1(%arg0: i32, %arg1: i32) -> (i32, i32, i32) {
    %c0_i32 = arith.constant 0 : i32
    %c0_i32_0 = arith.constant 0 : i32
    return %arg0, %arg1, %c0_i32 : i32, i32, i32
  }
  func.func @transform_2(%arg0: i32, %arg1: i32) -> (i32, i32, i32) {
    %c0_i32 = arith.constant 0 : i32
    %c0_i32_0 = arith.constant 0 : i32
    return %arg0, %arg1, %c0_i32 : i32, i32, i32
  }
  func.func @transform_3(%arg0: i32, %arg1: i32) -> (i32, i32) {
    %c0_i32 = arith.constant 0 : i32
    %c0_i32_0 = arith.constant 0 : i32
    %c0_i32_1 = arith.constant 0 : i32
    return %c0_i32, %c0_i32_0 : i32, i32
  }
  func.func @transform_4(%arg0: i32, %arg1: i32) -> (i32, i32) {
    %c0_i32 = arith.constant 0 : i32
    %c0_i32_0 = arith.constant 0 : i32
    %c0_i32_1 = arith.constant 0 : i32
    return %c0_i32, %c0_i32_0 : i32, i32
  }
  func.func @transform_5(%arg0: i32, %arg1: i32) -> (i32, i32) {
    %c0_i32 = arith.constant 0 : i32
    %c0_i32_0 = arith.constant 0 : i32
    %c0_i32_1 = arith.constant 0 : i32
    return %c0_i32, %c0_i32_0 : i32, i32
  }
  func.func @transform_6(%arg0: i32, %arg1: i32) -> (i32, i32) {
    %c0_i32 = arith.constant 0 : i32
    %c0_i32_0 = arith.constant 0 : i32
    %c0_i32_1 = arith.constant 0 : i32
    return %c0_i32, %c0_i32_0 : i32, i32
  }
  func.func @transform_7(%arg0: i32, %arg1: i32) -> (i32, i32) {
    %c0_i32 = arith.constant 0 : i32
    %c0_i32_0 = arith.constant 0 : i32
    %c0_i32_1 = arith.constant 0 : i32
    return %c0_i32, %c0_i32_0 : i32, i32
  }
  func.func @transform_8(%arg0: i32, %arg1: i32) -> (i32, i32) {
    %c0_i32 = arith.constant 0 : i32
    %c0_i32_0 = arith.constant 0 : i32
    %c0_i32_1 = arith.constant 0 : i32
    return %c0_i32, %c0_i32_0 : i32, i32
  }
  func.func @transform_9(%arg0: i32, %arg1: i32) -> (i32, i32) {
    %c0_i32 = arith.constant 0 : i32
    %c0_i32_0 = arith.constant 0 : i32
    %c0_i32_1 = arith.constant 0 : i32
    return %c0_i32, %c0_i32_0 : i32, i32
  }
  func.func @transform_10(%arg0: i32, %arg1: i32) -> (i32, i32) {
    %c0_i32 = arith.constant 0 : i32
    %c0_i32_0 = arith.constant 0 : i32
    %c0_i32_1 = arith.constant 0 : i32
    return %c0_i32, %c0_i32_0 : i32, i32
  }
  func.func @transform_11(%arg0: i32, %arg1: i32) -> (i32, i32) {
    %c0_i32 = arith.constant 0 : i32
    %c0_i32_0 = arith.constant 0 : i32
    %c0_i32_1 = arith.constant 0 : i32
    return %c0_i32, %c0_i32_0 : i32, i32
  }
  func.func @transform_12(%arg0: i32, %arg1: i32) -> (i32, i32) {
    %c0_i32 = arith.constant 0 : i32
    %c0_i32_0 = arith.constant 0 : i32
    %c0_i32_1 = arith.constant 0 : i32
    return %c0_i32, %c0_i32_0 : i32, i32
  }
  func.func @transform_13(%arg0: i32, %arg1: i32) -> (i32, i32) {
    %c0_i32 = arith.constant 0 : i32
    %c0_i32_0 = arith.constant 0 : i32
    %c0_i32_1 = arith.constant 0 : i32
    return %c0_i32, %c0_i32_0 : i32, i32
  }
  func.func @transform_14(%arg0: i32, %arg1: i32) -> (i32, i32) {
    %c0_i32 = arith.constant 0 : i32
    %c0_i32_0 = arith.constant 0 : i32
    %c0_i32_1 = arith.constant 0 : i32
    return %c0_i32, %c0_i32_0 : i32, i32
  }
  func.func @transform_15(%arg0: i32, %arg1: i32) -> (i32, i32) {
    %c0_i32 = arith.constant 0 : i32
    %c0_i32_0 = arith.constant 0 : i32
    %c0_i32_1 = arith.constant 0 : i32
    return %c0_i32, %c0_i32_0 : i32, i32
  }
  func.func @transform_16(%arg0: i32, %arg1: i32) -> (i32, i32) {
    %c0_i32 = arith.constant 0 : i32
    %c0_i32_0 = arith.constant 0 : i32
    %c0_i32_1 = arith.constant 0 : i32
    return %c0_i32, %c0_i32_0 : i32, i32
  }
  func.func @transform_17(%arg0: i32, %arg1: i32) -> (i32, i32, i32) {
    %c0_i32 = arith.constant 0 : i32
    %c0_i32_0 = arith.constant 0 : i32
    return %arg0, %arg1, %c0_i32 : i32, i32, i32
  }
}

</mosaic_0001>

<bundles_post_ra>
// kernel: neg.1
= control target key start
LH: loop header
LB: loop body
LE: loop exit
PB: predicated region body
PF: predicated region fallthrough
CT: control target
= control target key end

     0   :  { %s264_s0 = inlined_call_operand.vmem [shape: f32[2,64,64], index: 0, kind: input, shape index: {}]   ;;  %s265_s1 = inlined_call_operand.vmem [shape: f32[2,64,64], index: 1, kind: output, shape index: {}]  }
   0x1   :  { %v2_v0 = vld [vmem:[%s264_s0] sm:$0xff]  ;;  %v130_v2 = vld [vmem:[%s264_s0 + $0x8] sm:$0xff]  ;;  %v134_v7 = vld [vmem:[%s264_s0 + $0x10] sm:$0xff] }
   0x2   :  { %v128_v1 = vld [vmem:[%s264_s0 + $0x40] sm:$0xff]  ;;  %v5_v3 = vxor.u32 2147483648, %v2_v0  ;;  %v20_v5 = vxor.u32 2147483648, %v130_v2  ;;  %v132_v6 = vld [vmem:[%s264_s0 + $0x48] sm:$0xff]  ;;  %v136_v8 = vld [vmem:[%s264_s0 + $0x50] sm:$0xff]  ;;  %v36_v10 = vxor.u32 2147483648, %v134_v7 }
   0x3   :  { %v12_v4 = vxor.u32 2147483648, %v128_v1  ;;  %v28_v9 = vxor.u32 2147483648, %v132_v6  ;;  %v44_v11 = vxor.u32 2147483648, %v136_v8  ;;  %v138_v12 = vld [vmem:[%s264_s0 + $0x18] sm:$0xff]  ;;  %v142_v14 = vld [vmem:[%s264_s0 + $0x20] sm:$0xff]  ;;  %v146_v19 = vld [vmem:[%s264_s0 + $0x28] sm:$0xff] }
   0x4   :  { %v140_v13 = vld [vmem:[%s264_s0 + $0x58] sm:$0xff]  ;;  %7 = vst [vmem:[%s265_s1] sm:$0xff] %v5_v3  ;;  %131 = vst [vmem:[%s265_s1 + $0x8] sm:$0xff] %v20_v5  ;;  %v52_v15 = vxor.u32 2147483648, %v138_v12  ;;  %v68_v17 = vxor.u32 2147483648, %v142_v14  ;;  %v144_v18 = vld [vmem:[%s264_s0 + $0x60] sm:$0xff]  ;;  %v84_v22 = vxor.u32 2147483648, %v146_v19 }
   0x5   :  { %129 = vst [vmem:[%s265_s1 + $0x40] sm:$0xff] %v12_v4  ;;  %v60_v16 = vxor.u32 2147483648, %v140_v13  ;;  %v148_v20 = vld [vmem:[%s264_s0 + $0x68] sm:$0xff]  ;;  %133 = vst [vmem:[%s265_s1 + $0x48] sm:$0xff] %v28_v9  ;;  %v76_v21 = vxor.u32 2147483648, %v144_v18  ;;  %v150_v24 = vld [vmem:[%s264_s0 + $0x30] sm:$0xff] }
   0x6   :  { %135 = vst [vmem:[%s265_s1 + $0x10] sm:$0xff] %v36_v10  ;;  %137 = vst [vmem:[%s265_s1 + $0x50] sm:$0xff] %v44_v11  ;;  %v92_v23 = vxor.u32 2147483648, %v148_v20  ;;  %v152_v25 = vld [vmem:[%s264_s0 + $0x70] sm:$0xff]  ;;  %v154_v26 = vld [vmem:[%s264_s0 + $0x38] sm:$0xff]  ;;  %v100_v27 = vxor.u32 2147483648, %v150_v24 }
   0x7   :  { %139 = vst [vmem:[%s265_s1 + $0x18] sm:$0xff] %v52_v15  ;;  %141 = vst [vmem:[%s265_s1 + $0x58] sm:$0xff] %v60_v16  ;;  %v108_v28 = vxor.u32 2147483648, %v152_v25  ;;  %v116_v29 = vxor.u32 2147483648, %v154_v26  ;;  %v156_v30 = vld [vmem:[%s264_s0 + $0x78] sm:$0xff] }
   0x8   :  { %143 = vst [vmem:[%s265_s1 + $0x20] sm:$0xff] %v68_v17  ;;  %145 = vst [vmem:[%s265_s1 + $0x60] sm:$0xff] %v76_v21  ;;  %v124_v31 = vxor.u32 2147483648, %v156_v30 }
   0x9   :  { %147 = vst [vmem:[%s265_s1 + $0x28] sm:$0xff] %v84_v22  ;;  %149 = vst [vmem:[%s265_s1 + $0x68] sm:$0xff] %v92_v23 }
   0xa   :  { %151 = vst [vmem:[%s265_s1 + $0x30] sm:$0xff] %v100_v27  ;;  %153 = vst [vmem:[%s265_s1 + $0x70] sm:$0xff] %v108_v28 }
   0xb   :  { %155 = vst [vmem:[%s265_s1 + $0x38] sm:$0xff] %v116_v29  ;;  %157 = vst [vmem:[%s265_s1 + $0x78] sm:$0xff] %v124_v31 }

// kernel: attention_forward.1
= control target key start
LH: loop header
LB: loop body
LE: loop exit
PB: predicated region body
PF: predicated region fallthrough
CT: control target
= control target key end

     0   :  { %s4565_s24 = smov 0   ;;  %s4567_s25 = smov 0   ;;  %s6211_s0 = inlined_call_operand.vmem [shape: bf16[2,1024,8], index: 0, kind: input, shape index: {}]   ;;  %s6212_s1 = inlined_call_operand.vmem [shape: bf16[2,1024,8], index: 1, kind: input, shape index: {}]   ;;  %s6213_s2 = inlined_call_operand.vmem [shape: bf16[2,1024,8], index: 2, kind: input, shape index: {}]   ;;  %s6214_s3 = inlined_call_operand.vmem [shape: bf16[8,64], index: 3, kind: input, shape index: {}]   ;;  %s6215_s4 = inlined_call_operand.vmem [shape: f32[1,64], index: 4, kind: input, shape index: {}]   ;;  %s6216_s5 = inlined_call_operand.vmem [shape: bf16[8,64], index: 5, kind: input, shape index: {}]   ;;  %s6217_s6 = inlined_call_operand.vmem [shape: f32[1,64], index: 6, kind: input, shape index: {}]   ;;  %s6218_s7 = inlined_call_operand.vmem [shape: bf16[8,96], index: 7, kind: input, shape index: {}]   ;;  %s6219_s8 = inlined_call_operand.vmem [shape: f32[1,96], index: 8, kind: input, shape index: {}]   ;;  %s6220_s9 = inlined_call_operand.vmem [shape: bf16[32,64], index: 9, kind: input, shape index: {}]   ;;  %s6221_s10 = inlined_call_operand.vmem [shape: f32[1,64], index: 10, kind: input, shape index: {}]   ;;  %s6222_s11 = inlined_call_operand.vmem [shape: bf16[64,256], index: 11, kind: input, shape index: {}]   ;;  %s6223_s12 = inlined_call_operand.vmem [shape: f32[1,256], index: 12, kind: input, shape index: {}]   ;;  %s6224_s13 = inlined_call_operand.vmem [shape: bf16[256,64], index: 13, kind: input, shape index: {}]   ;;  %s6225_s14 = inlined_call_operand.vmem [shape: f32[1,64], index: 14, kind: input, shape index: {}]   ;;  %s6226_s15 = inlined_call_operand.vmem [shape: bf16[64,64], index: 15, kind: input, shape index: {}]   ;;  %s6227_s16 = inlined_call_operand.vmem [shape: f32[1,64], index: 16, kind: input, shape index: {}]   ;;  %s6228_s17 = inlined_call_operand.vmem [shape: f32[2,64,64], index: 17, kind: output, shape index: {}]  }
   0x1   :  { %6263 = sst [smem:[#allocation54_spill]] %s6211_s0  ;;  %s4569_s26 = smov 0  }
   0x2   :  { %6264 = sst [smem:[#allocation55_spill]] %s6212_s1  ;;  %s4571_s27 = smov 0  }
   0x3   :  { %6265 = sst [smem:[#allocation56_spill]] %s6214_s3  ;;  %s4573_s28 = smov 0  }
   0x4 LB: > { %s36_s29 = sadd.s32 1, %s4461_s26  ;;  %s39_s0 = sadd.s32 1, %s4465_s27  ;;  %s4469_s28 = sphi %s4573_s28, %s27_s28   ;;  %s4465_s27 = sphi %s4571_s27, %s6429_s27   ;;  %s4461_s26 = sphi %s4569_s26, %s6428_s26   ;;  %s4457_s25 = sphi %s4567_s25, %s6427_s25   ;;  %s4453_s24 = sphi %s4565_s24, %s6426_s24  }
   0x5   : > { %p37_p0 = scmp.ge.s32.totalorder %s36_s29, 4  ;;  %p3687_p1 = scmp.ge.s32.totalorder %s4469_s28, 1 }
   0x6   : > { %p542_p2 = scmp.lt.s32.totalorder %s4469_s28, 9 }
   0x7   : > { %s6431_s29 = smov (%p37_p0, %s36_s29), 0  ;;  %s6433_s0 = smov (!%p37_p0, %s39_s0), %s4465_s27 }
   0x8   : > { %p543_p3 = pnand %p3687_p1, %p542_p2  ;;  %p41_p4 = scmp.ge.s32.totalorder %s6433_s0, 2 }
   0xa   : > { %s6435_s0 = smov (%p41_p4, %s6433_s0), 0  ;;  %546 = sbr.rel (%p543_p3) target bundleno = 1472 (0x5c0), region = 88 }
   0xb   : > { %6266 = sst [smem:[#allocation2_spill]] %s6435_s0 }
   0xf   : > { %s6267_s3 = sld [smem:[#allocation56_spill]]  ;;  %vm894_vm0 = vcmask 1043456   ;;  %s3688_s19 = sshll.u32 %s4453_s24, 5  ;;  %v1359_v2 = vld [vmem:[%s6218_s7] sm:$0xf]  ;;  %vm845_vm1 = vcmask 64512  }
  0x10   : > { %p621_p5 = scmp.lt.s32.totalorder %s4457_s25, 1  ;;  %p623_p6 = scmp.lt.s32.totalorder %s3688_s19, 127  ;;  %v1496_v5 = vsel %vm894_vm0, %v1359_v2, 0  ;;  %v1059_v36 = vld [vmem:[%s6216_s5] sm:$0xf]  ;;  %v4284_v41 = vld [vmem:[%s6220_s9 + $0x8] sm:$0xff]  }
  0x11   : > { %4204 = vmatprep.subr.msk.bf16.mxu1 %vm894_vm0, %v1059_v36  ;;  %v1196_v37 = vsel %vm894_vm0, %v1059_v36, 0  ;;  %s6269_s30 = sld [smem:[#allocation55_spill]]  ;;  %v4293_v48 = vld [vmem:[%s6220_s9] sm:$0xff]   ;;  %vm1778_vm2 = vcmask 261120   ;;  %vm2128_vm3 = vcmask 523264   ;;  %vm3465_vm4 = vcmask 1041409  }
  0x12   : > { %s6437_s25 = smov (!%p621_p5, %s4457_s25), 1  ;;  %s6439_s19 = smov (!%p623_p6, %s3688_s19), 127  ;;  %4088 = vmatpush3.bf16.msra.mxu1 %v1196_v37  ;;  %vm3467_vm5 = vcmask 1042434   ;;  %vm3469_vm6 = vcmask 1043459   ;;  %vm3471_vm7 = vcmask 1044484   ;;  %vm3473_vm8 = vcmask 1045509  }
  0x13   : > { %s3689_s21 = sshll.u32 %s6437_s25, 7  ;;  %4155 = vmatprep.subr.bf16.mxu1 %v4284_v41  ;;  %vm4474_vm9 = vmmov 0   ;;  %vm3475_vm10 = vcmask 1046534   ;;  %vm3477_vm11 = vcmask 1047559  }
  0x14   : > { %s626_s22 = sadd.s32 %s3689_s21, %s6439_s19  ;;  %s3698_s19 = sshll.u32 %s6437_s25, 3 }
  0x15   : > { %v757_v0 = vld [vmem:[%s6267_s3] sm:$0xf]  ;;  %s4610_s23 = sshll.u32 %s626_s22, 2  ;;  %s6268_s3 = sld [smem:[#allocation54_spill]] }
  0x16   : > { %4203 = vmatprep.subr.msk.bf16.mxu0 %vm894_vm0, %v757_v0  ;;  %v896_v1 = vsel %vm894_vm0, %v757_v0, 0  ;;  %s4633_s1 = scalar_lea.vmem %s6213_s2, %s4610_s23 }
  0x17   : > { %4054 = vmatpush3.bf16.msra.mxu0 %v896_v1  ;;  %v4266_v20 = vld [vmem:[%s4633_s1] sm:$0xff]   ;;  %v4267_v21 = vld [vmem:[%s4633_s1 + $0x8] sm:$0xff]   ;;  %v4268_v22 = vld [vmem:[%s4633_s1 + $0x10] sm:$0xff]   ;;  %s4698_s18 = scalar_lea.vmem %s6269_s30, %s4610_s23  ;;  %s4471_s30 = smov 64  }
  0x18   : > { %4205 = vmatprep.subr.msk.bf16.mxu0 %vm894_vm0, %v1359_v2  ;;  %v4269_v23 = vld [vmem:[%s4633_s1 + $0x18] sm:$0xff]   ;;  %v4270_v24 = vld [vmem:[%s4633_s1 + $0x20] sm:$0xff]   ;;  %v4271_v25 = vld [vmem:[%s4633_s1 + $0x28] sm:$0xff]  }
  0x19   : > { %v4272_v26 = vld [vmem:[%s4633_s1 + $0x30] sm:$0xff]   ;;  %v4273_v27 = vld [vmem:[%s4633_s1 + $0x38] sm:$0xff]   ;;  %v4274_v28 = vld [vmem:[%s4633_s1 + $0x40] sm:$0xff]  }
  0x1a   : > { %v4275_v29 = vld [vmem:[%s4633_s1 + $0x48] sm:$0xff]   ;;  %v4276_v30 = vld [vmem:[%s4633_s1 + $0x50] sm:$0xff]   ;;  %v4277_v31 = vld [vmem:[%s4633_s1 + $0x58] sm:$0xff]  }
  0x1b   : > { %s4616_s0 = scalar_lea.vmem %s6268_s3, %s4610_s23  ;;  %v4278_v32 = vld [vmem:[%s4633_s1 + $0x60] sm:$0xff]   ;;  %v4279_v33 = vld [vmem:[%s4633_s1 + $0x68] sm:$0xff]   ;;  %v4280_v34 = vld [vmem:[%s4633_s1 + $0x70] sm:$0xff]   ;;  %s3697_s3 = sshll.u32 %s4453_s24, 1 }
  0x1c   : > { %v4250_v3 = vld [vmem:[%s4616_s0] sm:$0xff]   ;;  %v4251_v4 = vld [vmem:[%s4616_s0 + $0x8] sm:$0xff]   ;;  %v4252_v6 = vld [vmem:[%s4616_s0 + $0x10] sm:$0xff]   ;;  %p653_p7 = scmp.lt.s32.totalorder %s3697_s3, 7 }
  0x1d   : > { %4055 = vmatprep.mubr.msk.bf16.mxu0 %vm845_vm1, %v4250_v3  ;;  %v4253_v7 = vld [vmem:[%s4616_s0 + $0x18] sm:$0xff]   ;;  %v4254_v8 = vld [vmem:[%s4616_s0 + $0x20] sm:$0xff]   ;;  %v4255_v9 = vld [vmem:[%s4616_s0 + $0x28] sm:$0xff]  }
  0x1e   : > { %4056 = vmatmul.mubr.msk.bf16.vlgmr.msra.gmra.mxu0 %vm845_vm1, %v4251_v4  ;;  %v4256_v10 = vld [vmem:[%s4616_s0 + $0x30] sm:$0xff]   ;;  %v4257_v11 = vld [vmem:[%s4616_s0 + $0x38] sm:$0xff]   ;;  %v4258_v12 = vld [vmem:[%s4616_s0 + $0x40] sm:$0xff]   ;;  %s6441_s3 = smov (!%p653_p7, %s3697_s3), 7 }
  0x1f   : > { %4122 = vmatpush3.bf16.msra.mxu0 %v1496_v5  ;;  %4059 = vmatprep.mubr.msk.bf16.mxu0 %vm845_vm1, %v4252_v6  ;;  %v4259_v13 = vld [vmem:[%s4616_s0 + $0x48] sm:$0xff]   ;;  %v4260_v14 = vld [vmem:[%s4616_s0 + $0x50] sm:$0xff]   ;;  %v4261_v15 = vld [vmem:[%s4616_s0 + $0x58] sm:$0xff]   ;;  %s656_s23 = sadd.s32 %s3698_s19, %s6441_s3 }
  0x20   : > { %v4262_v16 = vld [vmem:[%s4616_s0 + $0x60] sm:$0xff]   ;;  %v4263_v17 = vld [vmem:[%s4616_s0 + $0x68] sm:$0xff]   ;;  %v4264_v18 = vld [vmem:[%s4616_s0 + $0x70] sm:$0xff]  }
  0x21   : > { %v4265_v19 = vld [vmem:[%s4616_s0 + $0x78] sm:$0xff]   ;;  %v4282_v38 = vld [vmem:[%s4698_s18] sm:$0xff]   ;;  %v4283_v39 = vld [vmem:[%s4698_s18 + $0x8] sm:$0xff]  }
  0x22   : > { %v4281_v35 = vld [vmem:[%s4633_s1 + $0x78] sm:$0xff]   ;;  %4089 = vmatprep.mubr.msk.bf16.mxu1 %vm845_vm1, %v4282_v38  ;;  %v4285_v42 = vld [vmem:[%s4698_s18 + $0x10] sm:$0xff]   ;;  %v4287_v46 = vld [vmem:[%s4698_s18 + $0x20] sm:$0xff]   ;;  %s3699_s1 = sshll.u32 %s656_s23, 3 }
  0x23   : > { %4090 = vmatmul.mubr.msk.bf16.vlgmr.msra.gmra.mxu1 %vm845_vm1, %v4283_v39  ;;  %v4286_v43 = vld [vmem:[%s4698_s18 + $0x18] sm:$0xff]   ;;  %v4288_v51 = vld [vmem:[%s4698_s18 + $0x28] sm:$0xff]   ;;  %v4289_v52 = vld [vmem:[%s4698_s18 + $0x30] sm:$0xff]   ;;  %s658_s22 = scalar_lea.vmem %s6228_s17, %s3699_s1 }
  0x24   : > { %4093 = vmatprep.mubr.msk.bf16.mxu1 %vm845_vm1, %v4285_v42  ;;  %4156 = vmatpush3.bf16.msra.mxu1 %v4284_v41  ;;  %v4290_v57 = vld [vmem:[%s4698_s18 + $0x38] sm:$0xff]   ;;  %v4291_v58 = vld [vmem:[%s4698_s18 + $0x40] sm:$0xff]   ;;  %v4292_v63 = vld [vmem:[%s4698_s18 + $0x48] sm:$0xff]  }
  0x25   : > { %4157 = vmatprep.subr.bf16.mxu1 %v4293_v48  ;;  %v4294_v0 = vld [vmem:[%s4698_s18 + $0x50] sm:$0xff]   ;;  %v4763_v3 = vld [vmem:[%s6215_s4] ss:$0 sm:$0xff] }
  0x26   : > { %4060 = vmatmul.mubr.msk.bf16.gmra.mxu0 %vm845_vm1, %v4253_v7  ;;  %v4295_v7 = vld [vmem:[%s4698_s18 + $0x58] sm:$0xff]   ;;  %v4822_v39 = vld [vmem:[%s6219_s8] ss:$0 sm:$0xff] }
  0x27   : > { %4063 = vmatprep.mubr.msk.bf16.mxu0 %vm845_vm1, %v4254_v8 }
  0x28   : > { %4158 = vmatpush3.bf16.msra.mxu1 %v4293_v48 }
  0x2b   : > { %4094 = vmatmul.mubr.msk.bf16.gmra.mxu1 %vm845_vm1, %v4286_v43 }
  0x2c   : > { %4097 = vmatprep.mubr.msk.bf16.mxu1 %vm845_vm1, %v4287_v46 }
  0x2e   : > { %4064 = vmatmul.mubr.msk.bf16.gmra.mxu0 %vm845_vm1, %v4255_v9  ;;  %v4296_v9 = vld [vmem:[%s4698_s18 + $0x60] sm:$0xff]  }
  0x2f   : > { %4067 = vmatprep.mubr.msk.bf16.mxu0 %vm845_vm1, %v4256_v10 }
  0x33   : > { %4098 = vmatmul.mubr.msk.bf16.gmra.mxu1 %vm845_vm1, %v4288_v51 }
  0x34   : > { %4101 = vmatprep.mubr.msk.bf16.mxu1 %vm845_vm1, %v4289_v52 }
  0x36   : > { %4068 = vmatmul.mubr.msk.bf16.gmra.mxu0 %vm845_vm1, %v4257_v11 }
  0x37   : > { %4071 = vmatprep.mubr.msk.bf16.mxu0 %vm845_vm1, %v4258_v12 }
  0x3b   : > { %4102 = vmatmul.mubr.msk.bf16.gmra.mxu1 %vm845_vm1, %v4290_v57 }
  0x3c   : > { %4105 = vmatprep.mubr.msk.bf16.mxu1 %vm845_vm1, %v4291_v58 }
  0x3e   : > { %4072 = vmatmul.mubr.msk.bf16.gmra.mxu0 %vm845_vm1, %v4259_v13 }
  0x3f   : > { %4075 = vmatprep.mubr.msk.bf16.mxu0 %vm845_vm1, %v4260_v14 }
  0x43   : > { %4106 = vmatmul.mubr.msk.bf16.gmra.mxu1 %vm845_vm1, %v4292_v63 }
  0x44   : > { %4109 = vmatprep.mubr.msk.bf16.mxu1 %vm845_vm1, %v4294_v0 }
  0x46   : > { %4076 = vmatmul.mubr.msk.bf16.gmra.mxu0 %vm845_vm1, %v4261_v15 }
  0x47   : > { %4079 = vmatprep.mubr.msk.bf16.mxu0 %vm845_vm1, %v4262_v16  ;;  %v4297_v16 = vld [vmem:[%s4698_s18 + $0x68] sm:$0xff]  }
  0x4b   : > { %4110 = vmatmul.mubr.msk.bf16.gmra.mxu1 %vm845_vm1, %v4295_v7 }
  0x4c   : > { %4113 = vmatprep.mubr.msk.bf16.mxu1 %vm845_vm1, %v4296_v9 }
  0x4e   : > { %4080 = vmatmul.mubr.msk.bf16.gmra.mxu0 %vm845_vm1, %v4263_v17 }
  0x4f   : > { %4083 = vmatprep.mubr.msk.bf16.mxu0 %vm845_vm1, %v4264_v18  ;;  %v4298_v18 = vld [vmem:[%s4698_s18 + $0x70] sm:$0xff]  }
  0x53   : > { %4114 = vmatmul.mubr.msk.bf16.gmra.mxu1 %vm845_vm1, %v4297_v16 }
  0x54   : > { %4117 = vmatprep.mubr.msk.bf16.mxu1 %vm845_vm1, %v4298_v18 }
  0x56   : > { %4084 = vmatmul.mubr.msk.bf16.gmra.mxu0 %vm845_vm1, %v4265_v19 }
  0x57   : > { %4123 = vmatprep.mubr.msk.bf16.mxu0 %vm845_vm1, %v4266_v20 }
  0x5e   : > { %4124 = vmatmul.mubr.msk.bf16.vlgmr.msra.gmra.mxu0 %vm845_vm1, %v4267_v21 }
  0x5f   : > { %4127 = vmatprep.mubr.msk.bf16.mxu0 %vm845_vm1, %v4268_v22 }
  0x66   : > { %4128 = vmatmul.mubr.msk.bf16.gmra.mxu0 %vm845_vm1, %v4269_v23 }
  0x67   : > { %4131 = vmatprep.mubr.msk.bf16.mxu0 %vm845_vm1, %v4270_v24 }
  0x6e   : > { %4132 = vmatmul.mubr.msk.bf16.gmra.mxu0 %vm845_vm1, %v4271_v25 }
  0x6f   : > { %4135 = vmatprep.mubr.msk.bf16.mxu0 %vm845_vm1, %v4272_v26  ;;  %v4299_v26 = vld [vmem:[%s4698_s18 + $0x78] sm:$0xff]  }
  0x70   : > { %4118 = vmatmul.mubr.msk.bf16.gmra.mxu1 %vm845_vm1, %v4299_v26 }
  0x76   : > { %4136 = vmatmul.mubr.msk.bf16.gmra.mxu0 %vm845_vm1, %v4273_v27 }
  0x77   : > { %4139 = vmatprep.mubr.msk.bf16.mxu0 %vm845_vm1, %v4274_v28 }
  0x7e   : > { %4140 = vmatmul.mubr.msk.bf16.gmra.mxu0 %vm845_vm1, %v4275_v29 }
  0x7f   : > { %4143 = vmatprep.mubr.msk.bf16.mxu0 %vm845_vm1, %v4276_v30 }
  0x86   : > { %4144 = vmatmul.mubr.msk.bf16.gmra.mxu0 %vm845_vm1, %v4277_v31 }
  0x87   : > { %4147 = vmatprep.mubr.msk.bf16.mxu0 %vm845_vm1, %v4278_v32 }
  0x8e   : > { %4148 = vmatmul.mubr.msk.bf16.gmra.mxu0 %vm845_vm1, %v4279_v33 }
  0x8f   : > { %4151 = vmatprep.mubr.msk.bf16.mxu0 %vm845_vm1, %v4280_v34 }
  0x96   : > { %4152 = vmatmul.mubr.msk.bf16.gmra.mxu0 %vm845_vm1, %v4281_v35 }
  0xde   : > { %v4704_v40 = vpop.f32.mrf.mxu0 }
  0xdf   : > { %v4829_v43 = vadd.f32 %v4704_v40, %v4763_v3 }
  0xe0   : > { %v4711_v44 = vpop.f32.mrf.mxu0 }
  0xe1   : > { %v4836_v51 = vadd.f32 %v4763_v3, %v4711_v44 }
  0xe2   : > { %v4714_v45 = vpop.f32.mrf.mxu0 }
  0xe3   : > { %v4845_v63 = vadd.f32 %v4714_v45, %v4763_v3 }
  0xe4   : > { %v4717_v47 = vpop.f32.mrf.mxu0 }
  0xe6   : > { %v4724_v49 = vpop.f32.mrf.mxu0 }
  0xe7   : > { %v4859_v9 = vadd.f32 %v4724_v49, %v4763_v3 }
  0xe8   : > { %v4726_v50 = vpop.f32.mrf.mxu0 }
  0xea   : > { %v4730_v53 = vpop.f32.mrf.mxu0 }
  0xec   : > { %v4732_v54 = vpop.f32.mrf.mxu0 }
  0xee   : > { %v4736_v55 = vpop.f32.mrf.mxu0 }
  0xf0   : > { %v4738_v56 = vpop.f32.mrf.mxu0 }
  0xf2   : > { %v4742_v59 = vpop.f32.mrf.mxu0 }
  0xf4   : > { %v4744_v60 = vpop.f32.mrf.mxu0 }
  0xf6   : > { %v4748_v61 = vpop.f32.mrf.mxu0 }
  0xf8   : > { %v4750_v62 = vpop.f32.mrf.mxu0 }
  0xfa   : > { %v4754_v1 = vpop.f32.mrf.mxu0 }
  0xfc   : > { %v4756_v2 = vpop.f32.mrf.mxu0 }
  0xfe   : > { %v4073_v4 = vpop.f32.mrf.mxu0 }
  0xff   : > { %v4766_v5 = vadd.f32 %v4073_v4, %v4763_v3 }
 0x100   : > { %v996_v6 = vpop.f32.mrf.mxu0 }
 0x101   : > { %6270 = vst [vmem:[#allocation3_spill] sm:$0xff] %v4766_v5  ;;  %v4770_v8 = vadd.f32 %v4763_v3, %v996_v6 }
 0x102   : > { %v4074_v10 = vpop.f32.mrf.mxu0 }
 0x103   : > { %6271 = vst [vmem:[#allocation4_spill] sm:$0xff] %v4770_v8  ;;  %v4774_v11 = vadd.f32 %v4074_v10, %v4763_v3 }
 0x104   : > { %v4776_v12 = vpop.f32.mrf.mxu0 }
 0x105   : > { %6272 = vst [vmem:[#allocation5_spill] sm:$0xff] %v4774_v11 }
 0x106   : > { %v4077_v13 = vpop.f32.mrf.mxu0 }
 0x107   : > { %v4781_v14 = vadd.f32 %v4077_v13, %v4763_v3 }
 0x108   : > { %v1012_v15 = vpop.f32.mrf.mxu0 }
 0x109   : > { %6273 = vst [vmem:[#allocation6_spill] sm:$0xff] %v4781_v14  ;;  %v4785_v17 = vadd.f32 %v4763_v3, %v1012_v15  ;;  %v4868_v15 = vadd.f32 %v4763_v3, %v4726_v50 }
 0x10a   : > { %v4078_v19 = vpop.f32.mrf.mxu0 }
 0x10b   : > { %6274 = vst [vmem:[#allocation7_spill] sm:$0xff] %v4785_v17  ;;  %v4789_v20 = vadd.f32 %v4078_v19, %v4763_v3 }
 0x10c   : > { %v1015_v21 = vpop.f32.mrf.mxu0 }
 0x10d   : > { %6275 = vst [vmem:[#allocation8_spill] sm:$0xff] %v4789_v20  ;;  %v4793_v22 = vadd.f32 %v4763_v3, %v1015_v21 }
 0x10e   : > { %v4081_v23 = vpop.f32.mrf.mxu0 }
 0x10f   : > { %6276 = vst [vmem:[#allocation9_spill] sm:$0xff] %v4793_v22  ;;  %v4797_v24 = vadd.f32 %v4081_v23, %v4763_v3 }
 0x110   : > { %v1028_v25 = vpop.f32.mrf.mxu0 }
 0x111   : > { %6277 = vst [vmem:[#allocation10_spill] sm:$0xff] %v4797_v24  ;;  %v4801_v27 = vadd.f32 %v4763_v3, %v1028_v25  ;;  %v4878_v25 = vadd.f32 %v4730_v53, %v4763_v3 }
 0x112   : > { %v4082_v28 = vpop.f32.mrf.mxu0 }
 0x113   : > { %6278 = vst [vmem:[#allocation11_spill] sm:$0xff] %v4801_v27  ;;  %v4804_v29 = vadd.f32 %v4082_v28, %v4763_v3 }
 0x114   : > { %v1031_v30 = vpop.f32.mrf.mxu0 }
 0x115   : > { %6279 = vst [vmem:[#allocation12_spill] sm:$0xff] %v4804_v29  ;;  %v4808_v31 = vadd.f32 %v4763_v3, %v1031_v30  ;;  %v4300_v29 = vld [vmem:[%s6222_s11 + $0x30] ss:$8 sps:$4 sm:$0xff]  }
 0x116   : > { %v4085_v32 = vpop.f32.mrf.mxu0 }
 0x117   : > { %6280 = vst [vmem:[#allocation13_spill] sm:$0xff] %v4808_v31  ;;  %v4811_v33 = vadd.f32 %v4085_v32, %v4763_v3 }
 0x118   : > { %v1044_v34 = vpop.f32.mrf.mxu0 }
 0x119   : > { %6281 = vst [vmem:[#allocation14_spill] sm:$0xff] %v4811_v33  ;;  %v4814_v35 = vadd.f32 %v4763_v3, %v1044_v34 }
 0x11a   : > { %v4086_v36 = vpop.f32.mrf.mxu0 }
 0x11b   : > { %6282 = vst [vmem:[#allocation15_spill] sm:$0xff] %v4814_v35  ;;  %v4817_v37 = vadd.f32 %v4086_v36, %v4763_v3 }
 0x11c   : > { %v1047_v38 = vpop.f32.mrf.mxu0 }
 0x11d   : > { %6283 = vst [vmem:[#allocation16_spill] sm:$0xff] %v4817_v37  ;;  %v4825_v41 = vadd.f32 %v4763_v3, %v1047_v38 }
 0x11e   : > { %v4125_v42 = vpop.f32.mrf.mxu0 }
 0x11f   : > { %6284 = vst [vmem:[#allocation17_spill] sm:$0xff] %v4825_v41  ;;  %v4832_v46 = vadd.f32 %v4125_v42, %v4822_v39  ;;  %v4895_v42 = vadd.f32 %v4736_v55, %v4763_v3 }
 0x120   : > { %v1532_v48 = vpop.f32.mrf.mxu0 }
 0x121   : > { %v4841_v57 = vadd.f32 %v4822_v39, %v1532_v48  ;;  %v1661_v26 = vmax.f32 %v4832_v46, 0.0 }
 0x122   : > { %v4126_v58 = vpop.f32.mrf.mxu0 }
 0x123   : > { %v4850_v0 = vadd.f32 %v4126_v58, %v4822_v39  ;;  %v1659_v45 = vmax.f32 %v4841_v57, 0.0 }
 0x124   : > { %v1535_v4 = vpop.f32.mrf.mxu0 }
 0x125   : > { %v4855_v6 = vadd.f32 %v4822_v39, %v1535_v4  ;;  %v1662_v18 = vmax.f32 %v4850_v0, 0.0 }
 0x126   : > { %v4129_v7 = vpop.f32.mrf.mxu0 }
 0x127   : > { %v1660_v10 = vmax.f32 %v4855_v6, 0.0  ;;  %v4864_v13 = vadd.f32 %v4129_v7, %v4822_v39  ;;  %v1692_v36 = vpack.c.bf16 %v1662_v18, %v1661_v26 }
 0x128   : > { %v1548_v16 = vpop.f32.mrf.mxu0 }
 0x129   : > { %v4874_v49 = vadd.f32 %v4822_v39, %v1548_v16  ;;  %v1691_v21 = vpack.c.bf16 %v1660_v10, %v1659_v45  ;;  %v1665_v4 = vmax.f32 %v4864_v13, 0.0  ;;  %v4906_v10 = vadd.f32 %v4763_v3, %v4738_v56 }
 0x12a   : > { %v4130_v23 = vpop.f32.mrf.mxu0 }
 0x12b   : > { %v4884_v28 = vadd.f32 %v4130_v23, %v4822_v39  ;;  %1734 = vrot.lane.b32.xlu0 %v1691_v21, %s4471_s30  ;;  %v1663_v32 = vmax.f32 %v4874_v49, 0.0  ;;  %v4915_v23 = vadd.f32 %v4742_v59, %v4763_v3  ;;  %v4942_v59 = vadd.f32 %v4763_v3, %v4750_v62 }
 0x12c   : > { %v1551_v30 = vpop.f32.mrf.mxu0 }
 0x12d   : > { %v4891_v53 = vadd.f32 %v4822_v39, %v1551_v30  ;;  %v1666_v7 = vmax.f32 %v4884_v28, 0.0  ;;  %v4933_v30 = vadd.f32 %v4748_v61, %v4763_v3 }
 0x12e   : > { %v4133_v38 = vpop.f32.mrf.mxu0 }
 0x12f   : > { %v1664_v48 = vmax.f32 %v4891_v53, 0.0  ;;  %v4899_v58 = vadd.f32 %v4133_v38, %v4822_v39  ;;  %1736 = vrot.lane.b32.xlu0 %v1692_v36, %s4471_s30  ;;  %v1694_v38 = vpack.c.bf16 %v1666_v7, %v1665_v4 }
 0x130   : > { %v1564_v45 = vpop.f32.mrf.mxu0 }
 0x131   : > { %v4911_v16 = vadd.f32 %v4822_v39, %v1564_v45  ;;  %v1693_v18 = vpack.c.bf16 %v1664_v48, %v1663_v32  ;;  %v1669_v26 = vmax.f32 %v4899_v58, 0.0 }
 0x132   : > { %v4134_v21 = vpop.f32.mrf.mxu0 }
 0x133   : > { %v4921_v56 = vadd.f32 %v4134_v21, %v4822_v39  ;;  %1738 = vrot.lane.b32.xlu1 %v1693_v18, %s4471_s30  ;;  %v1667_v45 = vmax.f32 %v4911_v16, 0.0 }
 0x134   : > { %v1567_v36 = vpop.f32.mrf.mxu0 }
 0x135   : > { %v1670_v32 = vmax.f32 %v4921_v56, 0.0  ;;  %v4929_v48 = vadd.f32 %v4822_v39, %v1567_v36 }
 0x136   : > { %v4137_v55 = vpop.f32.mrf.mxu0 }
 0x137   : > { %v1668_v21 = vmax.f32 %v4929_v48, 0.0  ;;  %v4937_v18 = vadd.f32 %v4137_v55, %v4822_v39  ;;  %1740 = vrot.lane.b32.xlu1 %v1694_v38, %s4471_s30  ;;  %v1696_v4 = vpack.c.bf16 %v1670_v32, %v1669_v26  ;;  %v4951_v55 = vadd.f32 %v4754_v1, %v4763_v3 }
 0x138   : > { %v1580_v7 = vpop.f32.mrf.mxu0 }
 0x139   : > { %v4947_v50 = vadd.f32 %v4822_v39, %v1580_v7  ;;  %v1695_v61 = vpack.c.bf16 %v1668_v21, %v1667_v45  ;;  %v1673_v38 = vmax.f32 %v4937_v18, 0.0 }
 0x13a   : > { %v4138_v34 = vpop.f32.mrf.mxu0 }
 0x13b   : > { %v4957_v62 = vadd.f32 %v4138_v34, %v4822_v39  ;;  %1742 = vrot.lane.b32.xlu0 %v1695_v61, %s4471_s30  ;;  %1744 = vrot.lane.b32.xlu1 %v1696_v4, %s4471_s30  ;;  %v1671_v45 = vmax.f32 %v4947_v50, 0.0 }
 0x13c   : > { %v1583_v32 = vpop.f32.mrf.mxu0 }
 0x13d   : > { %v1674_v21 = vmax.f32 %v4957_v62, 0.0  ;;  %v4966_v7 = vadd.f32 %v4822_v39, %v1583_v32 }
 0x13e   : > { %v4141_v36 = vpop.f32.mrf.mxu0 }
 0x13f   : > { %v1672_v26 = vmax.f32 %v4966_v7, 0.0  ;;  %v4970_v34 = vadd.f32 %v4141_v36, %v4822_v39  ;;  %v1698_v61 = vpack.c.bf16 %v1674_v21, %v1673_v38  ;;  %v4987_v38 = vadd.f32 %v4763_v3, %v4776_v12 }
 0x140   : > { %v1596_v19 = vpop.f32.mrf.mxu0 }
 0x141   : > { %v4975_v40 = vadd.f32 %v4822_v39, %v1596_v19  ;;  %v1697_v44 = vpack.c.bf16 %v1672_v26, %v1671_v45  ;;  %1748 = vrot.lane.b32.xlu1 %v1698_v61, %s4471_s30  ;;  %v1677_v32 = vmax.f32 %v4970_v34, 0.0  ;;  %6287 = vst [vmem:[#allocation20_spill] sm:$0xff] %v4987_v38 }
 0x142   : > { %v4142_v1 = vpop.f32.mrf.mxu0 }
 0x143   : > { %6285 = vst [vmem:[#allocation18_spill] sm:$0xff] %v4975_v40  ;;  %v4982_v36 = vadd.f32 %v4142_v1, %v4822_v39  ;;  %1746 = vrot.lane.b32.xlu0 %v1697_v44, %s4471_s30  ;;  %v1675_v26 = vmax.f32 %v4975_v40, 0.0 }
 0x144   : > { %v1599_v19 = vpop.f32.mrf.mxu0 }
 0x145   : > { %6286 = vst [vmem:[#allocation19_spill] sm:$0xff] %v4982_v36  ;;  %v1678_v45 = vmax.f32 %v4982_v36, 0.0  ;;  %v4994_v61 = vadd.f32 %v4822_v39, %v1599_v19 }
 0x146   : > { %v4145_v52 = vpop.f32.mrf.mxu0 }
 0x147   : > { %6288 = vst [vmem:[#allocation21_spill] sm:$0xff] %v4994_v61  ;;  %v1676_v1 = vmax.f32 %v4994_v61, 0.0  ;;  %v5000_v12 = vadd.f32 %v4145_v52, %v4822_v39  ;;  %v1700_v4 = vpack.c.bf16 %v1678_v45, %v1677_v32 }
 0x148   : > { %v1612_v8 = vpop.f32.mrf.mxu0 }
 0x149   : > { %6289 = vst [vmem:[#allocation22_spill] sm:$0xff] %v5000_v12  ;;  %v5005_v5 = vadd.f32 %v4822_v39, %v1612_v8  ;;  %v1699_v21 = vpack.c.bf16 %v1676_v1, %v1675_v26  ;;  %1752 = vrot.lane.b32.xlu1 %v1700_v4, %s4471_s30  ;;  %v1681_v11 = vmax.f32 %v5000_v12, 0.0 }
 0x14a   : > { %v4146_v19 = vpop.f32.mrf.mxu0 }
 0x14b   : > { %6290 = vst [vmem:[#allocation23_spill] sm:$0xff] %v5005_v5  ;;  %v5012_v52 = vadd.f32 %v4146_v19, %v4822_v39  ;;  %1750 = vrot.lane.b32.xlu0 %v1699_v21, %s4471_s30  ;;  %v1679_v45 = vmax.f32 %v5005_v5, 0.0 }
 0x14c   : > { %v1615_v32 = vpop.f32.mrf.mxu0 }
 0x14d   : > { %6291 = vst [vmem:[#allocation24_spill] sm:$0xff] %v5012_v52  ;;  %v1682_v8 = vmax.f32 %v5012_v52, 0.0  ;;  %v5020_v4 = vadd.f32 %v4822_v39, %v1615_v32 }
 0x14e   : > { %v4149_v1 = vpop.f32.mrf.mxu0 }
 0x14f   : > { %6292 = vst [vmem:[#allocation25_spill] sm:$0xff] %v5020_v4  ;;  %v1680_v40 = vmax.f32 %v5020_v4, 0.0  ;;  %v5026_v44 = vadd.f32 %v4149_v1, %v4822_v39  ;;  %v1702_v21 = vpack.c.bf16 %v1682_v8, %v1681_v11 }
 0x150   : > { %v1628_v17 = vpop.f32.mrf.mxu0 }
 0x151   : > { %6293 = vst [vmem:[#allocation26_spill] sm:$0xff] %v5026_v44  ;;  %v5031_v14 = vadd.f32 %v4822_v39, %v1628_v17  ;;  %v1701_v26 = vpack.c.bf16 %v1680_v40, %v1679_v45  ;;  %1756 = vrot.lane.b32.xlu1 %v1702_v21, %s4471_s30  ;;  %v1685_v20 = vmax.f32 %v5026_v44, 0.0 }
 0x152   : > { %v4150_v32 = vpop.f32.mrf.mxu0 }
 0x153   : > { %6294 = vst [vmem:[#allocation27_spill] sm:$0xff] %v5031_v14  ;;  %v5038_v1 = vadd.f32 %v4150_v32, %v4822_v39  ;;  %1754 = vrot.lane.b32.xlu0 %v1701_v26, %s4471_s30  ;;  %v1683_v8 = vmax.f32 %v5031_v14, 0.0 }
 0x154   : > { %v1631_v11 = vpop.f32.mrf.mxu0 }
 0x155   : > { %6295 = vst [vmem:[#allocation28_spill] sm:$0xff] %v5038_v1  ;;  %v1686_v17 = vmax.f32 %v5038_v1, 0.0  ;;  %v5046_v45 = vadd.f32 %v4822_v39, %v1631_v11 }
 0x156   : > { %v4153_v21 = vpop.f32.mrf.mxu0 }
 0x157   : > { %6296 = vst [vmem:[#allocation29_spill] sm:$0xff] %v5046_v45  ;;  %v1684_v5 = vmax.f32 %v5046_v45, 0.0  ;;  %v5052_v19 = vadd.f32 %v4153_v21, %v4822_v39  ;;  %v1704_v26 = vpack.c.bf16 %v1686_v17, %v1685_v20  ;;  %v4302_v21 = vld [vmem:[%s6222_s11 + $0x34] ss:$8 sps:$4 sm:$0xff]  }
 0x158   : > { %v1644_v27 = vpop.f32.mrf.mxu0  ;;  %2185 = vmatprep.subr.bf16.mxu0 %v4302_v21 }
 0x159   : > { %6297 = vst [vmem:[#allocation30_spill] sm:$0xff] %v5052_v19  ;;  %v5057_v24 = vadd.f32 %v4822_v39, %v1644_v27  ;;  %v1703_v40 = vpack.c.bf16 %v1684_v5, %v1683_v8  ;;  %1760 = vrot.lane.b32.xlu1 %v1704_v26, %s4471_s30  ;;  %v1689_v20 = vmax.f32 %v5052_v19, 0.0  ;;  %v4305_v5 = vld [vmem:[%s6222_s11 + $0x24] ss:$8 sps:$4 sm:$0xff]   ;;  %2186 = vmatpush1.bf16.msra.mxu0 %v4300_v29  ;;  %v4306_v29 = vld [vmem:[%s6222_s11 + $0x10] ss:$8 sps:$4 sm:$0xff]  }
 0x15a   : > { %v4154_v11 = vpop.f32.mrf.mxu0  ;;  %2187 = vmatprep.subr.bf16.mxu0 %v4305_v5 }
 0x15b   : > { %6298 = vst [vmem:[#allocation31_spill] sm:$0xff] %v5057_v24  ;;  %v5070_v27 = vadd.f32 %v4154_v11, %v4822_v39  ;;  %1758 = vrot.lane.b32.xlu0 %v1703_v40, %s4471_s30  ;;  %v1687_v26 = vmax.f32 %v5057_v24, 0.0  ;;  %v4303_v40 = vld [vmem:[%s6222_s11 + $0x20] ss:$8 sps:$4 sm:$0xff]   ;;  %v4308_v11 = vld [vmem:[%s6222_s11 + $0x14] ss:$8 sps:$4 sm:$0xff]  }
 0x15c   : > { %v1647_v8 = vpop.f32.mrf.mxu0 }
 0x15d   : > { %6299 = vst [vmem:[#allocation32_spill] sm:$0xff] %v5070_v27  ;;  %v1690_v14 = vmax.f32 %v5070_v27, 0.0  ;;  %v5081_v17 = vadd.f32 %v4822_v39, %v1647_v8  ;;  %2188 = vmatpush1.bf16.msra.mxu0 %v4303_v40  ;;  %v4311_v39 = vld [vmem:[%s6222_s11 + $0x4] ss:$8 sps:$4 sm:$0xff]  }
 0x15e   : > { %2189 = vmatprep.subr.bf16.mxu0 %v4308_v11 }
 0x15f   : > { %6300 = vst [vmem:[#allocation33_spill] sm:$0xff] %v5081_v17  ;;  %v1688_v21 = vmax.f32 %v5081_v17, 0.0  ;;  %v1706_v24 = vpack.c.bf16 %v1690_v14, %v1689_v20  ;;  %v4309_v14 = vld [vmem:[%s6222_s11] ss:$8 sps:$4 sm:$0xff]  }
 0x161   : > { %v1705_v32 = vpack.c.bf16 %v1688_v21, %v1687_v26  ;;  %1764 = vrot.lane.b32.xlu1 %v1706_v24, %s4471_s30  ;;  %2190 = vmatpush1.bf16.msra.mxu0 %v4306_v29 }
 0x162   : > { %2191 = vmatprep.subr.bf16.mxu0 %v4311_v39 }
 0x163   : > { %1762 = vrot.lane.b32.xlu0 %v1705_v32, %s4471_s30 }
 0x165   : > { %2192 = vmatpush1.bf16.msra.mxu0 %v4309_v14 }
 0x19d   : > { %v1735_v24 = vpop.permute.xlu0 %1734 }
 0x19e   : > { %4159 = vmatprep.mubr.msk.bf16.mxu1 %vm1778_vm2, %v1735_v24 }
 0x1a1   : > { %v1737_v20 = vpop.permute.xlu0 %1736 }
 0x1a2   : > { %4160 = vmatmul.mubr.msk.bf16.vlgmr.msra.gmra.mxu1 %vm1778_vm2, %v1737_v20 }
 0x1a5   : > { %v1739_v5 = vpop.permute.xlu1 %1738 }
 0x1a6   : > { %4163 = vmatprep.mubr.msk.bf16.mxu1 %vm1778_vm2, %v1739_v5 }
 0x1a9   : > { %v1741_v8 = vpop.permute.xlu1 %1740 }
 0x1aa   : > { %4164 = vmatmul.mubr.msk.bf16.gmra.mxu1 %vm1778_vm2, %v1741_v8 }
 0x1ad   : > { %v1743_v32 = vpop.permute.xlu0 %1742  ;;  %v1745_v26 = vpop.permute.xlu1 %1744 }
 0x1ae   : > { %4167 = vmatprep.mubr.msk.bf16.mxu1 %vm1778_vm2, %v1743_v32  ;;  %v4091_v32 = vpop.f32.mrf.mxu1 }
 0x1b2   : > { %4168 = vmatmul.mubr.msk.bf16.gmra.mxu1 %vm1778_vm2, %v1745_v26  ;;  %v1232_v26 = vpop.f32.mrf.mxu1 }
 0x1b3   : > { %v1749_v11 = vpop.permute.xlu1 %1748 }
 0x1b5   : > { %v1747_v40 = vpop.permute.xlu0 %1746 }
 0x1b6   : > { %4171 = vmatprep.mubr.msk.bf16.mxu1 %vm1778_vm2, %v1747_v40  ;;  %v4092_v40 = vpop.f32.mrf.mxu1 }
 0x1ba   : > { %4172 = vmatmul.mubr.msk.bf16.gmra.mxu1 %vm1778_vm2, %v1749_v11  ;;  %v6244_v11 = vmov 0  }
 0x1bb   : > { %v1753_v29 = vpop.permute.xlu1 %1752  ;;  %2209 = vmatprep.mubr.bf16.mxu0 %v6244_v11 }
 0x1bd   : > { %v1751_v21 = vpop.permute.xlu0 %1750 }
 0x1be   : > { %4175 = vmatprep.mubr.msk.bf16.mxu1 %vm1778_vm2, %v1751_v21  ;;  %v5120_v21 = vpop.f32.mrf.mxu1 }
 0x1bf   : > { %6301 = vst [vmem:[#allocation34_spill] sm:$0xff] %v5120_v21 }
 0x1c2   : > { %4176 = vmatmul.mubr.msk.bf16.gmra.mxu1 %vm1778_vm2, %v1753_v29  ;;  %v4095_v29 = vpop.f32.mrf.mxu1 }
 0x1c3   : > { %v1757_v14 = vpop.permute.xlu1 %1756 }
 0x1c5   : > { %v1755_v39 = vpop.permute.xlu0 %1754 }
 0x1c6   : > { %4179 = vmatprep.mubr.msk.bf16.mxu1 %vm1778_vm2, %v1755_v39  ;;  %v5122_v39 = vpop.f32.mrf.mxu1 }
 0x1ca   : > { %4180 = vmatmul.mubr.msk.bf16.gmra.mxu1 %vm1778_vm2, %v1757_v14  ;;  %v5124_v14 = vpop.f32.mrf.mxu1 }
 0x1cb   : > { %v1761_v20 = vpop.permute.xlu1 %1760 }
 0x1cd   : > { %v1759_v24 = vpop.permute.xlu0 %1758 }
 0x1ce   : > { %4183 = vmatprep.mubr.msk.bf16.mxu1 %vm1778_vm2, %v1759_v24  ;;  %v5126_v24 = vpop.f32.mrf.mxu1 }
 0x1cf   : > { %6302 = vst [vmem:[#allocation35_spill] sm:$0xff] %v5126_v24 }
 0x1d2   : > { %4184 = vmatmul.mubr.msk.bf16.gmra.mxu1 %vm1778_vm2, %v1761_v20  ;;  %v5128_v20 = vpop.f32.mrf.mxu1 }
 0x1d3   : > { %v1765_v8 = vpop.permute.xlu1 %1764 }
 0x1d5   : > { %v1763_v5 = vpop.permute.xlu0 %1762 }
 0x1d6   : > { %4187 = vmatprep.mubr.msk.bf16.mxu1 %vm1778_vm2, %v1763_v5  ;;  %v5130_v5 = vpop.f32.mrf.mxu1 }
 0x1da   : > { %4188 = vmatmul.mubr.msk.bf16.gmra.mxu1 %vm1778_vm2, %v1765_v8  ;;  %v5132_v8 = vpop.f32.mrf.mxu1 }
 0x1dc   : > { %v5134_v35 = vpop.f32.mrf.mxu1 }
 0x1dd   : > { %6303 = vst [vmem:[#allocation36_spill] sm:$0xff] %v5134_v35 }
 0x1de   : > { %v5136_v41 = vpop.f32.mrf.mxu1 }
 0x1e0   : > { %v5138_v11 = vpop.f32.mrf.mxu1 }
 0x1e2   : > { %v5140_v21 = vpop.f32.mrf.mxu1 }
 0x1e4   : > { %v5142_v17 = vpop.f32.mrf.mxu1 }
 0x1e5   : > { %6304 = vst [vmem:[#allocation37_spill] sm:$0xff] %v5142_v17 }
 0x1e6   : > { %v5144_v37 = vpop.f32.mrf.mxu1 }
 0x1e8   : > { %v5146_v27 = vpop.f32.mrf.mxu1 }
 0x1ea   : > { %v5148_v24 = vpop.f32.mrf.mxu1 }
 0x1eb   : > { %6305 = vst [vmem:[#allocation38_spill] sm:$0xff] %v5148_v24 }
 0x1ec   : > { %v5150_v33 = vpop.f32.mrf.mxu1 }
 0x1ed   : > { %6306 = vst [vmem:[#allocation39_spill] sm:$0xff] %v5150_v33 }
 0x1ee   : > { %v5152_v19 = vpop.f32.mrf.mxu1 }
 0x1ef   : > { %6307 = vst [vmem:[#allocation40_spill] sm:$0xff] %v5152_v19 }
 0x1f0   : > { %v5154_v31 = vpop.f32.mrf.mxu1 }
 0x1f1   : > { %6308 = vst [vmem:[#allocation41_spill] sm:$0xff] %v5154_v31 }
 0x1f2   : > { %v5156_v35 = vpop.f32.mrf.mxu1 }
 0x1f3   : > { %6309 = vst [vmem:[#allocation42_spill] sm:$0xff] %v5156_v35  ;;  %v5177_v35 = vld [vmem:[%s6217_s6] ss:$0 sm:$0xff] }
 0x1f4   : > { %v5158_v45 = vpop.f32.mrf.mxu1  ;;  %v1244_v61 = vadd.f32 %v4092_v40, %v5177_v35  ;;  %v1257_v33 = vadd.f32 %v4095_v29, %v5177_v35 }
 0x1f5   : > { %6310 = vst [vmem:[#allocation43_spill] sm:$0xff] %v5158_v45 }
 0x1f6   : > { %v5160_v1 = vpop.f32.mrf.mxu1 }
 0x1f7   : > { %6311 = vst [vmem:[#allocation44_spill] sm:$0xff] %v5160_v1 }
 0x1f8   : > { %v5162_v44 = vpop.f32.mrf.mxu1 }
 0x1f9   : > { %6312 = vst [vmem:[#allocation45_spill] sm:$0xff] %v5162_v44  ;;  %v5184_v44 = vld [vmem:[%s6221_s10] ss:$0 sm:$0xff] }
 0x1fa   : > { %v5164_v17 = vpop.f32.mrf.mxu1 }
 0x1fb   : > { %6313 = vst [vmem:[#allocation46_spill] sm:$0xff] %v5164_v17 }
 0x1fc   : > { %v5166_v22 = vpop.f32.mrf.mxu1 }
 0x1fd   : > { %6314 = vst [vmem:[#allocation47_spill] sm:$0xff] %v5166_v22  ;;  %v1241_v22 = vadd.f32 %v4091_v32, %v5177_v35 }
 0x1fe   : > { %v5168_v4 = vpop.f32.mrf.mxu1 }
 0x1ff   : > { %6315 = vst [vmem:[#allocation48_spill] sm:$0xff] %v5168_v4 }
 0x200   : > { %v5170_v52 = vpop.f32.mrf.mxu1 }
 0x201   : > { %6316 = vst [vmem:[#allocation49_spill] sm:$0xff] %v5170_v52 }
 0x202   : > { %v5172_v12 = vpop.f32.mrf.mxu1 }
 0x203   : > { %6317 = vst [vmem:[#allocation50_spill] sm:$0xff] %v5172_v12  ;;  %v1233_v12 = vadd.f32 %v5177_v35, %v1232_v26 }
 0x204   : > { %v5179_v45 = vpop.f32.mrf.mxu1 }
 0x205   : > { %6318 = vst [vmem:[#allocation51_spill] sm:$0xff] %v5179_v45  ;;  %v936_v45 = vadd.f32 %v4763_v3, %v4717_v47 }
 0x207   : > { %v1989_v47 = vsub.f32 %v4855_v6, %v936_v45  ;;  %v4315_v6 = vld [vmem:[%s6224_s13 + $0x30] sm:$0xff]   ;;  %v1249_v45 = vadd.f32 %v5177_v35, %v5122_v39 }
 0x262   : > { %v4161_v17 = vpop.f32.mrf.mxu1 }
 0x263   : > { %v1870_v4 = vadd.f32 %v4161_v17, %v5184_v44  ;;  %v4312_v17 = vld [vmem:[%s6224_s13 + $0x78] sm:$0xff]  }
 0x264   : > { %v1861_v52 = vpop.f32.mrf.mxu1  ;;  %3936 = vmatprep.subr.bf16.mxu1 %v4312_v17 }
 0x265   : > { %v5189_v1 = vadd.f32 %v1870_v4, %v1241_v22  ;;  %v1862_v31 = vadd.f32 %v5184_v44, %v1861_v52  ;;  %v4313_v22 = vld [vmem:[%s6224_s13 + $0x38] sm:$0xff]   ;;  %v4314_v52 = vld [vmem:[%s6224_s13 + $0x70] sm:$0xff]  }
 0x266   : > { %v4162_v38 = vpop.f32.mrf.mxu1  ;;  %3937 = vmatpush3.bf16.msra.mxu1 %v4313_v22  ;;  %v1260_v22 = vadd.f32 %v5124_v14, %v5177_v35 }
 0x267   : > { %6319 = vst [vmem:[#allocation52_spill] sm:$0xff] %v5189_v1  ;;  %v5195_v19 = vadd.f32 %v1862_v31, %v1233_v12  ;;  %v1873_v36 = vadd.f32 %v4162_v38, %v5184_v44  ;;  %v6321_v12 = vsub.f32 %v4832_v46, %v4829_v43  ;;  %v6322_v38 = vsub.f32 %v4850_v0, %v4845_v63 }
 0x268   : > { %v1864_v32 = vpop.f32.mrf.mxu1  ;;  %v6323_v43 = vsub.f32 %v4841_v57, %v4836_v51  ;;  %3938 = vmatprep.subr.bf16.mxu1 %v4314_v52  ;;  %v952_v51 = vadd.f32 %v4763_v3, %v4732_v54  ;;  %v4318_v54 = vld [vmem:[%s6224_s13 + $0x60] sm:$0xff]  }
 0x269   : > { %6320 = vst [vmem:[#allocation53_spill] sm:$0xff] %v5195_v19  ;;  %v2022_v26 = vmul.f32 %v6321_v12, %v1870_v4  ;;  %v2023_v40 = vmul.f32 %v6322_v38, %v1873_v36  ;;  %v5214_v1 = vadd.f32 %v1873_v36, %v1244_v61  ;;  %v5217_v19 = vadd.f32 %v5184_v44, %v1864_v32  ;;  %v4316_v61 = vld [vmem:[%s6224_s13 + $0x68] sm:$0xff]  }
 0x26a   : > { %v4165_v24 = vpop.f32.mrf.mxu1  ;;  %v2020_v46 = vmul.f32 %v6323_v43, %v1862_v31  ;;  %3939 = vmatpush3.bf16.msra.mxu1 %v4315_v6  ;;  %v6324_v32 = vmov 0   ;;  %v6325_v12 = vsub.f32 %v4864_v13, %v4859_v9  ;;  %v4319_v9 = vld [vmem:[%s6224_s13 + $0x20] sm:$0xff]   ;;  %v6327_v13 = vsub.f32 %v4874_v49, %v4868_v15 }
 0x26b   : > { %v2053_v63 = vpack.c.bf16 %v2023_v40, %v2022_v26  ;;  %v2021_v0 = vmul.f32 %v1989_v47, %v5217_v19  ;;  %v1886_v36 = vadd.f32 %v4165_v24, %v5184_v44  ;;  %v4317_v24 = vld [vmem:[%s6224_s13 + $0x28] sm:$0xff]   ;;  %3940 = vmatprep.subr.bf16.mxu1 %v4316_v61  ;;  %v6326_v26 = vsub.f32 %v4884_v28, %v4878_v25 }
 0x26c   : > { %v1877_v4 = vpop.f32.mrf.mxu1  ;;  %v1265_v61 = vadd.f32 %v5177_v35, %v5130_v5  ;;  %v968_v49 = vadd.f32 %v4763_v3, %v4744_v60  ;;  %v4322_v60 = vld [vmem:[%s6224_s13 + $0x50] sm:$0xff]  }
 0x26d   : > { %v2052_v29 = vpack.c.bf16 %v2021_v0, %v2020_v46  ;;  %v5233_v17 = vadd.f32 %v1886_v36, %v1257_v33  ;;  %v1878_v31 = vadd.f32 %v5184_v44, %v1877_v4  ;;  %v1993_v33 = vsub.f32 %v4891_v53, %v952_v51 }
 0x26e   : > { %v4166_v57 = vpop.f32.mrf.mxu1  ;;  %v5255_v14 = vmul.f32 %v6325_v12, %v1886_v36  ;;  %v1273_v53 = vadd.f32 %v5128_v20, %v5177_v35  ;;  %3941 = vmatpush3.bf16.msra.mxu1 %v4317_v24  ;;  %v4320_v20 = vld [vmem:[%s6224_s13 + $0x58] sm:$0xff]   ;;  %v1276_v51 = vadd.f32 %v5132_v8, %v5177_v35  ;;  %v1997_v24 = vsub.f32 %v4929_v48, %v968_v49 }
 0x26f   : > { %v5243_v52 = vadd.f32 %v1878_v31, %v1249_v45  ;;  %v1889_v39 = vadd.f32 %v4166_v57, %v5184_v44  ;;  %3826 = vmatmul.mubr.msk.bf16.vlgmr.msra.gmra.mxu0 %vm2128_vm3, %v2052_v29  ;;  %v2024_v25 = vmul.f32 %v6327_v13, %v1878_v31  ;;  %3942 = vmatprep.subr.bf16.mxu1 %v4318_v54  ;;  %v4321_v31 = vld [vmem:[%s6224_s13 + $0x18] sm:$0xff]  }
 0x270   : > { %v1880_v47 = vpop.f32.mrf.mxu1  ;;  %2219 = vmatprep.mubr.bf16.mxu0 %v6324_v32  ;;  %v6329_v54 = vsub.f32 %v4921_v56, %v4915_v23  ;;  %v1289_v48 = vadd.f32 %v5136_v41, %v5177_v35  ;;  %v4324_v41 = vld [vmem:[%s6224_s13 + $0x48] sm:$0xff]  }
 0x271   : > { %v5260_v38 = vmul.f32 %v6326_v26, %v1889_v39  ;;  %v5262_v40 = vadd.f32 %v1889_v39, %v1260_v22  ;;  %v5265_v6 = vadd.f32 %v5184_v44, %v1880_v47  ;;  %v6328_v39 = vsub.f32 %v4899_v58, %v4895_v42  ;;  %v4323_v42 = vld [vmem:[%s6224_s13 + $0x10] sm:$0xff]  }
 0x272   : > { %v4169_v43 = vpop.f32.mrf.mxu1  ;;  %3943 = vmatpush3.bf16.msra.mxu1 %v4319_v9  ;;  %v6330_v58 = vsub.f32 %v4911_v16, %v4906_v10  ;;  %v1281_v9 = vadd.f32 %v5177_v35, %v5138_v11 }
 0x273   : > { %v2055_v28 = vpack.c.bf16 %v5260_v38, %v5255_v14  ;;  %v2025_v46 = vmul.f32 %v1993_v33, %v5265_v6  ;;  %v1902_v0 = vadd.f32 %v4169_v43, %v5184_v44  ;;  %3944 = vmatprep.subr.bf16.mxu1 %v4320_v20  ;;  %v1292_v20 = vadd.f32 %v5140_v21, %v5177_v35 }
 0x274   : > { %v1893_v36 = vpop.f32.mrf.mxu1  ;;  %v6332_v21 = vsub.f32 %v4957_v62, %v4951_v55 }
 0x275   : > { %v2054_v4 = vpack.c.bf16 %v2025_v46, %v2024_v25  ;;  %v5284_v45 = vadd.f32 %v1902_v0, %v1273_v53  ;;  %v1894_v15 = vadd.f32 %v5184_v44, %v1893_v36  ;;  %v5306_v8 = vmul.f32 %v6328_v39, %v1902_v0  ;;  %v4325_v0 = vld [vmem:[%s6224_s13 + $0x8] sm:$0xff]  }
 0x276   : > { %v4170_v29 = vpop.f32.mrf.mxu1  ;;  %3945 = vmatpush3.bf16.msra.mxu1 %v4321_v31  ;;  %v984_v25 = vadd.f32 %v4763_v3, %v4756_v2  ;;  %v6331_v2 = vsub.f32 %v4937_v18, %v4933_v30  ;;  %v6333_v30 = vsub.f32 %v4947_v50, %v4942_v59 }
 0x277   : > { %v5294_v57 = vadd.f32 %v1894_v15, %v1265_v61  ;;  %v1905_v5 = vadd.f32 %v4170_v29, %v5184_v44  ;;  %3827 = vmatmul.mubr.msk.bf16.gmra.mxu0 %vm2128_vm3, %v2053_v63  ;;  %v5326_v23 = vmul.f32 %v6330_v58, %v1894_v15  ;;  %3946 = vmatprep.subr.bf16.mxu1 %v4322_v60  ;;  %v6338_v58 = vld [vmem:[#allocation4_spill] sm:$0xff] }
 0x278   : > { %v1896_v22 = vpop.f32.mrf.mxu1  ;;  %2229 = vmatprep.mubr.bf16.mxu0 %v6324_v32  ;;  %v2001_v61 = vsub.f32 %v4966_v7, %v984_v25  ;;  %v1305_v7 = vadd.f32 %v5144_v37, %v5177_v35 }
 0x279   : > { %v5311_v33 = vmul.f32 %v6329_v54, %v1905_v5  ;;  %v5313_v63 = vadd.f32 %v1905_v5, %v1276_v51  ;;  %v5316_v47 = vadd.f32 %v5184_v44, %v1896_v22  ;;  %v1297_v5 = vadd.f32 %v5177_v35, %v5146_v27 }
 0x27a   : > { %v4173_v12 = vpop.f32.mrf.mxu1  ;;  %3947 = vmatpush3.bf16.msra.mxu1 %v4323_v42  ;;  %v6337_v42 = vld [vmem:[#allocation18_spill] sm:$0xff] }
 0x27b   : > { %v2057_v56 = vpack.c.bf16 %v5311_v33, %v5306_v8  ;;  %v5331_v26 = vmul.f32 %v1997_v24, %v5316_v47  ;;  %v1918_v53 = vadd.f32 %v4173_v12, %v5184_v44  ;;  %3948 = vmatprep.subr.bf16.mxu1 %v4324_v41  ;;  %v6334_v24 = vld [vmem:[#allocation3_spill] sm:$0xff]  ;;  %v6339_v27 = vsub.f32 %v6337_v42, %v6338_v58  ;;  %v6353_v58 = vld [vmem:[#allocation42_spill] sm:$0xff] }
 0x27c   : > { %v1909_v43 = vpop.f32.mrf.mxu1  ;;  %v6335_v50 = vsub.f32 %v4970_v34, %v6334_v24  ;;  %v6340_v41 = vld [vmem:[#allocation39_spill] sm:$0xff]  ;;  %v6349_v24 = vld [vmem:[#allocation22_spill] sm:$0xff] }
 0x27d   : > { %v2056_v10 = vpack.c.bf16 %v5331_v26, %v5326_v23  ;;  %v5341_v16 = vadd.f32 %v1918_v53, %v1289_v48  ;;  %v1910_v13 = vadd.f32 %v5184_v44, %v1909_v43  ;;  %v5360_v3 = vmul.f32 %v6331_v2, %v1918_v53  ;;  %v6336_v48 = vld [vmem:[#allocation38_spill] sm:$0xff] }
 0x27e   : > { %v4174_v46 = vpop.f32.mrf.mxu1  ;;  %3949 = vmatpush3.bf16.msra.mxu1 %v4325_v0  ;;  %v1308_v12 = vadd.f32 %v6336_v48, %v5177_v35  ;;  %v1300_v43 = vadd.f32 %v5177_v35, %v6340_v41 }
 0x27f   : > { %v5351_v11 = vadd.f32 %v1910_v13, %v1281_v9  ;;  %v1921_v36 = vadd.f32 %v4174_v46, %v5184_v44  ;;  %3828 = vmatmul.mubr.msk.bf16.gmra.mxu0 %vm2128_vm3, %v2054_v4  ;;  %v5377_v18 = vmul.f32 %v6333_v30, %v1910_v13  ;;  %v6341_v9 = vld [vmem:[#allocation19_spill] sm:$0xff]  ;;  %v6342_v13 = vld [vmem:[#allocation5_spill] sm:$0xff] }
 0x280   : > { %v1912_v15 = vpop.f32.mrf.mxu1  ;;  %2239 = vmatprep.mubr.bf16.mxu0 %v6324_v32  ;;  %v6343_v25 = vsub.f32 %v6341_v9, %v6342_v13  ;;  %v6348_v30 = vld [vmem:[#allocation41_spill] sm:$0xff] }
 0x281   : > { %v5365_v49 = vmul.f32 %v6332_v21, %v1921_v36  ;;  %v5367_v29 = vadd.f32 %v1921_v36, %v1292_v20  ;;  %v5370_v4 = vadd.f32 %v5184_v44, %v1912_v15  ;;  %v6344_v36 = vld [vmem:[#allocation40_spill] sm:$0xff] }
 0x282   : > { %v4177_v31 = vpop.f32.mrf.mxu1  ;;  %v1321_v14 = vadd.f32 %v6344_v36, %v5177_v35  ;;  %v6346_v15 = vld [vmem:[#allocation20_spill] sm:$0xff] }
 0x283   : > { %v2059_v55 = vpack.c.bf16 %v5365_v49, %v5360_v3  ;;  %v5382_v62 = vmul.f32 %v2001_v61, %v5370_v4  ;;  %v1934_v51 = vadd.f32 %v4177_v31, %v5184_v44  ;;  %v6345_v61 = vld [vmem:[#allocation21_spill] sm:$0xff]  ;;  %v4326_v3 = vld [vmem:[%s6224_s13 + $0x40] sm:$0xff]  }
 0x284   : > { %v1925_v60 = vpop.f32.mrf.mxu1  ;;  %v6347_v2 = vsub.f32 %v6345_v61, %v6346_v15  ;;  %v4327_v49 = vld [vmem:[%s6224_s13] sm:$0xff]   ;;  %3950 = vmatprep.subr.bf16.mxu1 %v4326_v3 }
 0x285   : > { %v2058_v37 = vpack.c.bf16 %v5382_v62, %v5377_v18  ;;  %v5392_v59 = vmul.f32 %v6335_v50, %v1934_v51  ;;  %v5394_v22 = vadd.f32 %v1934_v51, %v1305_v7  ;;  %v1926_v39 = vadd.f32 %v5184_v44, %v1925_v60  ;;  %v6350_v50 = vld [vmem:[#allocation6_spill] sm:$0xff]  ;;  %3951 = vmatpush3.bf16.msra.mxu1 %v4327_v49 }
 0x286   : > { %v4178_v54 = vpop.f32.mrf.mxu1  ;;  %v1313_v51 = vadd.f32 %v5177_v35, %v6348_v30  ;;  %v6362_v30 = vld [vmem:[#allocation44_spill] sm:$0xff] }
 0x287   : > { %v5402_v23 = vmul.f32 %v6339_v27, %v1926_v39  ;;  %v5404_v26 = vadd.f32 %v1926_v39, %v1297_v5  ;;  %v1937_v53 = vadd.f32 %v4178_v54, %v5184_v44  ;;  %3829 = vmatmul.mubr.msk.bf16.gmra.mxu0 %vm2128_vm3, %v2055_v28  ;;  %v6351_v39 = vsub.f32 %v6349_v24, %v6350_v50  ;;  %v6363_v24 = vld [vmem:[#allocation25_spill] sm:$0xff] }
 0x288   : > { %v1928_v34 = vpop.f32.mrf.mxu1  ;;  %2249 = vmatprep.mubr.bf16.mxu0 %v6324_v32  ;;  %v1324_v27 = vadd.f32 %v6353_v58, %v5177_v35  ;;  %v6364_v50 = vld [vmem:[#allocation9_spill] sm:$0xff] }
 0x289   : > { %v5417_v46 = vmul.f32 %v6343_v25, %v1937_v53  ;;  %v5419_v0 = vadd.f32 %v1937_v53, %v1308_v12  ;;  %v1929_v20 = vadd.f32 %v5184_v44, %v1928_v34  ;;  %v6354_v53 = vld [vmem:[#allocation23_spill] sm:$0xff] }
 0x28a   : > { %v4181_v38 = vpop.f32.mrf.mxu1  ;;  %v6355_v34 = vld [vmem:[#allocation7_spill] sm:$0xff] }
 0x28b   : > { %v5429_v21 = vmul.f32 %v6347_v2, %v1929_v20  ;;  %v5431_v7 = vadd.f32 %v1929_v20, %v1300_v43  ;;  %v1950_v31 = vadd.f32 %v4181_v38, %v5184_v44  ;;  %v6356_v41 = vsub.f32 %v6354_v53, %v6355_v34  ;;  %v6357_v20 = vld [vmem:[#allocation43_spill] sm:$0xff]  ;;  %v6359_v38 = vld [vmem:[#allocation8_spill] sm:$0xff]  ;;  %v6367_v53 = vld [vmem:[#allocation45_spill] sm:$0xff] }
 0x28c   : > { %v1941_v5 = vpop.f32.mrf.mxu1  ;;  %v1316_v36 = vadd.f32 %v5177_v35, %v6357_v20 }
 0x28d   : > { %v5441_v54 = vmul.f32 %v6351_v39, %v1950_v31  ;;  %v5443_v48 = vadd.f32 %v1950_v31, %v1321_v14  ;;  %v1942_v12 = vadd.f32 %v5184_v44, %v1941_v5  ;;  %v6358_v14 = vld [vmem:[#allocation24_spill] sm:$0xff]  ;;  %v6365_v39 = vsub.f32 %v6363_v24, %v6364_v50 }
 0x28e   : > { %v4182_v42 = vpop.f32.mrf.mxu1  ;;  %v6360_v61 = vsub.f32 %v6358_v14, %v6359_v38 }
 0x28f   : > { %6352 = vst [vmem:[#allocation3_spill] sm:$0xff] %v5443_v48  ;;  %v5451_v43 = vmul.f32 %v6356_v41, %v1942_v12  ;;  %v5453_v9 = vadd.f32 %v1942_v12, %v1313_v51  ;;  %v1953_v13 = vadd.f32 %v4182_v42, %v5184_v44  ;;  %3830 = vmatmul.mubr.msk.bf16.gmra.mxu0 %vm2128_vm3, %v2056_v10 }
 0x290   : > { %v1944_v25 = vpop.f32.mrf.mxu1  ;;  %2259 = vmatprep.mubr.bf16.mxu0 %v6324_v32  ;;  %v1337_v51 = vadd.f32 %v6362_v30, %v5177_v35  ;;  %v6374_v30 = vld [vmem:[#allocation11_spill] sm:$0xff] }
 0x291   : > { %v5463_v15 = vmul.f32 %v6360_v61, %v1953_v13  ;;  %v5465_v2 = vadd.f32 %v1953_v13, %v1324_v27  ;;  %v1945_v31 = vadd.f32 %v5184_v44, %v1944_v25  ;;  %v1329_v27 = vadd.f32 %v5177_v35, %v6367_v53  ;;  %v6368_v13 = vld [vmem:[#allocation26_spill] sm:$0xff]  ;;  %v6379_v53 = vld [vmem:[#allocation12_spill] sm:$0xff] }
 0x292   : > { %v4185_v5 = vpop.f32.mrf.mxu1  ;;  %v6369_v25 = vld [vmem:[#allocation10_spill] sm:$0xff] }
 0x293   : > { %6361 = vst [vmem:[#allocation38_spill] sm:$0xff] %v5465_v2  ;;  %v2063_v10 = vpack.c.bf16 %v5463_v15, %v5441_v54  ;;  %v2041_v12 = vmul.f32 %v6365_v39, %v1945_v31  ;;  %v5475_v42 = vadd.f32 %v1945_v31, %v1316_v36  ;;  %v1966_v58 = vadd.f32 %v4185_v5, %v5184_v44  ;;  %v6372_v36 = vld [vmem:[#allocation46_spill] sm:$0xff]  ;;  %v6373_v31 = vld [vmem:[#allocation27_spill] sm:$0xff] }
 0x294   : > { %v1957_v34 = vpop.f32.mrf.mxu1  ;;  %v6370_v20 = vsub.f32 %v6368_v13, %v6369_v25  ;;  %v1340_v15 = vadd.f32 %v6372_v36, %v5177_v35  ;;  %v6375_v5 = vsub.f32 %v6373_v31, %v6374_v30  ;;  %v6377_v39 = vld [vmem:[#allocation47_spill] sm:$0xff] }
 0x295   : > { %6366 = vst [vmem:[#allocation18_spill] sm:$0xff] %v5475_v42  ;;  %v2062_v41 = vpack.c.bf16 %v2041_v12, %v5451_v43  ;;  %v5484_v38 = vadd.f32 %v1966_v58, %v1337_v51  ;;  %v1958_v54 = vadd.f32 %v5184_v44, %v1957_v34  ;;  %v1332_v12 = vadd.f32 %v5177_v35, %v6377_v39  ;;  %v6387_v39 = vld [vmem:[#allocation49_spill] sm:$0xff] }
 0x296   : > { %v2046_v14 = vmul.f32 %v6370_v20, %v1966_v58  ;;  %v4186_v61 = vpop.f32.mrf.mxu1  ;;  %v6378_v58 = vld [vmem:[#allocation28_spill] sm:$0xff] }
 0x297   : > { %6371 = vst [vmem:[#allocation4_spill] sm:$0xff] %v5484_v38  ;;  %v2044_v24 = vmul.f32 %v6375_v5, %v1958_v54  ;;  %v5492_v50 = vadd.f32 %v1958_v54, %v1329_v27  ;;  %v1969_v43 = vadd.f32 %v4186_v61, %v5184_v44  ;;  %3831 = vmatmul.mubr.msk.bf16.gmra.mxu0 %vm2128_vm3, %v2057_v56  ;;  %v6382_v20 = vld [vmem:[#allocation48_spill] sm:$0xff]  ;;  %v6383_v56 = vld [vmem:[#allocation29_spill] sm:$0xff] }
 0x298   : > { %v1960_v51 = vpop.f32.mrf.mxu1  ;;  %2269 = vmatprep.mubr.bf16.mxu0 %v6324_v32  ;;  %v6380_v34 = vsub.f32 %v6378_v58, %v6379_v53  ;;  %v1353_v54 = vadd.f32 %v6382_v20, %v5177_v35  ;;  %v6384_v61 = vld [vmem:[#allocation13_spill] sm:$0xff]  ;;  %v1345_v58 = vadd.f32 %v5177_v35, %v6387_v39  ;;  %v6388_v53 = vld [vmem:[#allocation30_spill] sm:$0xff] }
 0x299   : > { %6376 = vst [vmem:[#allocation39_spill] sm:$0xff] %v5492_v50  ;;  %v5505_v25 = vadd.f32 %v1969_v43, %v1340_v15  ;;  %v1961_v27 = vadd.f32 %v5184_v44, %v1960_v51  ;;  %v6385_v36 = vsub.f32 %v6383_v56, %v6384_v61  ;;  %v6389_v51 = vld [vmem:[#allocation14_spill] sm:$0xff]  ;;  %v6394_v61 = vld [vmem:[#allocation15_spill] sm:$0xff] }
 0x29a   : > { %v2047_v13 = vmul.f32 %v6380_v34, %v1969_v43  ;;  %v4189_v8 = vpop.f32.mrf.mxu1  ;;  %v6390_v34 = vsub.f32 %v6388_v53, %v6389_v51  ;;  %v6392_v56 = vld [vmem:[#allocation50_spill] sm:$0xff]  ;;  %v6402_v51 = vld [vmem:[#allocation33_spill] sm:$0xff] }
 0x29b   : > { %6381 = vst [vmem:[#allocation19_spill] sm:$0xff] %v5505_v25  ;;  %v2045_v31 = vmul.f32 %v6385_v36, %v1961_v27  ;;  %v5513_v30 = vadd.f32 %v1961_v27, %v1332_v12  ;;  %v1982_v5 = vadd.f32 %v4189_v8, %v5184_v44  ;;  %v1356_v12 = vadd.f32 %v6392_v56, %v5177_v35  ;;  %v6393_v27 = vld [vmem:[#allocation31_spill] sm:$0xff] }
 0x29c   : > { %v2065_v33 = vpack.c.bf16 %v2047_v13, %v2046_v14  ;;  %v1973_v15 = vpop.f32.mrf.mxu1  ;;  %v6395_v8 = vsub.f32 %v6393_v27, %v6394_v61 }
 0x29d   : > { %6386 = vst [vmem:[#allocation5_spill] sm:$0xff] %v5513_v30  ;;  %v2064_v43 = vpack.c.bf16 %v2045_v31, %v2044_v24  ;;  %v2050_v28 = vmul.f32 %v6390_v34, %v1982_v5  ;;  %v5521_v20 = vadd.f32 %v1982_v5, %v1353_v54  ;;  %v1974_v14 = vadd.f32 %v5184_v44, %v1973_v15  ;;  %v6397_v31 = vld [vmem:[#allocation32_spill] sm:$0xff]  ;;  %v6403_v34 = vld [vmem:[#allocation17_spill] sm:$0xff] }
 0x29e   : > { %v4190_v13 = vpop.f32.mrf.mxu1  ;;  %v6398_v5 = vld [vmem:[#allocation16_spill] sm:$0xff] }
 0x29f   : > { %6391 = vst [vmem:[#allocation40_spill] sm:$0xff] %v5521_v20  ;;  %v2048_v36 = vmul.f32 %v6395_v8, %v1974_v14  ;;  %v5529_v60 = vadd.f32 %v1974_v14, %v1345_v58  ;;  %v1985_v24 = vadd.f32 %v4190_v13, %v5184_v44  ;;  %3832 = vmatmul.mubr.msk.bf16.gmra.mxu0 %vm2128_vm3, %v2058_v37 }
 0x2a0   : > { %v1976_v54 = vpop.f32.mrf.mxu1  ;;  %2279 = vmatprep.mubr.bf16.mxu0 %v6324_v32  ;;  %v6399_v39 = vsub.f32 %v6397_v31, %v6398_v5  ;;  %v6404_v14 = vsub.f32 %v6402_v51, %v6403_v34  ;;  %v6405_v37 = vpack.c.bf16 %v5429_v21, %v5402_v23 }
 0x2a1   : > { %6396 = vst [vmem:[#allocation21_spill] sm:$0xff] %v5529_v60  ;;  %v5540_v15 = vadd.f32 %v1985_v24, %v1356_v12  ;;  %v5543_v53 = vadd.f32 %v5184_v44, %v1976_v54  ;;  %v6406_v44 = vpack.c.bf16 %v5417_v46, %v5392_v59 }
 0x2a2   : > { %v2051_v35 = vmul.f32 %v6399_v39, %v1985_v24 }
 0x2a3   : > { %6400 = vst [vmem:[#allocation20_spill] sm:$0xff] %v5540_v15  ;;  %6401 = vst [vmem:[#allocation41_spill] sm:$0xff] %v5543_v53  ;;  %v2049_v18 = vmul.f32 %v6404_v14, %v5543_v53 }
 0x2a4   : > { %v2067_v58 = vpack.c.bf16 %v2051_v35, %v2050_v28  ;;  %v2076_v28 = vld [vmem:[%s6223_s12] sm:$0x3] }
 0x2a5   : > { %v2066_v62 = vpack.c.bf16 %v2049_v18, %v2048_v36 }
 0x2a7   : > { %3833 = vmatmul.mubr.msk.bf16.gmra.mxu0 %vm2128_vm3, %v2059_v55  ;;  %v2078_v55 = vlaneseq }
 0x2a8   : > { %2289 = vmatprep.mubr.bf16.mxu0 %v6324_v32 }
 0x2a9   : > { %v2079_v59 = vshrl.u32 %v2078_v55, 7 }
 0x2ab   : > { %v2084_v23 = vsub.s32 1, %v2079_v59  ;;  %v2080_v46 = vsub.s32 0, %v2079_v59 }
 0x2af   : > { %3834 = vmatmul.mubr.msk.bf16.gmra.mxu0 %vm2128_vm3, %v6405_v37 }
 0x2b0   : > { %2299 = vmatprep.mubr.bf16.mxu0 %v6324_v32 }
 0x2b7   : > { %3835 = vmatmul.mubr.msk.bf16.gmra.mxu0 %vm2128_vm3, %v6406_v44 }
 0x2b8   : > { %2309 = vmatprep.mubr.bf16.mxu0 %v6324_v32 }
 0x2bf   : > { %3836 = vmatmul.mubr.msk.bf16.gmra.mxu0 %vm2128_vm3, %v2062_v41  ;;  %v5586_v41 = vrot.slane %v2076_v28, %v2080_v46 }
 0x2c0   : > { %2319 = vmatprep.mubr.bf16.mxu0 %v6324_v32 }
 0x2c7   : > { %3837 = vmatmul.mubr.msk.bf16.gmra.mxu0 %vm2128_vm3, %v2063_v10  ;;  %v5584_v10 = vrot.slane %v2076_v28, %v2084_v23 }
 0x2c8   : > { %2329 = vmatprep.mubr.bf16.mxu0 %v6324_v32 }
 0x2cf   : > { %3838 = vmatmul.mubr.msk.bf16.gmra.mxu0 %vm2128_vm3, %v2064_v43 }
 0x2d0   : > { %2339 = vmatprep.mubr.bf16.mxu0 %v6324_v32 }
 0x2d7   : > { %3839 = vmatmul.mubr.msk.bf16.gmra.mxu0 %vm2128_vm3, %v2065_v33 }
 0x2d8   : > { %2349 = vmatprep.mubr.bf16.mxu0 %v6324_v32 }
 0x2df   : > { %3840 = vmatmul.mubr.msk.bf16.gmra.mxu0 %vm2128_vm3, %v2066_v62 }
 0x2e0   : > { %2359 = vmatprep.mubr.bf16.mxu0 %v6324_v32 }
 0x2e7   : > { %3841 = vmatmul.mubr.msk.bf16.gmra.mxu0 %vm2128_vm3, %v2067_v58 }
 0x32f   : > { %v2211_v21 = vpop.f32.mrf.mxu0 }
 0x330   : > { %v2212_v56 = vadd.f32 %v2211_v21, %v5586_v41 }
 0x331   : > { %v2213_v33 = vpop.f32.mrf.mxu0 }
 0x332   : > { %v2214_v13 = vadd.f32 %v2213_v33, %v5584_v10  ;;  %v2370_v54 = vmax.f32 %v2212_v56, 0.0 }
 0x333   : > { %v2215_v43 = vpop.f32.mrf.mxu0 }
 0x334   : > { %v2216_v32 = vadd.f32 %v2215_v43, %v5586_v41  ;;  %v2371_v36 = vmax.f32 %v2214_v13, 0.0 }
 0x335   : > { %v2217_v12 = vpop.f32.mrf.mxu0 }
 0x336   : > { %v2218_v27 = vadd.f32 %v2217_v12, %v5584_v10  ;;  %v2372_v61 = vmax.f32 %v2216_v32, 0.0 }
 0x337   : > { %v2221_v8 = vpop.f32.mrf.mxu0 }
 0x338   : > { %v2373_v24 = vmax.f32 %v2218_v27, 0.0  ;;  %v2434_v39 = vpack.c.bf16 %v2372_v61, %v2370_v54  ;;  %v2222_v34 = vadd.f32 %v2221_v8, %v5586_v41 }
 0x339   : > { %v2223_v31 = vpop.f32.mrf.mxu0 }
 0x33a   : > { %v2435_v5 = vpack.c.bf16 %v2373_v24, %v2371_v36  ;;  %v2224_v58 = vadd.f32 %v2223_v31, %v5584_v10  ;;  %v2374_v49 = vmax.f32 %v2222_v34, 0.0 }
 0x33b   : > { %v2225_v35 = vpop.f32.mrf.mxu0 }
 0x33c   : > { %v2226_v51 = vadd.f32 %v2225_v35, %v5586_v41  ;;  %2633 = vmatprep.mubr.bf16.mxu1 %v2435_v5  ;;  %v2375_v44 = vmax.f32 %v2224_v58, 0.0 }
 0x33d   : > { %v2227_v14 = vpop.f32.mrf.mxu0  ;;  %2634 = vmatmul.mubr.bf16.vlgmr.msra.gmra.mxu1 %v2434_v39 }
 0x33e   : > { %v2228_v18 = vadd.f32 %v2227_v14, %v5584_v10  ;;  %v2376_v62 = vmax.f32 %v2226_v51, 0.0 }
 0x33f   : > { %v2231_v37 = vpop.f32.mrf.mxu0 }
 0x340   : > { %v2377_v3 = vmax.f32 %v2228_v18, 0.0  ;;  %v2436_v23 = vpack.c.bf16 %v2376_v62, %v2374_v49  ;;  %v2232_v33 = vadd.f32 %v2231_v37, %v5586_v41 }
 0x341   : > { %v2233_v55 = vpop.f32.mrf.mxu0 }
 0x342   : > { %v2437_v59 = vpack.c.bf16 %v2377_v3, %v2375_v44  ;;  %v2234_v28 = vadd.f32 %v2233_v55, %v5584_v10  ;;  %v2378_v61 = vmax.f32 %v2232_v33, 0.0 }
 0x343   : > { %v2235_v46 = vpop.f32.mrf.mxu0 }
 0x344   : > { %v2236_v21 = vadd.f32 %v2235_v46, %v5586_v41  ;;  %2641 = vmatprep.mubr.bf16.mxu1 %v2437_v59  ;;  %v2379_v12 = vmax.f32 %v2234_v28, 0.0 }
 0x345   : > { %v2237_v43 = vpop.f32.mrf.mxu0  ;;  %2642 = vmatmul.mubr.bf16.gmra.mxu1 %v2436_v23 }
 0x346   : > { %v2238_v13 = vadd.f32 %v2237_v43, %v5584_v10  ;;  %v2380_v32 = vmax.f32 %v2236_v21, 0.0 }
 0x347   : > { %v2241_v56 = vpop.f32.mrf.mxu0 }
 0x348   : > { %v2381_v27 = vmax.f32 %v2238_v13, 0.0  ;;  %v2438_v24 = vpack.c.bf16 %v2380_v32, %v2378_v61  ;;  %v2242_v39 = vadd.f32 %v2241_v56, %v5586_v41 }
 0x349   : > { %v2243_v8 = vpop.f32.mrf.mxu0 }
 0x34a   : > { %v2439_v36 = vpack.c.bf16 %v2381_v27, %v2379_v12  ;;  %v2244_v31 = vadd.f32 %v2243_v8, %v5584_v10  ;;  %v2382_v62 = vmax.f32 %v2242_v39, 0.0 }
 0x34b   : > { %v2245_v54 = vpop.f32.mrf.mxu0 }
 0x34c   : > { %v2246_v5 = vadd.f32 %v2245_v54, %v5586_v41  ;;  %2649 = vmatprep.mubr.bf16.mxu1 %v2439_v36  ;;  %v2383_v14 = vmax.f32 %v2244_v31, 0.0 }
 0x34d   : > { %v2247_v35 = vpop.f32.mrf.mxu0  ;;  %2650 = vmatmul.mubr.bf16.gmra.mxu1 %v2438_v24 }
 0x34e   : > { %v2248_v58 = vadd.f32 %v2247_v35, %v5584_v10  ;;  %v2384_v51 = vmax.f32 %v2246_v5, 0.0 }
 0x34f   : > { %v2251_v34 = vpop.f32.mrf.mxu0 }
 0x350   : > { %v2385_v18 = vmax.f32 %v2248_v58, 0.0  ;;  %v2440_v3 = vpack.c.bf16 %v2384_v51, %v2382_v62  ;;  %v2252_v23 = vadd.f32 %v2251_v34, %v5586_v41 }
 0x351   : > { %v2253_v37 = vpop.f32.mrf.mxu0 }
 0x352   : > { %v2441_v44 = vpack.c.bf16 %v2385_v18, %v2383_v14  ;;  %v2254_v55 = vadd.f32 %v2253_v37, %v5584_v10  ;;  %v2386_v32 = vmax.f32 %v2252_v23, 0.0 }
 0x353   : > { %v2255_v49 = vpop.f32.mrf.mxu0 }
 0x354   : > { %v2256_v59 = vadd.f32 %v2255_v49, %v5586_v41  ;;  %2657 = vmatprep.mubr.bf16.mxu1 %v2441_v44  ;;  %v2387_v43 = vmax.f32 %v2254_v55, 0.0 }
 0x355   : > { %v2257_v46 = vpop.f32.mrf.mxu0  ;;  %2658 = vmatmul.mubr.bf16.gmra.mxu1 %v2440_v3 }
 0x356   : > { %v2258_v28 = vadd.f32 %v2257_v46, %v5584_v10  ;;  %v2388_v21 = vmax.f32 %v2256_v59, 0.0 }
 0x357   : > { %v2261_v33 = vpop.f32.mrf.mxu0 }
 0x358   : > { %v2389_v13 = vmax.f32 %v2258_v28, 0.0  ;;  %v2442_v27 = vpack.c.bf16 %v2388_v21, %v2386_v32  ;;  %v2262_v24 = vadd.f32 %v2261_v33, %v5586_v41 }
 0x359   : > { %v2263_v56 = vpop.f32.mrf.mxu0 }
 0x35a   : > { %v2443_v12 = vpack.c.bf16 %v2389_v13, %v2387_v43  ;;  %v2264_v8 = vadd.f32 %v2263_v56, %v5584_v10  ;;  %v2390_v51 = vmax.f32 %v2262_v24, 0.0 }
 0x35b   : > { %v2265_v61 = vpop.f32.mrf.mxu0 }
 0x35c   : > { %v2266_v36 = vadd.f32 %v2265_v61, %v5586_v41  ;;  %2665 = vmatprep.mubr.bf16.mxu1 %v2443_v12  ;;  %v2391_v35 = vmax.f32 %v2264_v8, 0.0 }
 0x35d   : > { %v2267_v54 = vpop.f32.mrf.mxu0  ;;  %2666 = vmatmul.mubr.bf16.gmra.mxu1 %v2442_v27 }
 0x35e   : > { %v2268_v31 = vadd.f32 %v2267_v54, %v5584_v10  ;;  %v2392_v5 = vmax.f32 %v2266_v36, 0.0 }
 0x35f   : > { %v2271_v39 = vpop.f32.mrf.mxu0 }
 0x360   : > { %v2393_v58 = vmax.f32 %v2268_v31, 0.0  ;;  %v2444_v18 = vpack.c.bf16 %v2392_v5, %v2390_v51  ;;  %v2272_v3 = vadd.f32 %v2271_v39, %v5586_v41 }
 0x361   : > { %v2273_v34 = vpop.f32.mrf.mxu0 }
 0x362   : > { %v2445_v14 = vpack.c.bf16 %v2393_v58, %v2391_v35  ;;  %v2274_v37 = vadd.f32 %v2273_v34, %v5584_v10  ;;  %v2394_v21 = vmax.f32 %v2272_v3, 0.0 }
 0x363   : > { %v2275_v62 = vpop.f32.mrf.mxu0 }
 0x364   : > { %v2276_v44 = vadd.f32 %v2275_v62, %v5586_v41  ;;  %2673 = vmatprep.mubr.bf16.mxu1 %v2445_v14  ;;  %v2395_v46 = vmax.f32 %v2274_v37, 0.0 }
 0x365   : > { %v2277_v49 = vpop.f32.mrf.mxu0  ;;  %2674 = vmatmul.mubr.bf16.gmra.mxu1 %v2444_v18 }
 0x366   : > { %v2278_v55 = vadd.f32 %v2277_v49, %v5584_v10  ;;  %v2396_v59 = vmax.f32 %v2276_v44, 0.0 }
 0x367   : > { %v2281_v23 = vpop.f32.mrf.mxu0 }
 0x368   : > { %v2397_v28 = vmax.f32 %v2278_v55, 0.0  ;;  %v2446_v13 = vpack.c.bf16 %v2396_v59, %v2394_v21  ;;  %v2282_v27 = vadd.f32 %v2281_v23, %v5586_v41 }
 0x369   : > { %v2283_v33 = vpop.f32.mrf.mxu0 }
 0x36a   : > { %v2447_v43 = vpack.c.bf16 %v2397_v28, %v2395_v46  ;;  %v2284_v56 = vadd.f32 %v2283_v33, %v5584_v10  ;;  %v2398_v5 = vmax.f32 %v2282_v27, 0.0 }
 0x36b   : > { %v2285_v32 = vpop.f32.mrf.mxu0 }
 0x36c   : > { %v2286_v12 = vadd.f32 %v2285_v32, %v5586_v41  ;;  %2681 = vmatprep.mubr.bf16.mxu1 %v2447_v43  ;;  %v2399_v54 = vmax.f32 %v2284_v56, 0.0 }
 0x36d   : > { %v2287_v61 = vpop.f32.mrf.mxu0  ;;  %2682 = vmatmul.mubr.bf16.gmra.mxu1 %v2446_v13 }
 0x36e   : > { %v2288_v8 = vadd.f32 %v2287_v61, %v5584_v10  ;;  %v2400_v36 = vmax.f32 %v2286_v12, 0.0 }
 0x36f   : > { %v2291_v24 = vpop.f32.mrf.mxu0 }
 0x370   : > { %v2401_v31 = vmax.f32 %v2288_v8, 0.0  ;;  %v2448_v58 = vpack.c.bf16 %v2400_v36, %v2398_v5  ;;  %v2292_v18 = vadd.f32 %v2291_v24, %v5586_v41 }
 0x371   : > { %v2293_v39 = vpop.f32.mrf.mxu0 }
 0x372   : > { %v2449_v35 = vpack.c.bf16 %v2401_v31, %v2399_v54  ;;  %v2294_v34 = vadd.f32 %v2293_v39, %v5584_v10  ;;  %v2402_v59 = vmax.f32 %v2292_v18, 0.0 }
 0x373   : > { %v2295_v51 = vpop.f32.mrf.mxu0 }
 0x374   : > { %v2296_v14 = vadd.f32 %v2295_v51, %v5586_v41  ;;  %2689 = vmatprep.mubr.bf16.mxu1 %v2449_v35  ;;  %v2403_v49 = vmax.f32 %v2294_v34, 0.0 }
 0x375   : > { %v2297_v62 = vpop.f32.mrf.mxu0  ;;  %2690 = vmatmul.mubr.bf16.gmra.mxu1 %v2448_v58 }
 0x376   : > { %v2298_v37 = vadd.f32 %v2297_v62, %v5584_v10  ;;  %v2404_v44 = vmax.f32 %v2296_v14, 0.0 }
 0x377   : > { %v2301_v3 = vpop.f32.mrf.mxu0 }
 0x378   : > { %v2405_v55 = vmax.f32 %v2298_v37, 0.0  ;;  %v2450_v28 = vpack.c.bf16 %v2404_v44, %v2402_v59  ;;  %v2302_v13 = vadd.f32 %v2301_v3, %v5586_v41 }
 0x379   : > { %v2303_v23 = vpop.f32.mrf.mxu0 }
 0x37a   : > { %v2451_v46 = vpack.c.bf16 %v2405_v55, %v2403_v49  ;;  %v2304_v33 = vadd.f32 %v2303_v23, %v5584_v10  ;;  %v2406_v36 = vmax.f32 %v2302_v13, 0.0 }
 0x37b   : > { %v2305_v21 = vpop.f32.mrf.mxu0 }
 0x37c   : > { %v2306_v43 = vadd.f32 %v2305_v21, %v5586_v41  ;;  %2697 = vmatprep.mubr.bf16.mxu1 %v2451_v46  ;;  %v2407_v61 = vmax.f32 %v2304_v33, 0.0 }
 0x37d   : > { %v2307_v32 = vpop.f32.mrf.mxu0  ;;  %2698 = vmatmul.mubr.bf16.gmra.mxu1 %v2450_v28 }
 0x37e   : > { %v2308_v56 = vadd.f32 %v2307_v32, %v5584_v10  ;;  %v2408_v12 = vmax.f32 %v2306_v43, 0.0 }
 0x37f   : > { %v2311_v27 = vpop.f32.mrf.mxu0 }
 0x380   : > { %v2409_v8 = vmax.f32 %v2308_v56, 0.0  ;;  %v2452_v31 = vpack.c.bf16 %v2408_v12, %v2406_v36  ;;  %v2312_v58 = vadd.f32 %v2311_v27, %v5586_v41 }
 0x381   : > { %v2313_v24 = vpop.f32.mrf.mxu0 }
 0x382   : > { %v2453_v54 = vpack.c.bf16 %v2409_v8, %v2407_v61  ;;  %v2314_v39 = vadd.f32 %v2313_v24, %v5584_v10  ;;  %v2410_v44 = vmax.f32 %v2312_v58, 0.0 }
 0x383   : > { %v2315_v5 = vpop.f32.mrf.mxu0 }
 0x384   : > { %v2316_v35 = vadd.f32 %v2315_v5, %v5586_v41  ;;  %2705 = vmatprep.mubr.bf16.mxu1 %v2453_v54  ;;  %v2411_v62 = vmax.f32 %v2314_v39, 0.0 }
 0x385   : > { %v2317_v51 = vpop.f32.mrf.mxu0  ;;  %2706 = vmatmul.mubr.bf16.gmra.mxu1 %v2452_v31 }
 0x386   : > { %v2318_v34 = vadd.f32 %v2317_v51, %v5584_v10  ;;  %v2412_v14 = vmax.f32 %v2316_v35, 0.0 }
 0x387   : > { %v2321_v18 = vpop.f32.mrf.mxu0 }
 0x388   : > { %v2413_v37 = vmax.f32 %v2318_v34, 0.0  ;;  %v2454_v55 = vpack.c.bf16 %v2412_v14, %v2410_v44  ;;  %v2322_v28 = vadd.f32 %v2321_v18, %v5586_v41 }
 0x389   : > { %v2323_v3 = vpop.f32.mrf.mxu0 }
 0x38a   : > { %v2455_v49 = vpack.c.bf16 %v2413_v37, %v2411_v62  ;;  %v2324_v23 = vadd.f32 %v2323_v3, %v5584_v10  ;;  %v2414_v12 = vmax.f32 %v2322_v28, 0.0 }
 0x38b   : > { %v2325_v59 = vpop.f32.mrf.mxu0 }
 0x38c   : > { %v2326_v46 = vadd.f32 %v2325_v59, %v5586_v41  ;;  %2713 = vmatprep.mubr.bf16.mxu1 %v2455_v49  ;;  %v2415_v32 = vmax.f32 %v2324_v23, 0.0 }
 0x38d   : > { %v2327_v21 = vpop.f32.mrf.mxu0  ;;  %2714 = vmatmul.mubr.bf16.gmra.mxu1 %v2454_v55 }
 0x38e   : > { %v2328_v33 = vadd.f32 %v2327_v21, %v5584_v10  ;;  %v2416_v43 = vmax.f32 %v2326_v46, 0.0 }
 0x38f   : > { %v2331_v13 = vpop.f32.mrf.mxu0 }
 0x390   : > { %v2417_v56 = vmax.f32 %v2328_v33, 0.0  ;;  %v2456_v8 = vpack.c.bf16 %v2416_v43, %v2414_v12  ;;  %v2332_v31 = vadd.f32 %v2331_v13, %v5586_v41 }
 0x391   : > { %v2333_v27 = vpop.f32.mrf.mxu0 }
 0x392   : > { %v2457_v61 = vpack.c.bf16 %v2417_v56, %v2415_v32  ;;  %v2334_v24 = vadd.f32 %v2333_v27, %v5584_v10  ;;  %v2418_v14 = vmax.f32 %v2332_v31, 0.0 }
 0x393   : > { %v2335_v36 = vpop.f32.mrf.mxu0 }
 0x394   : > { %v2336_v54 = vadd.f32 %v2335_v36, %v5586_v41  ;;  %2721 = vmatprep.mubr.bf16.mxu1 %v2457_v61  ;;  %v2419_v51 = vmax.f32 %v2334_v24, 0.0 }
 0x395   : > { %v2337_v5 = vpop.f32.mrf.mxu0  ;;  %2722 = vmatmul.mubr.bf16.gmra.mxu1 %v2456_v8 }
 0x396   : > { %v2338_v39 = vadd.f32 %v2337_v5, %v5584_v10  ;;  %v2420_v35 = vmax.f32 %v2336_v54, 0.0 }
 0x397   : > { %v2341_v58 = vpop.f32.mrf.mxu0 }
 0x398   : > { %v2421_v34 = vmax.f32 %v2338_v39, 0.0  ;;  %v2458_v37 = vpack.c.bf16 %v2420_v35, %v2418_v14  ;;  %v2342_v55 = vadd.f32 %v2341_v58, %v5586_v41 }
 0x399   : > { %v2343_v18 = vpop.f32.mrf.mxu0 }
 0x39a   : > { %v2459_v62 = vpack.c.bf16 %v2421_v34, %v2419_v51  ;;  %v2344_v3 = vadd.f32 %v2343_v18, %v5584_v10  ;;  %v2422_v43 = vmax.f32 %v2342_v55, 0.0 }
 0x39b   : > { %v2345_v44 = vpop.f32.mrf.mxu0 }
 0x39c   : > { %v2346_v49 = vadd.f32 %v2345_v44, %v5586_v41  ;;  %2729 = vmatprep.mubr.bf16.mxu1 %v2459_v62  ;;  %v2423_v21 = vmax.f32 %v2344_v3, 0.0 }
 0x39d   : > { %v2347_v59 = vpop.f32.mrf.mxu0  ;;  %2730 = vmatmul.mubr.bf16.gmra.mxu1 %v2458_v37 }
 0x39e   : > { %v2348_v23 = vadd.f32 %v2347_v59, %v5584_v10  ;;  %v2424_v46 = vmax.f32 %v2346_v49, 0.0 }
 0x39f   : > { %v2351_v28 = vpop.f32.mrf.mxu0 }
 0x3a0   : > { %v2425_v33 = vmax.f32 %v2348_v23, 0.0  ;;  %v2460_v56 = vpack.c.bf16 %v2424_v46, %v2422_v43  ;;  %v2352_v8 = vadd.f32 %v2351_v28, %v5586_v41 }
 0x3a1   : > { %v2353_v13 = vpop.f32.mrf.mxu0 }
 0x3a2   : > { %v2461_v32 = vpack.c.bf16 %v2425_v33, %v2423_v21  ;;  %v2354_v27 = vadd.f32 %v2353_v13, %v5584_v10  ;;  %v2426_v35 = vmax.f32 %v2352_v8, 0.0  ;;  %v5655_v13 = vld [vmem:[%s6225_s14] ss:$0 sm:$0xff] }
 0x3a3   : > { %v2355_v12 = vpop.f32.mrf.mxu0 }
 0x3a4   : > { %v2356_v61 = vadd.f32 %v2355_v12, %v5586_v41  ;;  %2737 = vmatprep.mubr.bf16.mxu1 %v2461_v32  ;;  %v2427_v5 = vmax.f32 %v2354_v27, 0.0 }
 0x3a5   : > { %v2357_v36 = vpop.f32.mrf.mxu0  ;;  %2738 = vmatmul.mubr.bf16.gmra.mxu1 %v2460_v56 }
 0x3a6   : > { %v2358_v24 = vadd.f32 %v2357_v36, %v5584_v10  ;;  %v2428_v54 = vmax.f32 %v2356_v61, 0.0 }
 0x3a7   : > { %v2361_v31 = vpop.f32.mrf.mxu0 }
 0x3a8   : > { %v2429_v39 = vmax.f32 %v2358_v24, 0.0  ;;  %v2462_v34 = vpack.c.bf16 %v2428_v54, %v2426_v35  ;;  %v2362_v37 = vadd.f32 %v2361_v31, %v5586_v41 }
 0x3a9   : > { %v2363_v58 = vpop.f32.mrf.mxu0 }
 0x3aa   : > { %v2463_v51 = vpack.c.bf16 %v2429_v39, %v2427_v5  ;;  %v2364_v18 = vadd.f32 %v2363_v58, %v5584_v10  ;;  %v2430_v23 = vmax.f32 %v2362_v37, 0.0 }
 0x3ab   : > { %v2365_v14 = vpop.f32.mrf.mxu0 }
 0x3ac   : > { %v2366_v62 = vadd.f32 %v2365_v14, %v5586_v41  ;;  %2745 = vmatprep.mubr.bf16.mxu1 %v2463_v51  ;;  %v2431_v55 = vmax.f32 %v2364_v18, 0.0 }
 0x3ad   : > { %v2367_v44 = vpop.f32.mrf.mxu0  ;;  %2746 = vmatmul.mubr.bf16.gmra.mxu1 %v2462_v34 }
 0x3ae   : > { %v2368_v3 = vadd.f32 %v2367_v44, %v5584_v10  ;;  %v2432_v49 = vmax.f32 %v2366_v62, 0.0 }
 0x3b0   : > { %v2433_v59 = vmax.f32 %v2368_v3, 0.0  ;;  %v2464_v28 = vpack.c.bf16 %v2432_v49, %v2430_v23 }
 0x3b2   : > { %v2465_v46 = vpack.c.bf16 %v2433_v59, %v2431_v55 }
 0x3b4   : > { %2753 = vmatprep.mubr.bf16.mxu1 %v2465_v46 }
 0x3b5   : > { %2754 = vmatmul.mubr.bf16.gmra.mxu1 %v2464_v28 }
 0x3fd   : > { %v3952_v21 = vpop.f32.mrf.mxu1 }
 0x3ff   : > { %v3953_v33 = vpop.f32.mrf.mxu1 }
 0x400   : > { %v3954_v43 = vadd.f32 %v3953_v33, %v3952_v21 }
 0x401   : > { %v3955_v41 = vpop.f32.mrf.mxu1 }
 0x402   : > { %v2636_v10 = vadd.f32 %v3954_v43, %v5655_v13 }
 0x403   : > { %v3956_v32 = vpop.f32.mrf.mxu1 }
 0x404   : > { %v3957_v56 = vadd.f32 %v3956_v32, %v3955_v41  ;;  %v2762_v8 = vsel %vm2128_vm3, %v2636_v10, -inf }
 0x405   : > { %v3958_v12 = vpop.f32.mrf.mxu1 }
 0x406   : > { %v2639_v27 = vadd.f32 %v3957_v56, %v5655_v13 }
 0x407   : > { %v3959_v61 = vpop.f32.mrf.mxu1 }
 0x408   : > { %v2763_v36 = vsel %vm2128_vm3, %v2639_v27, -inf  ;;  %v3960_v24 = vadd.f32 %v3959_v61, %v3958_v12 }
 0x409   : > { %v2764_v54 = vmax.f32 %v2762_v8, %v2763_v36  ;;  %v3961_v31 = vpop.f32.mrf.mxu1 }
 0x40a   : > { %v2644_v35 = vadd.f32 %v3960_v24, %v5655_v13 }
 0x40b   : > { %v2765_v5 = vrot.slane %v2764_v54, 4  ;;  %v3962_v39 = vpop.f32.mrf.mxu1 }
 0x40c   : > { %v3963_v58 = vadd.f32 %v3962_v39, %v3961_v31  ;;  %v2771_v37 = vsel %vm2128_vm3, %v2644_v35, -inf }
 0x40d   : > { %v2766_v51 = vmax.f32 %v2764_v54, %v2765_v5  ;;  %v3964_v34 = vpop.f32.mrf.mxu1 }
 0x40e   : > { %v2647_v14 = vadd.f32 %v3963_v58, %v5655_v13 }
 0x40f   : > { %v2767_v18 = vrot.slane %v2766_v51, 2  ;;  %v3965_v62 = vpop.f32.mrf.mxu1 }
 0x410   : > { %v2772_v44 = vsel %vm2128_vm3, %v2647_v14, -inf  ;;  %v3966_v3 = vadd.f32 %v3965_v62, %v3964_v34 }
 0x411   : > { %v2768_v49 = vmax.f32 %v2766_v51, %v2767_v18  ;;  %v2773_v55 = vmax.f32 %v2771_v37, %v2772_v44  ;;  %v3967_v59 = vpop.f32.mrf.mxu1 }
 0x412   : > { %v2652_v21 = vadd.f32 %v3966_v3, %v5655_v13 }
 0x413   : > { %v2769_v23 = vrot.slane %v2768_v49, 1  ;;  %v2774_v46 = vrot.slane %v2773_v55, 4  ;;  %v3968_v28 = vpop.f32.mrf.mxu1 }
 0x414   : > { %v3969_v33 = vadd.f32 %v3968_v28, %v3967_v59  ;;  %v2780_v24 = vsel %vm2128_vm3, %v2652_v21, -inf }
 0x415   : > { %v2770_v43 = vmax.f32 %v2768_v49, %v2769_v23  ;;  %v2775_v41 = vmax.f32 %v2773_v55, %v2774_v46  ;;  %v3970_v32 = vpop.f32.mrf.mxu1 }
 0x416   : > { %v2655_v56 = vadd.f32 %v3969_v33, %v5655_v13 }
 0x417   : > { %v2906_v12 = vsub.f32 %v2636_v10, %v2770_v43  ;;  %v2907_v61 = vsub.f32 %v2639_v27, %v2770_v43  ;;  %v2776_v8 = vrot.slane %v2775_v41, 2  ;;  %v3971_v36 = vpop.f32.mrf.mxu1 }
 0x418   : > { %v2781_v54 = vsel %vm2128_vm3, %v2655_v56, -inf  ;;  %v3972_v31 = vadd.f32 %v3971_v36, %v3970_v32 }
 0x419   : > { %v2938_v5 = vmul.f32 1.442695, %v2906_v12  ;;  %v2940_v39 = vmul.f32 1.442695, %v2907_v61  ;;  %v2777_v58 = vmax.f32 %v2775_v41, %v2776_v8  ;;  %v2782_v51 = vmax.f32 %v2780_v24, %v2781_v54  ;;  %v3973_v34 = vpop.f32.mrf.mxu1 }
 0x41a   : > { %v5670_v10 = vadd.f32 %v3972_v31, %v5655_v13 }
 0x41b   : > { %4332 = vpow2.f32 %v2938_v5  ;;  %v2778_v18 = vrot.slane %v2777_v58, 1  ;;  %v2783_v62 = vrot.slane %v2782_v51, 4  ;;  %v3974_v37 = vpop.f32.mrf.mxu1 }
 0x41c   : > { %4334 = vpow2.f32 %v2940_v39  ;;  %v3975_v27 = vadd.f32 %v3974_v37, %v3973_v34  ;;  %v2789_v33 = vsel %vm2128_vm3, %v5670_v10, -inf }
 0x41d   : > { %v2779_v44 = vmax.f32 %v2777_v58, %v2778_v18  ;;  %v2784_v3 = vmax.f32 %v2782_v51, %v2783_v62  ;;  %v3976_v49 = vpop.f32.mrf.mxu1 }
 0x41e   : > { %v5673_v55 = vadd.f32 %v3975_v27, %v5655_v13 }
 0x41f   : > { %v2908_v59 = vsub.f32 %v2644_v35, %v2779_v44  ;;  %v2909_v23 = vsub.f32 %v2647_v14, %v2779_v44  ;;  %v2785_v46 = vrot.slane %v2784_v3, 2  ;;  %v3977_v28 = vpop.f32.mrf.mxu1 }
 0x420   : > { %v2790_v43 = vsel %vm2128_vm3, %v5673_v55, -inf  ;;  %v3978_v41 = vadd.f32 %v3977_v28, %v3976_v49 }
 0x421   : > { %v2942_v32 = vmul.f32 1.442695, %v2908_v59  ;;  %v2944_v12 = vmul.f32 1.442695, %v2909_v23  ;;  %v2786_v61 = vmax.f32 %v2784_v3, %v2785_v46  ;;  %v2791_v8 = vmax.f32 %v2789_v33, %v2790_v43  ;;  %v3979_v36 = vpop.f32.mrf.mxu1 }
 0x422   : > { %v5680_v35 = vadd.f32 %v3978_v41, %v5655_v13 }
 0x423   : > { %4336 = vpow2.f32 %v2942_v32  ;;  %v2787_v24 = vrot.slane %v2786_v61, 1  ;;  %v2792_v54 = vrot.slane %v2791_v8, 4  ;;  %v3980_v31 = vpop.f32.mrf.mxu1 }
 0x424   : > { %4338 = vpow2.f32 %v2944_v12  ;;  %v3981_v14 = vadd.f32 %v3980_v31, %v3979_v36  ;;  %v2798_v44 = vsel %vm2128_vm3, %v5680_v35, -inf }
 0x425   : > { %v2788_v5 = vmax.f32 %v2786_v61, %v2787_v24  ;;  %v2793_v39 = vmax.f32 %v2791_v8, %v2792_v54  ;;  %v3982_v58 = vpop.f32.mrf.mxu1 }
 0x426   : > { %v5683_v51 = vadd.f32 %v3981_v14, %v5655_v13 }
 0x427   : > { %v2910_v34 = vsub.f32 %v2652_v21, %v2788_v5  ;;  %v2911_v18 = vsub.f32 %v2655_v56, %v2788_v5  ;;  %v2794_v62 = vrot.slane %v2793_v39, 2  ;;  %v3983_v37 = vpop.f32.mrf.mxu1 }
 0x428   : > { %v5685_v27 = vpop.eup %4332  ;;  %v2799_v3 = vsel %vm2128_vm3, %v5683_v51, -inf  ;;  %v3984_v49 = vadd.f32 %v3983_v37, %v3982_v58 }
 0x429   : > { %v5691_v59 = vpop.eup %4334  ;;  %v3002_v23 = vsel %vm2128_vm3, %v5685_v27, 0.0  ;;  %v2946_v46 = vmul.f32 1.442695, %v2910_v34  ;;  %v2948_v28 = vmul.f32 1.442695, %v2911_v18  ;;  %v2795_v21 = vmax.f32 %v2793_v39, %v2794_v62  ;;  %v3985_v56 = vpop.f32.mrf.mxu1 }
 0x42a   : > { %v3003_v33 = vsel %vm2128_vm3, %v5691_v59, 0.0  ;;  %v2800_v43 = vmax.f32 %v2798_v44, %v2799_v3  ;;  %v5698_v8 = vadd.f32 %v3984_v49, %v5655_v13 }
 0x42b   : > { %v3004_v41 = vadd.f32 %v3003_v33, %v3002_v23  ;;  %4340 = vpow2.f32 %v2946_v46  ;;  %v2796_v32 = vrot.slane %v2795_v21, 1  ;;  %v3986_v12 = vpop.f32.mrf.mxu1 }
 0x42c   : > { %4342 = vpow2.f32 %v2948_v28  ;;  %v2801_v61 = vrot.slane %v2800_v43, 4  ;;  %v3987_v36 = vadd.f32 %v3986_v12, %v3985_v56  ;;  %v2807_v44 = vsel %vm2128_vm3, %v5698_v8, -inf }
 0x42d   : > { %v3005_v24 = vrot.slane %v3004_v41, 4  ;;  %v2797_v54 = vmax.f32 %v2795_v21, %v2796_v32  ;;  %v3988_v31 = vpop.f32.mrf.mxu1 }
 0x42e   : > { %v2802_v14 = vmax.f32 %v2800_v43, %v2801_v61  ;;  %v5701_v5 = vadd.f32 %v3987_v36, %v5655_v13 }
 0x42f   : > { %v3006_v39 = vadd.f32 %v3005_v24, %v3004_v41  ;;  %v2912_v58 = vsub.f32 %v5670_v10, %v2797_v54  ;;  %v2913_v34 = vsub.f32 %v5673_v55, %v2797_v54  ;;  %v3989_v18 = vpop.f32.mrf.mxu1 }
 0x430   : > { %v5705_v62 = vpop.eup %4336  ;;  %v2803_v37 = vrot.slane %v2802_v14, 2  ;;  %v2808_v3 = vsel %vm2128_vm3, %v5701_v5, -inf  ;;  %v3990_v49 = vadd.f32 %v3989_v18, %v3988_v31  ;;  %v5723_v18 = vld [vmem:[%s6217_s6] ss:$0 sm:$0xff] }
 0x431   : > { %v5711_v23 = vpop.eup %4338  ;;  %v3007_v46 = vrot.slane %v3006_v39, 2  ;;  %v3011_v28 = vsel %vm2128_vm3, %v5705_v62, 0.0  ;;  %v2950_v10 = vmul.f32 1.442695, %v2912_v58  ;;  %v2952_v21 = vmul.f32 1.442695, %v2913_v34  ;;  %v3991_v55 = vpop.f32.mrf.mxu1 }
 0x432   : > { %v3012_v56 = vsel %vm2128_vm3, %v5711_v23, 0.0  ;;  %v2804_v33 = vmax.f32 %v2802_v14, %v2803_v37  ;;  %v2809_v43 = vmax.f32 %v2807_v44, %v2808_v3  ;;  %v5718_v12 = vadd.f32 %v3990_v49, %v5655_v13  ;;  %v6407_v14 = vld [vmem:[#allocation34_spill] sm:$0xff] }
 0x433   : > { %v3008_v41 = vadd.f32 %v3007_v46, %v3006_v39  ;;  %v3013_v32 = vadd.f32 %v3012_v56, %v3011_v28  ;;  %4344 = vpow2.f32 %v2950_v10  ;;  %v3992_v61 = vpop.f32.mrf.mxu1  ;;  %v1236_v39 = vadd.f32 %v5723_v18, %v6407_v14 }
 0x434   : > { %4346 = vpow2.f32 %v2952_v21  ;;  %v2805_v36 = vrot.slane %v2804_v33, 1  ;;  %v2810_v24 = vrot.slane %v2809_v43, 4  ;;  %v3993_v58 = vadd.f32 %v3992_v61, %v3991_v55 }
 0x435   : > { %v3009_v54 = vrot.slane %v3008_v41, 1  ;;  %v3014_v31 = vrot.slane %v3013_v32, 4  ;;  %v3994_v34 = vpop.f32.mrf.mxu1  ;;  %v2816_v46 = vsel %vm2128_vm3, %v5718_v12, -inf }
 0x436   : > { %v2806_v37 = vmax.f32 %v2804_v33, %v2805_v36  ;;  %v2811_v44 = vmax.f32 %v2809_v43, %v2810_v24  ;;  %v5730_v28 = vadd.f32 %v3993_v58, %v5655_v13 }
 0x437   : > { %v3010_v3 = vadd.f32 %v3009_v54, %v3008_v41  ;;  %v3015_v49 = vadd.f32 %v3014_v31, %v3013_v32  ;;  %v3995_v10 = vpop.f32.mrf.mxu1 }
 0x438   : > { %v5732_v21 = vpop.eup %4340  ;;  %v2914_v55 = vsub.f32 %v5680_v35, %v2806_v37  ;;  %v2915_v56 = vsub.f32 %v5683_v51, %v2806_v37  ;;  %v2812_v61 = vrot.slane %v2811_v44, 2  ;;  %v3996_v15 = vadd.f32 %v3995_v10, %v3994_v34 }
 0x439   : > { %v5736_v14 = vpop.eup %4342  ;;  %4348 = vrcp.f32 %v3010_v3  ;;  %v3016_v33 = vrot.slane %v3015_v49, 2  ;;  %v3020_v43 = vsel %vm2128_vm3, %v5732_v21, 0.0  ;;  %v2817_v41 = vsel %vm2128_vm3, %v5730_v28, -inf  ;;  %v3997_v32 = vpop.f32.mrf.mxu1  ;;  %v6408_v3 = vld [vmem:[#allocation35_spill] sm:$0xff] }
 0x43a   : > { %v3021_v36 = vsel %vm2128_vm3, %v5736_v14, 0.0  ;;  %v2954_v24 = vmul.f32 1.442695, %v2914_v55  ;;  %v2956_v35 = vmul.f32 1.442695, %v2915_v56  ;;  %v2813_v54 = vmax.f32 %v2811_v44, %v2812_v61  ;;  %v6409_v56 = vld [vmem:[#allocation36_spill] sm:$0xff] }
 0x43b   : > { %v3017_v51 = vadd.f32 %v3016_v33, %v3015_v49  ;;  %v3022_v31 = vadd.f32 %v3021_v36, %v3020_v43  ;;  %v2818_v58 = vmax.f32 %v2816_v46, %v2817_v41  ;;  %v5745_v34 = vadd.f32 %v3996_v15, %v5655_v13  ;;  %v3998_v37 = vpop.f32.mrf.mxu1 }
 0x43c   : > { %v1252_v10 = vadd.f32 %v5723_v18, %v6408_v3  ;;  %4350 = vpow2.f32 %v2954_v24  ;;  %v2814_v20 = vrot.slane %v2813_v54, 1  ;;  %v3999_v60 = vadd.f32 %v3998_v37, %v3997_v32 }
 0x43d   : > { %v3018_v53 = vrot.slane %v3017_v51, 1  ;;  %v3023_v25 = vrot.slane %v3022_v31, 4  ;;  %4352 = vpow2.f32 %v2956_v35  ;;  %v2819_v38 = vrot.slane %v2818_v58, 4  ;;  %v4000_v55 = vpop.f32.mrf.mxu1 }
 0x43e   : > { %v1268_v44 = vadd.f32 %v5723_v18, %v6409_v56  ;;  %v3195_v49 = vadd.f32 %v5217_v19, %v1236_v39  ;;  %v2815_v46 = vmax.f32 %v2813_v54, %v2814_v20  ;;  %v5753_v15 = vadd.f32 %v3999_v60, %v5655_v13 }
 0x43f   : > { %v3019_v61 = vadd.f32 %v3018_v53, %v3017_v51  ;;  %v3024_v33 = vadd.f32 %v3023_v25, %v3022_v31  ;;  %v2820_v43 = vmax.f32 %v2818_v58, %v2819_v38  ;;  %v2825_v41 = vsel %vm2128_vm3, %v5745_v34, -inf  ;;  %v4001_v32 = vpop.f32.mrf.mxu1 }
 0x440   : > { %v5757_v36 = vpop.eup %4344  ;;  %v2916_v24 = vsub.f32 %v5698_v8, %v2815_v46  ;;  %v2917_v35 = vsub.f32 %v5701_v5, %v2815_v46  ;;  %v2826_v19 = vsel %vm2128_vm3, %v5753_v15, -inf  ;;  %v4002_v20 = vadd.f32 %v4001_v32, %v4000_v55 }
 0x441   : > { %v5763_v39 = vpop.eup %4346  ;;  %4354 = vrcp.f32 %v3019_v61  ;;  %v3025_v60 = vrot.slane %v3024_v33, 2  ;;  %v3029_v38 = vsel %vm2128_vm3, %v5757_v36, 0.0  ;;  %v2821_v25 = vrot.slane %v2820_v43, 2  ;;  %v4003_v53 = vpop.f32.mrf.mxu1 }
 0x442   : > { %v3030_v54 = vsel %vm2128_vm3, %v5763_v39, 0.0  ;;  %v2958_v51 = vmul.f32 1.442695, %v2916_v24  ;;  %v2960_v8 = vmul.f32 1.442695, %v2917_v35  ;;  %v2827_v31 = vmax.f32 %v2825_v41, %v2826_v19 }
 0x443   : > { %v3026_v5 = vadd.f32 %v3025_v60, %v3024_v33  ;;  %v3031_v58 = vadd.f32 %v3030_v54, %v3029_v38  ;;  %v2822_v37 = vmax.f32 %v2820_v43, %v2821_v25  ;;  %v5770_v3 = vadd.f32 %v4002_v20, %v5655_v13  ;;  %v4004_v55 = vpop.f32.mrf.mxu1 }
 0x444   : > { %v5773_v56 = vadd.f32 %v5265_v6, %v1252_v10  ;;  %4356 = vpow2.f32 %v2958_v51  ;;  %v2828_v46 = vrot.slane %v2827_v31, 4  ;;  %v4005_v61 = vadd.f32 %v4004_v55, %v4003_v53  ;;  %v6410_v51 = vld [vmem:[#allocation53_spill] sm:$0xff] }
 0x445   : > { %v3027_v32 = vrot.slane %v3026_v5, 1  ;;  %v3032_v30 = vrot.slane %v3031_v58, 4  ;;  %4358 = vpow2.f32 %v2960_v8  ;;  %v2823_v50 = vrot.slane %v2822_v37, 1  ;;  %v4006_v24 = vpop.f32.mrf.mxu1 }
 0x446   : > { %v4349_v35 = vpop.eup %4348  ;;  %v5776_v33 = vadd.f32 %v5316_v47, %v1268_v44  ;;  %v2829_v43 = vmax.f32 %v2827_v31, %v2828_v46  ;;  %v2834_v41 = vsel %vm2128_vm3, %v5770_v3, -inf  ;;  %v5781_v19 = vadd.f32 %v4005_v61, %v5655_v13 }
 0x447   : > { %v3162_v6 = vmul.f32 %v4349_v35, %v5685_v27  ;;  %v3163_v10 = vmul.f32 %v4349_v35, %v5691_v59  ;;  %v3028_v20 = vadd.f32 %v3027_v32, %v3026_v5  ;;  %v3033_v60 = vadd.f32 %v3032_v30, %v3031_v58  ;;  %v4007_v38 = vpop.f32.mrf.mxu1 }
 0x448   : > { %v2824_v25 = vmax.f32 %v2822_v37, %v2823_v50  ;;  %v2830_v53 = vrot.slane %v2829_v43, 2  ;;  %v2835_v47 = vsel %vm2128_vm3, %v5781_v19, -inf  ;;  %v4008_v44 = vadd.f32 %v4007_v38, %v4006_v24 }
 0x449   : > { %v5787_v54 = vpop.eup %4350  ;;  %v3226_v8 = vmul.f32 %v6410_v51, %v3162_v6  ;;  %v3227_v31 = vmul.f32 %v3195_v49, %v3163_v10  ;;  %4360 = vrcp.f32 %v3028_v20  ;;  %v3034_v55 = vrot.slane %v3033_v60, 2  ;;  %v4009_v46 = vpop.f32.mrf.mxu1 }
 0x44a   : > { %v5790_v27 = vpop.eup %4352  ;;  %v3038_v30 = vsel %vm2128_vm3, %v5787_v54, 0.0  ;;  %v2918_v50 = vsub.f32 %v5718_v12, %v2824_v25  ;;  %v2919_v59 = vsub.f32 %v5730_v28, %v2824_v25  ;;  %v2831_v5 = vmax.f32 %v2829_v43, %v2830_v53 }
 0x44b   : > { %v3258_v58 = vsel %vm2128_vm3, %v3226_v8, 0.0  ;;  %v3259_v37 = vsel %vm2128_vm3, %v3227_v31, 0.0  ;;  %v3035_v61 = vadd.f32 %v3034_v55, %v3033_v60  ;;  %v3039_v49 = vsel %vm2128_vm3, %v5790_v27, 0.0  ;;  %v4010_v32 = vpop.f32.mrf.mxu1 }
 0x44c   : > { %v3260_v24 = vadd.f32 %v3259_v37, %v3258_v58  ;;  %v3040_v35 = vadd.f32 %v3039_v49, %v3038_v30  ;;  %v2962_v6 = vmul.f32 1.442695, %v2918_v50  ;;  %v2964_v10 = vmul.f32 1.442695, %v2919_v59  ;;  %v6411_v58 = vld [vmem:[#allocation52_spill] sm:$0xff] }
 0x44d   : > { %v3036_v20 = vrot.slane %v3035_v61, 1  ;;  %v2832_v38 = vrot.slane %v2831_v5, 1  ;;  %v2836_v51 = vmax.f32 %v2834_v41, %v2835_v47  ;;  %v5801_v12 = vadd.f32 %v4008_v44, %v5655_v13  ;;  %v5803_v28 = vpop.f32.mrf.mxu1 }
 0x44e   : > { %v4355_v43 = vpop.eup %4354  ;;  %v3261_v25 = vrot.slane %v3260_v24, 4  ;;  %v3041_v53 = vrot.slane %v3040_v35, 4  ;;  %4362 = vpow2.f32 %v2962_v6  ;;  %v4011_v60 = vadd.f32 %v4010_v32, %v4009_v46 }
 0x44f   : > { %v3164_v8 = vmul.f32 %v4355_v43, %v5705_v62  ;;  %v3165_v31 = vmul.f32 %v4355_v43, %v5711_v23  ;;  %v3037_v55 = vadd.f32 %v3036_v20, %v3035_v61  ;;  %4364 = vpow2.f32 %v2964_v10  ;;  %v5807_v30 = vpop.f32.mrf.mxu1 }
 0x450   : > { %v3262_v50 = vadd.f32 %v3261_v25, %v3260_v24  ;;  %v3042_v41 = vadd.f32 %v3041_v53, %v3040_v35  ;;  %v2833_v47 = vmax.f32 %v2831_v5, %v2832_v38  ;;  %v2837_v44 = vrot.slane %v2836_v51, 4 }
 0x451   : > { %v5809_v59 = vpop.eup %4356  ;;  %v3228_v37 = vmul.f32 %v6411_v58, %v3164_v8  ;;  %v3229_v49 = vmul.f32 %v5214_v1, %v3165_v31  ;;  %4366 = vrcp.f32 %v3037_v55  ;;  %v2843_v62 = vsel %vm2128_vm3, %v5801_v12, -inf  ;;  %v5815_v46 = vpop.f32.mrf.mxu1 }
 0x452   : > { %v5817_v23 = vpop.eup %4358  ;;  %v3263_v61 = vrot.slane %v3262_v50, 2  ;;  %v3043_v32 = vrot.slane %v3042_v41, 2  ;;  %v3047_v5 = vsel %vm2128_vm3, %v5809_v59, 0.0  ;;  %v2920_v24 = vsub.f32 %v5745_v34, %v2833_v47 }
 0x453   : > { %v3267_v35 = vsel %vm2128_vm3, %v3228_v37, 0.0  ;;  %v3268_v6 = vsel %vm2128_vm3, %v3229_v49, 0.0  ;;  %v3048_v1 = vsel %vm2128_vm3, %v5817_v23, 0.0  ;;  %v2921_v10 = vsub.f32 %v5753_v15, %v2833_v47  ;;  %v5827_v20 = vpop.f32.mrf.mxu1 }
 0x454   : > { %v3264_v38 = vadd.f32 %v3263_v61, %v3262_v50  ;;  %v3269_v43 = vadd.f32 %v3268_v6, %v3267_v35  ;;  %v3044_v25 = vadd.f32 %v3043_v32, %v3042_v41  ;;  %v3049_v53 = vadd.f32 %v3048_v1, %v3047_v5 }
 0x455   : > { %v2966_v8 = vmul.f32 1.442695, %v2920_v24  ;;  %v2968_v31 = vmul.f32 1.442695, %v2921_v10  ;;  %v2838_v55 = vmax.f32 %v2836_v51, %v2837_v44  ;;  %v5830_v34 = vadd.f32 %v4011_v60, %v5655_v13  ;;  %v5832_v58 = vpop.f32.mrf.mxu1 }
 0x456   : > { %v4361_v37 = vpop.eup %4360  ;;  %v3265_v49 = vrot.slane %v3264_v38, 1  ;;  %v3270_v2 = vrot.slane %v3269_v43, 4  ;;  %v3045_v48 = vrot.slane %v3044_v25, 1  ;;  %v3050_v42 = vrot.slane %v3049_v53, 4 }
 0x457   : > { %v3166_v15 = vmul.f32 %v4361_v37, %v5732_v21  ;;  %v3167_v50 = vmul.f32 %v4361_v37, %v5736_v14  ;;  %4368 = vpow2.f32 %v2966_v8  ;;  %v2839_v41 = vrot.slane %v2838_v55, 2  ;;  %v5836_v47 = vpop.f32.mrf.mxu1 }
 0x458   : > { %v3266_v61 = vadd.f32 %v3265_v49, %v3264_v38  ;;  %v3271_v51 = vadd.f32 %v3270_v2, %v3269_v43  ;;  %v3046_v44 = vadd.f32 %v3045_v48, %v3044_v25  ;;  %v3051_v60 = vadd.f32 %v3050_v42, %v3049_v53 }
 0x459   : > { %v3230_v32 = vmul.f32 %v5243_v52, %v3166_v15  ;;  %v3231_v5 = vmul.f32 %v5773_v56, %v3167_v50  ;;  %4370 = vpow2.f32 %v2968_v31  ;;  %v2840_v24 = vmax.f32 %v2838_v55, %v2839_v41  ;;  %v5840_v35 = vpop.f32.mrf.mxu1 }
 0x45a   : > { %v3402_v6 = vpack.c.bf16 %v3266_v61, %v3266_v61  ;;  %v3272_v21 = vrot.slane %v3271_v51, 2  ;;  %4372 = vrcp.f32 %v3046_v44  ;;  %v3052_v14 = vrot.slane %v3051_v60, 2 }
 0x45b   : > { %v5842_v1 = vpop.eup %4362  ;;  %v3276_v10 = vsel %vm2128_vm3, %v3230_v32, 0.0  ;;  %v3277_v48 = vsel %vm2128_vm3, %v3231_v5, 0.0  ;;  %v2841_v2 = vrot.slane %v2840_v24, 1  ;;  %v2844_v52 = vsel %vm2128_vm3, %v5830_v34, -inf  ;;  %v5848_v42 = vpop.f32.mrf.mxu1 }
 0x45c   : > { %v5850_v56 = vpop.eup %4364  ;;  %v3449_v38 = vunpack.c.l.b16 %v3402_v6  ;;  %v3273_v43 = vadd.f32 %v3272_v21, %v3271_v51  ;;  %v3278_v25 = vadd.f32 %v3277_v48, %v3276_v10  ;;  %v3053_v53 = vadd.f32 %v3052_v14, %v3051_v60 }
 0x45d   : > { %v3056_v8 = vsel %vm2128_vm3, %v5842_v1, 0.0  ;;  %v3057_v31 = vsel %vm2128_vm3, %v5850_v56, 0.0  ;;  %v2842_v55 = vmax.f32 %v2840_v24, %v2841_v2  ;;  %v2845_v37 = vmax.f32 %v2843_v62, %v2844_v52  ;;  %v5856_v49 = vpop.f32.mrf.mxu1 }
 0x45e   : > { %v4367_v15 = vpop.eup %4366  ;;  %v3274_v50 = vrot.slane %v3273_v43, 1  ;;  %v3279_v41 = vrot.slane %v3278_v25, 4  ;;  %v3054_v61 = vrot.slane %v3053_v53, 1  ;;  %v3058_v44 = vadd.f32 %v3057_v31, %v3056_v8 }
 0x45f   : > { %v3168_v32 = vmul.f32 %v4367_v15, %v5757_v36  ;;  %v3169_v51 = vmul.f32 %v4367_v15, %v5763_v39  ;;  %v2922_v60 = vsub.f32 %v5770_v3, %v2842_v55  ;;  %v2923_v5 = vsub.f32 %v5781_v19, %v2842_v55  ;;  %v5862_v6 = vpop.f32.mrf.mxu1 }
 0x460   : > { %v3275_v21 = vadd.f32 %v3274_v50, %v3273_v43  ;;  %v3280_v24 = vadd.f32 %v3279_v41, %v3278_v25  ;;  %v3055_v62 = vadd.f32 %v3054_v61, %v3053_v53  ;;  %v3059_v14 = vrot.slane %v3058_v44, 4 }
 0x461   : > { %v3232_v10 = vmul.f32 %v5233_v17, %v3168_v32  ;;  %v3233_v48 = vmul.f32 %v5262_v40, %v3169_v51  ;;  %v2970_v2 = vmul.f32 1.442695, %v2922_v60  ;;  %v2972_v52 = vmul.f32 1.442695, %v2923_v5  ;;  %v5866_v8 = vpop.f32.mrf.mxu1 }
 0x462   : > { %v3403_v36 = vpack.c.bf16 %v3275_v21, %v3275_v21  ;;  %v3281_v39 = vrot.slane %v3280_v24, 2  ;;  %4374 = vrcp.f32 %v3055_v62  ;;  %v3060_v3 = vadd.f32 %v3059_v14, %v3058_v44 }
 0x463   : > { %v3285_v19 = vsel %vm2128_vm3, %v3232_v10, 0.0  ;;  %v3286_v31 = vsel %vm2128_vm3, %v3233_v48, 0.0  ;;  %4376 = vpow2.f32 %v2970_v2  ;;  %v2846_v43 = vrot.slane %v2845_v37, 4  ;;  %v5872_v15 = vpop.f32.mrf.mxu1 }
 0x464   : > { %v5870_v25 = vpop.eup %4368  ;;  %v3450_v53 = vunpack.c.l.b16 %v3403_v36  ;;  %v3282_v17 = vadd.f32 %v3281_v39, %v3280_v24  ;;  %v3287_v55 = vadd.f32 %v3286_v31, %v3285_v19  ;;  %v3061_v40 = vrot.slane %v3060_v3, 2 }
 0x465   : > { %v3065_v50 = vsel %vm2128_vm3, %v5870_v25, 0.0  ;;  %4378 = vpow2.f32 %v2972_v52  ;;  %v2847_v41 = vmax.f32 %v2845_v37, %v2846_v43  ;;  %v4014_v61 = vadd.f32 %v5807_v30, %v5803_v28  ;;  %v5887_v48 = vpop.f32.mrf.mxu1 }
 0x466   : > { %v5878_v44 = vpop.eup %4370  ;;  %v3466_v32 = vsel %vm3465_vm4, %v3450_v53, %v3449_v38  ;;  %v3283_v51 = vrot.slane %v3282_v17, 1  ;;  %v3288_v60 = vrot.slane %v3287_v55, 4  ;;  %v3062_v5 = vadd.f32 %v3061_v40, %v3060_v3 }
 0x467   : > { %v4373_v21 = vpop.eup %4372  ;;  %v3066_v24 = vsel %vm2128_vm3, %v5878_v44, 0.0  ;;  %v2848_v62 = vrot.slane %v2847_v41, 2  ;;  %v4017_v14 = vadd.f32 %v5827_v20, %v5815_v46  ;;  %v5890_v36 = vadd.f32 %v4014_v61, %v5655_v13  ;;  %v5899_v40 = vpop.f32.mrf.mxu1 }
 0x468   : > { %v3284_v37 = vadd.f32 %v3283_v51, %v3282_v17  ;;  %v3289_v10 = vadd.f32 %v3288_v60, %v3287_v55  ;;  %v3170_v28 = vmul.f32 %v4373_v21, %v5787_v54  ;;  %v3171_v30 = vmul.f32 %v4373_v21, %v5790_v27 }
 0x469   : > { %v3063_v38 = vrot.slane %v3062_v5, 1  ;;  %v3067_v2 = vadd.f32 %v3066_v24, %v3065_v50  ;;  %v2849_v52 = vmax.f32 %v2847_v41, %v2848_v62  ;;  %v5895_v54 = vadd.f32 %v4017_v14, %v5655_v13 }
 0x46a   : > { %v3404_v39 = vpack.c.bf16 %v3284_v37, %v3284_v37  ;;  %v3290_v3 = vrot.slane %v3289_v10, 2  ;;  %v3234_v19 = vmul.f32 %v5294_v57, %v3170_v28  ;;  %v3235_v46 = vmul.f32 %v5776_v33, %v3171_v30  ;;  %v5914_v30 = vpop.f32.mrf.mxu1 }
 0x46b   : > { %v3064_v20 = vadd.f32 %v3063_v38, %v3062_v5  ;;  %v3068_v31 = vrot.slane %v3067_v2, 4  ;;  %v2850_v43 = vrot.slane %v2849_v52, 1  ;;  %v2853_v51 = vsel %vm2128_vm3, %v5895_v54, -inf }
 0x46c   : > { %v3451_v27 = vunpack.c.l.b16 %v3404_v39  ;;  %v3291_v53 = vadd.f32 %v3290_v3, %v3289_v10  ;;  %v3294_v17 = vsel %vm2128_vm3, %v3234_v19, 0.0  ;;  %v3295_v55 = vsel %vm2128_vm3, %v3235_v46, 0.0 }
 0x46d   : > { %v3296_v50 = vadd.f32 %v3295_v55, %v3294_v17  ;;  %4380 = vrcp.f32 %v3064_v20  ;;  %v3069_v41 = vadd.f32 %v3068_v31, %v3067_v2  ;;  %v2851_v57 = vmax.f32 %v2849_v52, %v2850_v43 }
 0x46e   : > { %v5902_v33 = vsel %vm3467_vm5, %v3451_v27, %v3466_v32  ;;  %v3292_v61 = vrot.slane %v3291_v53, 1  ;;  %v2852_v32 = vsel %vm2128_vm3, %v5890_v36, -inf }
 0x46f   : > { %v4375_v60 = vpop.eup %4374  ;;  %v3297_v5 = vrot.slane %v3296_v50, 4  ;;  %v3070_v21 = vrot.slane %v3069_v41, 2  ;;  %v2924_v24 = vsub.f32 %v5801_v12, %v2851_v57  ;;  %v2925_v62 = vsub.f32 %v5830_v34, %v2851_v57 }
 0x470   : > { %v5908_v14 = vpop.eup %4376  ;;  %v3293_v37 = vadd.f32 %v3292_v61, %v3291_v53  ;;  %v3172_v10 = vmul.f32 %v4375_v60, %v5809_v59  ;;  %v3173_v28 = vmul.f32 %v4375_v60, %v5817_v23  ;;  %v2854_v19 = vmax.f32 %v2852_v32, %v2853_v51 }
 0x471   : > { %v3298_v38 = vadd.f32 %v3297_v5, %v3296_v50  ;;  %v3071_v2 = vadd.f32 %v3070_v21, %v3069_v41  ;;  %v3074_v52 = vsel %vm2128_vm3, %v5908_v14, 0.0  ;;  %v2974_v12 = vmul.f32 1.442695, %v2924_v24 }
 0x472   : > { %v5918_v39 = vpop.eup %4378  ;;  %v3236_v34 = vmul.f32 %v5284_v45, %v3172_v10  ;;  %v3237_v3 = vmul.f32 %v5313_v63, %v3173_v28  ;;  %v2976_v59 = vmul.f32 1.442695, %v2925_v62  ;;  %v4020_v53 = vadd.f32 %v5836_v47, %v5832_v58  ;;  %v4328_v45 = vld [vmem:[%s6226_s15 + $0x18] sm:$0xff]   ;;  %v5931_v63 = vpop.f32.mrf.mxu1  ;;  %v6412_v47 = vld [vmem:[#allocation37_spill] sm:$0xff] }
 0x473   : > { %v3299_v23 = vrot.slane %v3298_v38, 2  ;;  %v3072_v46 = vrot.slane %v3071_v2, 1  ;;  %v3075_v20 = vsel %vm2128_vm3, %v5918_v39, 0.0  ;;  %4382 = vpow2.f32 %v2974_v12  ;;  %v4329_v28 = vld [vmem:[%s6226_s15 + $0x10] sm:$0xff]  }
 0x474   : > { %v3303_v31 = vsel %vm2128_vm3, %v3236_v34, 0.0  ;;  %v3304_v43 = vsel %vm2128_vm3, %v3237_v3, 0.0  ;;  %v3076_v27 = vadd.f32 %v3075_v20, %v3074_v52  ;;  %4384 = vpow2.f32 %v2976_v59 }
 0x475   : > { %v3300_v17 = vadd.f32 %v3299_v23, %v3298_v38  ;;  %v3305_v55 = vadd.f32 %v3304_v43, %v3303_v31  ;;  %v3073_v50 = vadd.f32 %v3072_v46, %v3071_v2  ;;  %v3405_v41 = vpack.c.bf16 %v3293_v37, %v3293_v37  ;;  %v5941_v37 = vpop.f32.mrf.mxu1 }
 0x476   : > { %v3077_v57 = vrot.slane %v3076_v27, 4  ;;  %v2855_v61 = vrot.slane %v2854_v19, 4  ;;  %v4473_v5 = vmov 0.0   ;;  %v4023_v58 = vadd.f32 %v5848_v42, %v5840_v35 }
 0x477   : > { %v3301_v51 = vrot.slane %v3300_v17, 1  ;;  %v3306_v60 = vrot.slane %v3305_v55, 4  ;;  %4386 = vrcp.f32 %v3073_v50  ;;  %4191 = vmatprep.subr.bf16.mxu0 %v4473_v5  ;;  %v1284_v21 = vadd.f32 %v5723_v18, %v6412_v47  ;;  %4199 = vmatprep.mubr.msk.bf16.mxu0 %vm4474_vm9, %v4473_v5 }
 0x478   : > { %v3078_v24 = vadd.f32 %v3077_v57, %v3076_v27  ;;  %v2856_v62 = vmax.f32 %v2854_v19, %v2855_v61  ;;  %v5939_v10 = vadd.f32 %v4020_v53, %v5655_v13  ;;  %4192 = vmatpush3.bf16.msra.mxu0 %v4328_v45  ;;  %v5947_v2 = vadd.f32 %v4023_v58, %v5655_v13 }
 0x479   : > { %v3302_v32 = vadd.f32 %v3301_v51, %v3300_v17  ;;  %v3307_v38 = vadd.f32 %v3306_v60, %v3305_v55  ;;  %v4026_v18 = vadd.f32 %v5862_v6, %v5856_v49  ;;  %4193 = vmatprep.subr.bf16.mxu0 %v4473_v5  ;;  %v3207_v42 = vadd.f32 %v5370_v4, %v1284_v21  ;;  %v5963_v6 = vpop.f32.mrf.mxu1 }
 0x47a   : > { %v4381_v35 = vpop.eup %4380  ;;  %v3079_v52 = vrot.slane %v3078_v24, 2  ;;  %v2857_v12 = vrot.slane %v2856_v62, 2  ;;  %v4029_v34 = vadd.f32 %v5872_v15, %v5866_v8  ;;  %v5955_v3 = vunpack.c.l.b16 %v3405_v41  ;;  %v4330_v8 = vld [vmem:[%s6226_s15 + $0x8] sm:$0xff]  }
 0x47b   : > { %v3308_v59 = vrot.slane %v3307_v38, 2  ;;  %v3174_v19 = vmul.f32 %v4381_v35, %v5842_v1  ;;  %v3175_v23 = vmul.f32 %v4381_v35, %v5850_v56  ;;  %v2861_v49 = vsel %vm2128_vm3, %v5939_v10, -inf  ;;  %v4039_v58 = vpop.f32.mrf.mxu1 }
 0x47c   : > { %v3080_v46 = vadd.f32 %v3079_v52, %v3078_v24  ;;  %v2858_v20 = vmax.f32 %v2856_v62, %v2857_v12  ;;  %v2862_v4 = vsel %vm2128_vm3, %v5947_v2, -inf  ;;  %4194 = vmatpush3.bf16.msra.mxu0 %v4329_v28  ;;  %v3406_v15 = vpack.c.bf16 %v3302_v32, %v3302_v32 }
 0x47d   : > { %v3238_v1 = vmul.f32 %v5351_v11, %v3174_v19  ;;  %v3239_v31 = vmul.f32 %v3207_v42, %v3175_v23  ;;  %v5970_v56 = vadd.f32 %v4026_v18, %v5655_v13  ;;  %4195 = vmatprep.subr.bf16.mxu0 %v4473_v5  ;;  %v2863_v53 = vmax.f32 %v2861_v49, %v2862_v4  ;;  %v4040_v23 = vpop.f32.mrf.mxu1 }
 0x47e   : > { %v3081_v43 = vrot.slane %v3080_v46, 1  ;;  %v2859_v27 = vrot.slane %v2858_v20, 1  ;;  %v5974_v45 = vadd.f32 %v4029_v34, %v5655_v13  ;;  %v3309_v17 = vadd.f32 %v3308_v59, %v3307_v38  ;;  %v4331_v13 = vld [vmem:[%s6226_s15] sm:$0xff]  }
 0x47f   : > { %v3312_v55 = vsel %vm2128_vm3, %v3238_v1, 0.0  ;;  %v3313_v50 = vsel %vm2128_vm3, %v3239_v31, 0.0  ;;  %v4032_v11 = vadd.f32 %v5899_v40, %v5887_v48  ;;  %v2864_v60 = vrot.slane %v2863_v53, 4 }
 0x480   : > { %v5980_v41 = vpop.eup %4382  ;;  %v3314_v57 = vadd.f32 %v3313_v50, %v3312_v55  ;;  %v3082_v61 = vadd.f32 %v3081_v43, %v3080_v46  ;;  %v2860_v51 = vmax.f32 %v2858_v20, %v2859_v27  ;;  %4196 = vmatpush3.bf16.msra.mxu0 %v4330_v8  ;;  %v5985_v47 = vunpack.c.l.b16 %v3406_v15  ;;  %v6014_v55 = vpop.f32.mrf.mxu1 }
 0x481   : > { %v3083_v21 = vsel %vm2128_vm3, %v5980_v41, 0.0  ;;  %v2870_v48 = vsel %vm2128_vm3, %v5970_v56, -inf  ;;  %v2871_v40 = vsel %vm2128_vm3, %v5974_v45, -inf  ;;  %4197 = vmatprep.subr.bf16.mxu0 %v4473_v5  ;;  %v5994_v24 = vpop.eup %4384  ;;  %v3310_v38 = vrot.slane %v3309_v17, 1 }
 0x482   : > { %v3315_v62 = vrot.slane %v3314_v57, 4  ;;  %4388 = vrcp.f32 %v3082_v61  ;;  %v2926_v28 = vsub.f32 %v5890_v36, %v2860_v51  ;;  %v2927_v32 = vsub.f32 %v5895_v54, %v2860_v51  ;;  %v6005_v54 = vld [vmem:[%s6225_s14] ss:$0 sm:$0xff] }
 0x483   : > { %v3084_v18 = vsel %vm2128_vm3, %v5994_v24, 0.0  ;;  %v2865_v35 = vmax.f32 %v2863_v53, %v2864_v60  ;;  %v2872_v42 = vmax.f32 %v2870_v48, %v2871_v40  ;;  %v6008_v49 = vadd.f32 %v6005_v54, %v4032_v11 }
 0x484   : > { %v4387_v52 = vpop.eup %4386  ;;  %v3316_v12 = vadd.f32 %v3315_v62, %v3314_v57  ;;  %v3085_v34 = vadd.f32 %v3084_v18, %v3083_v21  ;;  %v2978_v59 = vmul.f32 1.442695, %v2926_v28  ;;  %v2980_v19 = vmul.f32 1.442695, %v2927_v32  ;;  %4198 = vmatpush3.bf16.msra.mxu0 %v4331_v13  ;;  %v4043_v32 = vpop.f32.mrf.mxu1 }
 0x485   : > { %v3176_v46 = vmul.f32 %v4387_v52, %v5870_v25  ;;  %v3177_v20 = vmul.f32 %v4387_v52, %v5878_v44  ;;  %v2866_v36 = vrot.slane %v2865_v35, 2  ;;  %v2873_v15 = vrot.slane %v2872_v42, 4 }
 0x486   : > { %v3317_v4 = vrot.slane %v3316_v12, 2  ;;  %v3086_v8 = vrot.slane %v3085_v34, 4  ;;  %4390 = vpow2.f32 %v2978_v59  ;;  %v4035_v53 = vadd.f32 %v5931_v63, %v5914_v30 }
 0x487   : > { %v3240_v1 = vmul.f32 %v5341_v16, %v3176_v46  ;;  %v3241_v31 = vmul.f32 %v5367_v29, %v3177_v20  ;;  %4392 = vpow2.f32 %v2980_v19  ;;  %v2867_v25 = vmax.f32 %v2865_v35, %v2866_v36  ;;  %v4045_v20 = vpop.f32.mrf.mxu1 }
 0x488   : > { %v3318_v44 = vadd.f32 %v3317_v4, %v3316_v12  ;;  %v3087_v43 = vadd.f32 %v3086_v8, %v3085_v34  ;;  %v2874_v27 = vmax.f32 %v2872_v42, %v2873_v15  ;;  %v4038_v16 = vadd.f32 %v5963_v6, %v5941_v37 }
 0x489   : > { %v3321_v50 = vsel %vm2128_vm3, %v3240_v1, 0.0  ;;  %v3322_v11 = vsel %vm2128_vm3, %v3241_v31, 0.0  ;;  %v2868_v57 = vrot.slane %v2867_v25, 1  ;;  %v6020_v13 = vadd.f32 %v3310_v38, %v3309_v17 }
 0x48a   : > { %v3319_v61 = vrot.slane %v3318_v44, 1  ;;  %v3323_v29 = vadd.f32 %v3322_v11, %v3321_v50  ;;  %v3088_v51 = vrot.slane %v3087_v43, 2  ;;  %v2875_v60 = vrot.slane %v2874_v27, 2 }
 0x48b   : > { %v2869_v21 = vmax.f32 %v2867_v25, %v2868_v57  ;;  %v6023_v48 = vadd.f32 %v6005_v54, %v4035_v53  ;;  %v6026_v30 = vadd.f32 %v6005_v54, %v4038_v16  ;;  %v4041_v28 = vadd.f32 %v4040_v23, %v4039_v58 }
 0x48c   : > { %v3324_v63 = vrot.slane %v3323_v29, 4  ;;  %v3089_v40 = vadd.f32 %v3088_v51, %v3087_v43  ;;  %v2876_v62 = vmax.f32 %v2874_v27, %v2875_v60  ;;  %v2879_v17 = vsel %vm2128_vm3, %v6008_v49, -inf }
 0x48d   : > { %v2928_v37 = vsub.f32 %v5939_v10, %v2869_v21  ;;  %v2929_v6 = vsub.f32 %v5947_v2, %v2869_v21  ;;  %v2880_v38 = vsel %vm2128_vm3, %v6023_v48, -inf  ;;  %v6034_v18 = vadd.f32 %v3319_v61, %v3318_v44 }
 0x48e   : > { %v3325_v35 = vadd.f32 %v3324_v63, %v3323_v29  ;;  %v3090_v42 = vrot.slane %v3089_v40, 1  ;;  %v2877_v52 = vrot.slane %v2876_v62, 1  ;;  %v2881_v58 = vmax.f32 %v2879_v17, %v2880_v38 }
 0x48f   : > { %v4389_v12 = vpop.eup %4388  ;;  %v2982_v34 = vmul.f32 1.442695, %v2928_v37  ;;  %v2984_v59 = vmul.f32 1.442695, %v2929_v6  ;;  %v2888_v10 = vsel %vm2128_vm3, %v6026_v30, -inf  ;;  %v6041_v46 = vadd.f32 %v6005_v54, %v4041_v28 }
 0x490   : > { %v3326_v19 = vrot.slane %v3325_v35, 2  ;;  %v3178_v2 = vmul.f32 %v4389_v12, %v5908_v14  ;;  %v3179_v23 = vmul.f32 %v4389_v12, %v5918_v39  ;;  %v3091_v36 = vadd.f32 %v3090_v42, %v3089_v40 }
 0x491   : > { %4394 = vpow2.f32 %v2982_v34  ;;  %v2878_v4 = vmax.f32 %v2876_v62, %v2877_v52  ;;  %v2882_v8 = vrot.slane %v2881_v58, 4  ;;  %v2889_v29 = vsel %vm2128_vm3, %v6041_v46, -inf }
 0x492   : > { %v3327_v15 = vadd.f32 %v3326_v19, %v3325_v35  ;;  %v3242_v1 = vmul.f32 %v5404_v26, %v3178_v2  ;;  %v3243_v31 = vmul.f32 %v5431_v7, %v3179_v23  ;;  %4396 = vpow2.f32 %v2984_v59  ;;  %v4046_v7 = vpop.f32.mrf.mxu1 }
 0x493   : > { %v6045_v25 = vpop.eup %4390  ;;  %4398 = vrcp.f32 %v3091_v36  ;;  %v2930_v14 = vsub.f32 %v5970_v56, %v2878_v4  ;;  %v2931_v39 = vsub.f32 %v5974_v45, %v2878_v4  ;;  %v2883_v44 = vmax.f32 %v2881_v58, %v2882_v8 }
 0x494   : > { %v6049_v43 = vpop.eup %4392  ;;  %v3328_v27 = vrot.slane %v3327_v15, 1  ;;  %v3330_v53 = vsel %vm2128_vm3, %v3242_v1, 0.0  ;;  %v3331_v50 = vsel %vm2128_vm3, %v3243_v31, 0.0  ;;  %v3092_v26 = vsel %vm2128_vm3, %v6045_v25, 0.0 }
 0x495   : > { %v3332_v11 = vadd.f32 %v3331_v50, %v3330_v53  ;;  %v3093_v57 = vsel %vm2128_vm3, %v6049_v43, 0.0  ;;  %v2986_v16 = vmul.f32 1.442695, %v2930_v14  ;;  %v2988_v56 = vmul.f32 1.442695, %v2931_v39 }
 0x496   : > { %v3094_v61 = vadd.f32 %v3093_v57, %v3092_v26  ;;  %v2884_v45 = vrot.slane %v2883_v44, 2  ;;  %v4044_v51 = vadd.f32 %v4043_v32, %v6014_v55  ;;  %v2890_v21 = vmax.f32 %v2888_v10, %v2889_v29 }
 0x497   : > { %v3333_v60 = vrot.slane %v3332_v11, 4  ;;  %4400 = vpow2.f32 %v2986_v16  ;;  %v4047_v63 = vadd.f32 %v4046_v7, %v4045_v20  ;;  %v3407_v37 = vpack.c.bf16 %v6020_v13, %v6020_v13 }
 0x498   : > { %v3095_v40 = vrot.slane %v3094_v61, 4  ;;  %4402 = vpow2.f32 %v2988_v56  ;;  %v2885_v62 = vmax.f32 %v2883_v44, %v2884_v45  ;;  %v6061_v28 = vadd.f32 %v6005_v54, %v4044_v51 }
 0x499   : > { %v2891_v6 = vrot.slane %v2890_v21, 4  ;;  %v6066_v17 = vadd.f32 %v6005_v54, %v4047_v63  ;;  %v3408_v55 = vpack.c.bf16 %v6034_v18, %v6034_v18  ;;  %v3334_v32 = vadd.f32 %v3333_v60, %v3332_v11 }
 0x49a   : > { %v3096_v38 = vadd.f32 %v3095_v40, %v3094_v61  ;;  %v2886_v35 = vrot.slane %v2885_v62, 1  ;;  %v2897_v52 = vsel %vm2128_vm3, %v6061_v28, -inf  ;;  %v3470_v54 = vsel %vm3469_vm6, %v5955_v3, %v5902_v33 }
 0x49b   : > { %v2892_v42 = vmax.f32 %v2890_v21, %v2891_v6  ;;  %v2898_v13 = vsel %vm2128_vm3, %v6066_v17, -inf  ;;  %v3329_v59 = vadd.f32 %v3328_v27, %v3327_v15  ;;  %v3454_v58 = vunpack.c.l.b16 %v3407_v37 }
 0x49c   : > { %v3097_v12 = vrot.slane %v3096_v38, 2  ;;  %v2887_v34 = vmax.f32 %v2885_v62, %v2886_v35  ;;  %v2899_v18 = vmax.f32 %v2897_v52, %v2898_v13  ;;  %v3472_v5 = vsel %vm3471_vm7, %v5985_v47, %v3470_v54 }
 0x49d   : > { %v2893_v10 = vrot.slane %v2892_v42, 2  ;;  %v3455_v33 = vunpack.c.l.b16 %v3408_v55  ;;  %v3335_v3 = vrot.slane %v3334_v32, 2  ;;  %v3409_v39 = vpack.c.bf16 %v3329_v59, %v3329_v59 }
 0x49e   : > { %v6080_v19 = vpop.eup %4394  ;;  %v3098_v2 = vadd.f32 %v3097_v12, %v3096_v38  ;;  %v2932_v23 = vsub.f32 %v6008_v49, %v2887_v34  ;;  %v2933_v20 = vsub.f32 %v6023_v48, %v2887_v34  ;;  %v2900_v36 = vrot.slane %v2899_v18, 4 }
 0x49f   : > { %v6084_v4 = vpop.eup %4396  ;;  %v3101_v8 = vsel %vm2128_vm3, %v6080_v19, 0.0  ;;  %v2894_v15 = vmax.f32 %v2892_v42, %v2893_v10  ;;  %v3336_v7 = vadd.f32 %v3335_v3, %v3334_v32  ;;  %v3456_v21 = vunpack.c.l.b16 %v3409_v39 }
 0x4a0   : > { %v4399_v1 = vpop.eup %4398  ;;  %v3099_v47 = vrot.slane %v3098_v2, 1  ;;  %v3102_v31 = vsel %vm2128_vm3, %v6084_v4, 0.0  ;;  %v2990_v14 = vmul.f32 1.442695, %v2932_v23  ;;  %v2992_v27 = vmul.f32 1.442695, %v2933_v20 }
 0x4a1   : > { %v3180_v49 = vmul.f32 %v4399_v1, %v5980_v41  ;;  %v3181_v48 = vmul.f32 %v4399_v1, %v5994_v24  ;;  %v3103_v44 = vadd.f32 %v3102_v31, %v3101_v8  ;;  %v2895_v50 = vrot.slane %v2894_v15, 1 }
 0x4a2   : > { %v3100_v53 = vadd.f32 %v3099_v47, %v3098_v2  ;;  %4404 = vpow2.f32 %v2990_v14  ;;  %v2901_v26 = vmax.f32 %v2899_v18, %v2900_v36  ;;  %v3474_v41 = vsel %vm3473_vm8, %v3454_v58, %v3472_v5 }
 0x4a3   : > { %v3244_v11 = vmul.f32 %v5394_v22, %v3180_v49  ;;  %v3245_v57 = vmul.f32 %v5419_v0, %v3181_v48  ;;  %v3104_v16 = vrot.slane %v3103_v44, 4  ;;  %v2896_v61 = vmax.f32 %v2894_v15, %v2895_v50  ;;  %v6413_v50 = vld [vmem:[#allocation18_spill] sm:$0xff] }
 0x4a4   : > { %v6094_v56 = vpop.eup %4400  ;;  %4406 = vrcp.f32 %v3100_v53  ;;  %v2902_v45 = vrot.slane %v2901_v26, 2  ;;  %v3337_v55 = vrot.slane %v3336_v7, 1  ;;  %v3476_v35 = vsel %vm3475_vm10, %v3455_v33, %v3474_v41 }
 0x4a5   : > { %v6097_v24 = vpop.eup %4402  ;;  %v3339_v29 = vsel %vm2128_vm3, %v3244_v11, 0.0  ;;  %v3340_v51 = vsel %vm2128_vm3, %v3245_v57, 0.0  ;;  %v3105_v60 = vadd.f32 %v3104_v16, %v3103_v44  ;;  %v3110_v22 = vsel %vm2128_vm3, %v6094_v56, 0.0 }
 0x4a6   : > { %v3341_v63 = vadd.f32 %v3340_v51, %v3339_v29  ;;  %v3111_v0 = vsel %vm2128_vm3, %v6097_v24, 0.0  ;;  %4408 = vpow2.f32 %v2992_v27  ;;  %v2934_v37 = vsub.f32 %v6026_v30, %v2896_v61 }
 0x4a7   : > { %v3106_v40 = vrot.slane %v3105_v60, 2  ;;  %v3112_v62 = vadd.f32 %v3111_v0, %v3110_v22  ;;  %v2935_v6 = vsub.f32 %v6041_v46, %v2896_v61  ;;  %v2903_v38 = vmax.f32 %v2901_v26, %v2902_v45 }
 0x4a8   : > { %v3342_v32 = vrot.slane %v3341_v63, 4  ;;  %v2994_v13 = vmul.f32 1.442695, %v2934_v37  ;;  %v6109_v18 = vsel %vm3477_vm11, %v3456_v21, %v3476_v35  ;;  %v3338_v10 = vadd.f32 %v3337_v55, %v3336_v7 }
 0x4a9   : > { %v3107_v42 = vadd.f32 %v3106_v40, %v3105_v60  ;;  %v3113_v52 = vrot.slane %v3112_v62, 4  ;;  %v2996_v54 = vmul.f32 1.442695, %v2935_v6  ;;  %v2904_v34 = vrot.slane %v2903_v38, 1 }
 0x4aa   : > { %v3343_v12 = vadd.f32 %v3342_v32, %v3341_v63  ;;  %4410 = vpow2.f32 %v2994_v13  ;;  %v3410_v31 = vpack.c.bf16 %v3338_v10, %v3338_v10 }
 0x4ab   : > { %v3108_v59 = vrot.slane %v3107_v42, 1  ;;  %v3114_v58 = vadd.f32 %v3113_v52, %v3112_v62  ;;  %4412 = vpow2.f32 %v2996_v54  ;;  %v2905_v46 = vmax.f32 %v2903_v38, %v2904_v34  ;;  %v6414_v52 = vld [vmem:[#allocation3_spill] sm:$0xff]  ;;  %v6415_v54 = vld [vmem:[#allocation38_spill] sm:$0xff] }
 0x4ac   : > { %v3344_v30 = vrot.slane %v3343_v12, 2  ;;  %v3457_v57 = vunpack.c.l.b16 %v3410_v31 }
 0x4ad   : > { %v3109_v5 = vadd.f32 %v3108_v59, %v3107_v42  ;;  %v3115_v2 = vrot.slane %v3114_v58, 2  ;;  %v2936_v20 = vsub.f32 %v6061_v28, %v2905_v46  ;;  %v2937_v36 = vsub.f32 %v6066_v17, %v2905_v46 }
 0x4ae   : > { %v3345_v23 = vadd.f32 %v3344_v30, %v3343_v12 }
 0x4af   : > { %v6113_v33 = vpop.eup %4404  ;;  %4414 = vrcp.f32 %v3109_v5  ;;  %v3116_v3 = vadd.f32 %v3115_v2, %v3114_v58  ;;  %v2998_v15 = vmul.f32 1.442695, %v2936_v20  ;;  %v3000_v1 = vmul.f32 1.442695, %v2937_v36 }
 0x4b0   : > { %v3346_v8 = vrot.slane %v3345_v23, 1  ;;  %v3119_v39 = vsel %vm2128_vm3, %v6113_v33, 0.0 }
 0x4b1   : > { %v4407_v47 = vpop.eup %4406  ;;  %v3117_v14 = vrot.slane %v3116_v3, 1  ;;  %4416 = vpow2.f32 %v2998_v15 }
 0x4b2   : > { %v3347_v49 = vadd.f32 %v3346_v8, %v3345_v23  ;;  %v3182_v48 = vmul.f32 %v4407_v47, %v6045_v25  ;;  %v3183_v28 = vmul.f32 %v4407_v47, %v6049_v43  ;;  %4418 = vpow2.f32 %v3000_v1 }
 0x4b3   : > { %v6119_v17 = vpop.eup %4408  ;;  %v3118_v44 = vadd.f32 %v3117_v14, %v3116_v3  ;;  %v6416_v14 = vld [vmem:[#allocation39_spill] sm:$0xff] }
 0x4b4   : > { %v3411_v27 = vpack.c.bf16 %v3347_v49, %v3347_v49  ;;  %v3246_v53 = vmul.f32 %v5453_v9, %v3182_v48  ;;  %v3247_v26 = vmul.f32 %v6413_v50, %v3183_v28  ;;  %v3120_v7 = vsel %vm2128_vm3, %v6119_v17, 0.0  ;;  %v6417_v49 = vld [vmem:[#allocation5_spill] sm:$0xff] }
 0x4b5   : > { %4420 = vrcp.f32 %v3118_v44  ;;  %v3121_v11 = vadd.f32 %v3120_v7, %v3119_v39 }
 0x4b6   : > { %v3458_v16 = vunpack.c.l.b16 %v3411_v27  ;;  %v3348_v25 = vsel %vm2128_vm3, %v3246_v53, 0.0  ;;  %v3349_v43 = vsel %vm2128_vm3, %v3247_v26, 0.0 }
 0x4b7   : > { %v3350_v61 = vadd.f32 %v3349_v43, %v3348_v25  ;;  %v3122_v45 = vrot.slane %v3121_v11, 4  ;;  %v6127_v41 = vpop.eup %4410 }
 0x4b8   : > { %v3479_v29 = vsel %vm3465_vm4, %v3458_v16, %v3457_v57  ;;  %v6130_v9 = vpop.eup %4412  ;;  %v3128_v21 = vsel %vm2128_vm3, %v6127_v41, 0.0 }
 0x4b9   : > { %v3351_v51 = vrot.slane %v3350_v61, 4  ;;  %v3123_v60 = vadd.f32 %v3122_v45, %v3121_v11  ;;  %v3129_v63 = vsel %vm2128_vm3, %v6130_v9, 0.0 }
 0x4ba   : > { %v3130_v40 = vadd.f32 %v3129_v63, %v3128_v21 }
 0x4bb   : > { %v3352_v22 = vadd.f32 %v3351_v51, %v3350_v61  ;;  %v3124_v0 = vrot.slane %v3123_v60, 2 }
 0x4bc   : > { %v4415_v62 = vpop.eup %4414  ;;  %v3131_v38 = vrot.slane %v3130_v40, 4 }
 0x4bd   : > { %v3353_v37 = vrot.slane %v3352_v22, 2  ;;  %v3184_v6 = vmul.f32 %v4415_v62, %v6080_v19  ;;  %v3185_v55 = vmul.f32 %v4415_v62, %v6084_v4  ;;  %v3125_v32 = vadd.f32 %v3124_v0, %v3123_v60 }
 0x4be   : > { %v6138_v35 = vpop.eup %4416  ;;  %v3132_v58 = vadd.f32 %v3131_v38, %v3130_v40 }
 0x4bf   : > { %v3354_v42 = vadd.f32 %v3353_v37, %v3352_v22  ;;  %v3248_v13 = vmul.f32 %v6414_v52, %v3184_v6  ;;  %v3249_v12 = vmul.f32 %v6415_v54, %v3185_v55  ;;  %v3126_v34 = vrot.slane %v3125_v32, 1  ;;  %v6142_v59 = vpop.eup %4418 }
 0x4c0   : > { %v3137_v30 = vsel %vm2128_vm3, %v6138_v35, 0.0  ;;  %v3133_v23 = vrot.slane %v3132_v58, 2  ;;  %v3138_v20 = vsel %vm2128_vm3, %v6142_v59, 0.0 }
 0x4c1   : > { %v3355_v46 = vrot.slane %v3354_v42, 1  ;;  %v3357_v19 = vsel %vm2128_vm3, %v3248_v13, 0.0  ;;  %v3358_v4 = vsel %vm2128_vm3, %v3249_v12, 0.0  ;;  %v3127_v10 = vadd.f32 %v3126_v34, %v3125_v32  ;;  %v6418_v32 = vld [vmem:[#allocation4_spill] sm:$0xff]  ;;  %v4430_v12 = vld [vmem:[%s6217_s6] ss:$0 sm:$0xff] }
 0x4c2   : > { %v4421_v5 = vpop.eup %4420  ;;  %v3359_v2 = vadd.f32 %v3358_v4, %v3357_v19  ;;  %v3134_v1 = vadd.f32 %v3133_v23, %v3132_v58  ;;  %v3139_v47 = vadd.f32 %v3138_v20, %v3137_v30  ;;  %v6420_v34 = vld [vmem:[#allocation51_spill] sm:$0xff]  ;;  %v6421_v4 = vld [vmem:[#allocation41_spill] sm:$0xff] }
 0x4c3   : > { %v3356_v36 = vadd.f32 %v3355_v46, %v3354_v42  ;;  %v3186_v3 = vmul.f32 %v4421_v5, %v6094_v56  ;;  %v3187_v8 = vmul.f32 %v4421_v5, %v6097_v24  ;;  %4422 = vrcp.f32 %v3127_v10  ;;  %v6419_v42 = vld [vmem:[#allocation19_spill] sm:$0xff] }
 0x4c4   : > { %v3360_v15 = vrot.slane %v3359_v2, 4  ;;  %v3135_v44 = vrot.slane %v3134_v1, 1  ;;  %v3140_v27 = vrot.slane %v3139_v47, 4  ;;  %v1348_v58 = vadd.f32 %v4430_v12, %v6420_v34 }
 0x4c5   : > { %v3412_v31 = vpack.c.bf16 %v3356_v36, %v3356_v36  ;;  %v3250_v39 = vmul.f32 %v6416_v14, %v3186_v3  ;;  %v3251_v48 = vmul.f32 %v6417_v49, %v3187_v8  ;;  %v6422_v3 = vld [vmem:[#allocation21_spill] sm:$0xff] }
 0x4c6   : > { %v3361_v28 = vadd.f32 %v3360_v15, %v3359_v2  ;;  %v3136_v24 = vadd.f32 %v3135_v44, %v3134_v1  ;;  %v3141_v11 = vadd.f32 %v3140_v27, %v3139_v47  ;;  %v3223_v10 = vadd.f32 %v6421_v4, %v1348_v58 }
 0x4c7   : > { %v3459_v53 = vunpack.c.l.b16 %v3412_v31  ;;  %v3366_v50 = vsel %vm2128_vm3, %v3250_v39, 0.0  ;;  %v3367_v26 = vsel %vm2128_vm3, %v3251_v48, 0.0 }
 0x4c8   : > { %v3362_v56 = vrot.slane %v3361_v28, 2  ;;  %v3368_v7 = vadd.f32 %v3367_v26, %v3366_v50  ;;  %4424 = vrcp.f32 %v3136_v24  ;;  %v3142_v43 = vrot.slane %v3141_v11, 2  ;;  %v6423_v50 = vld [vmem:[#allocation40_spill] sm:$0xff] }
 0x4c9   : > { %v3480_v57 = vsel %vm3467_vm5, %v3459_v53, %v3479_v29 }
 0x4ca   : > { %v3363_v16 = vadd.f32 %v3362_v56, %v3361_v28  ;;  %v3369_v25 = vrot.slane %v3368_v7, 4  ;;  %v3143_v51 = vadd.f32 %v3142_v43, %v3141_v11  ;;  %v6424_v56 = vld [vmem:[#allocation20_spill] sm:$0xff] }
 0x4cc   : > { %v3364_v61 = vrot.slane %v3363_v16, 1  ;;  %v3370_v45 = vadd.f32 %v3369_v25, %v3368_v7  ;;  %v3144_v63 = vrot.slane %v3143_v51, 1 }
 0x4ce   : > { %v3365_v60 = vadd.f32 %v3364_v61, %v3363_v16  ;;  %v3371_v21 = vrot.slane %v3370_v45, 2  ;;  %v3145_v62 = vadd.f32 %v3144_v63, %v3143_v51 }
 0x4d0   : > { %v4423_v22 = vpop.eup %4422  ;;  %v3413_v0 = vpack.c.bf16 %v3365_v60, %v3365_v60  ;;  %v3372_v40 = vadd.f32 %v3371_v21, %v3370_v45  ;;  %4426 = vrcp.f32 %v3145_v62 }
 0x4d1   : > { %v3188_v37 = vmul.f32 %v4423_v22, %v6113_v33  ;;  %v3189_v6 = vmul.f32 %v4423_v22, %v6119_v17 }
 0x4d2   : > { %v3460_v55 = vunpack.c.l.b16 %v3413_v0  ;;  %v3373_v29 = vrot.slane %v3372_v40, 1 }
 0x4d3   : > { %v3252_v38 = vmul.f32 %v6418_v32, %v3188_v37  ;;  %v3253_v52 = vmul.f32 %v6419_v42, %v3189_v6 }
 0x4d4   : > { %v3374_v13 = vadd.f32 %v3373_v29, %v3372_v40  ;;  %v3481_v54 = vsel %vm3469_vm6, %v3460_v55, %v3480_v57 }
 0x4d5   : > { %v3375_v33 = vsel %vm2128_vm3, %v3252_v38, 0.0  ;;  %v3376_v17 = vsel %vm2128_vm3, %v3253_v52, 0.0  ;;  %v4425_v19 = vpop.eup %4424  ;;  %v3859_v38 = vld [vmem:[%s6227_s16] ss:$0 sm:$0xff] }
 0x4d6   : > { %v3414_v30 = vpack.c.bf16 %v3374_v13, %v3374_v13  ;;  %v3377_v46 = vadd.f32 %v3376_v17, %v3375_v33  ;;  %v3190_v23 = vmul.f32 %v4425_v19, %v6127_v41  ;;  %v3191_v20 = vmul.f32 %v4425_v19, %v6130_v9 }
 0x4d8   : > { %v3461_v5 = vunpack.c.l.b16 %v3414_v30  ;;  %v3378_v2 = vrot.slane %v3377_v46, 4  ;;  %v3254_v8 = vmul.f32 %v6422_v3, %v3190_v23  ;;  %v3255_v15 = vmul.f32 %v3223_v10, %v3191_v20 }
 0x4da   : > { %v3379_v36 = vadd.f32 %v3378_v2, %v3377_v46  ;;  %v3482_v1 = vsel %vm3471_vm7, %v3461_v5, %v3481_v54  ;;  %v3384_v31 = vsel %vm2128_vm3, %v3254_v8, 0.0  ;;  %v3385_v14 = vsel %vm2128_vm3, %v3255_v15, 0.0 }
 0x4db   : > { %v3386_v39 = vadd.f32 %v3385_v14, %v3384_v31 }
 0x4dc   : > { %v3380_v47 = vrot.slane %v3379_v36, 2 }
 0x4dd   : > { %v4427_v48 = vpop.eup %4426  ;;  %v3387_v28 = vrot.slane %v3386_v39, 4 }
 0x4de   : > { %v3381_v49 = vadd.f32 %v3380_v47, %v3379_v36  ;;  %v3192_v41 = vmul.f32 %v4427_v48, %v6138_v35  ;;  %v3193_v9 = vmul.f32 %v4427_v48, %v6142_v59 }
 0x4df   : > { %v3388_v27 = vadd.f32 %v3387_v28, %v3386_v39 }
 0x4e0   : > { %v3382_v44 = vrot.slane %v3381_v49, 1  ;;  %v3256_v26 = vmul.f32 %v6423_v50, %v3192_v41  ;;  %v3257_v7 = vmul.f32 %v6424_v56, %v3193_v9 }
 0x4e1   : > { %v3389_v24 = vrot.slane %v3388_v27, 2 }
 0x4e2   : > { %v3383_v53 = vadd.f32 %v3382_v44, %v3381_v49  ;;  %v3393_v57 = vsel %vm2128_vm3, %v3256_v26, 0.0  ;;  %v3394_v16 = vsel %vm2128_vm3, %v3257_v7, 0.0 }
 0x4e3   : > { %v3390_v25 = vadd.f32 %v3389_v24, %v3388_v27  ;;  %v3395_v43 = vadd.f32 %v3394_v16, %v3393_v57 }
 0x4e4   : > { %v3415_v11 = vpack.c.bf16 %v3383_v53, %v3383_v53 }
 0x4e5   : > { %v3391_v45 = vrot.slane %v3390_v25, 1  ;;  %v3396_v51 = vrot.slane %v3395_v43, 4 }
 0x4e6   : > { %v3462_v61 = vunpack.c.l.b16 %v3415_v11 }
 0x4e7   : > { %v3392_v59 = vadd.f32 %v3391_v45, %v3390_v25  ;;  %v3397_v60 = vadd.f32 %v3396_v51, %v3395_v43 }
 0x4e8   : > { %v3483_v35 = vsel %vm3473_vm8, %v3462_v61, %v3482_v1 }
 0x4e9   : > { %v3416_v21 = vpack.c.bf16 %v3392_v59, %v3392_v59  ;;  %v3398_v63 = vrot.slane %v3397_v60, 2 }
 0x4eb   : > { %v3463_v22 = vunpack.c.l.b16 %v3416_v21  ;;  %v3399_v0 = vadd.f32 %v3398_v63, %v3397_v60 }
 0x4ed   : > { %v3400_v40 = vrot.slane %v3399_v0, 1  ;;  %v3484_v62 = vsel %vm3475_vm10, %v3463_v22, %v3483_v35 }
 0x4ef   : > { %v3401_v37 = vadd.f32 %v3400_v40, %v3399_v0 }
 0x4f1   : > { %v3417_v6 = vpack.c.bf16 %v3401_v37, %v3401_v37 }
 0x4f3   : > { %v3464_v55 = vunpack.c.l.b16 %v3417_v6 }
 0x4f5   : > { %v3485_v29 = vsel %vm3477_vm11, %v3464_v55, %v3484_v62 }
 0x4f6   : > { %v3486_v32 = vpack.c.b16 %v3485_v29, %v6109_v18 }
 0x4f8   : > { %4200 = vmatmul.mubr.msk.bf16.vlgmr.msra.gmra.mxu0 %vm2128_vm3, %v3486_v32 }
 0x5b8   : > { %v3548_v42 = vpop.f32.mrf.mxu0 }
 0x5b9   : > { %v3549_v52 = vadd.f32 %v3859_v38, %v3548_v42 }
 0x5ba   : > { %v4201_v13 = vpop.f32.mrf.mxu0 }
 0x5bb   : > { %3555 = vst.msk [vmem:[%s658_s22] sm:$0xff] %vm2128_vm3, %v3549_v52 }
 0x5bc   : > { %v3551_v18 = vpop.f32.mrf.mxu0 }
 0x5bd   : > { %v3552_v54 = vadd.f32 %v3859_v38, %v3551_v18 }
 0x5be   : > { %v4202_v12 = vpop.f32.mrf.mxu0 }
 0x5bf   : > { %3556 = vst.msk [vmem:[%s658_s22 + $0x8] sm:$0xff] %vm2128_vm3, %v3552_v54 }
 0x5c0 PF: > { %s27_s28 = sadd.s32 1, %s4469_s28   ;;  %s6425_s18 = sld [smem:[#allocation2_spill]] }
 0x5c1   : > { %p24_p8 = scmp.ge.s32.totalorder %s27_s28, 10   ;;  %s6426_s24 = smov %s4461_s26 }
 0x5c2   : > { %s6427_s25 = smov %s4465_s27  ;;  %s6428_s26 = smov %s6431_s29 }
 0x5c3   :  { %26 = sbr.rel (!%p24_p8) target bundleno = 4 (0x4), region = 124 }
 0x5c6   : > { %s6429_s27 = smov %s6425_s18 }

</bundles_post_ra>
